<compile_context>
chip_gen: v7x
topology: tpu7x:2x2x1
jax: 0.10.0
libtpu: 0.0.40
codegen_flags: <defaults>
</compile_context>

<pallas_src>
import functools

import jax
import jax.numpy as jnp
from jax.experimental import pallas as pl
from jax.experimental.pallas import tpu as pltpu

# Hyperparameters implied by the module
P = 2
S = 3
WINDOW = P + S + 1               # 6
EMBEDDING_DIM = 100
IN_DIM = WINDOW * EMBEDDING_DIM  # 600


def _ffnn_kernel(vocab, ids_ref, ew1_ref, b1_ref, w2_ref, b2_ref, out_ref):
    # ids_ref: (TB, W)   int32  token ids for this batch tile
    # ew1_ref: (WVp, Hp) f32    pre-folded emb @ fc1, flat over (window, vocab)
    # b1_ref : (1, Hp)   f32
    # w2_ref : (Hp, Op)  f32
    # b2_ref : (1, Op)   f32
    # out_ref: (TB, Op)  f32
    tb = ids_ref.shape[0]
    wvp = ew1_ref.shape[0]

    ids = ids_ref[...]                                            # (TB, W)
    flat_iota = jax.lax.broadcasted_iota(jnp.int32, (tb, wvp), 1)

    # Flat one-hot over the (window, vocab) index space: lane w*V + id fires.
    # Six VPU compares; padded lanes (>= WINDOW*vocab) never match.
    onehot = jnp.zeros((tb, wvp), jnp.float32)
    for w in range(WINDOW):                                       # static unroll
        onehot = onehot + (
            flat_iota == (ids[:, w:w + 1] + w * vocab)).astype(jnp.float32)

    # Single fused gather+fc1 matmul: exact row selection + 6-term sum in MXU.
    acc = jnp.dot(onehot, ew1_ref[...], preferred_element_type=jnp.float32)
    h = jnp.maximum(acc + b1_ref[...], 0.0)                       # ReLU(fc1)
    o = jnp.dot(h, w2_ref[...], preferred_element_type=jnp.float32) + b2_ref[...]
    out_ref[...] = o.astype(out_ref.dtype)


def ffnn_forward(x_ids, embedding, w1, b1, w2, b2, *, tile_b=256):
    """x_ids: (B, WINDOW) int32 token ids.  Returns (B, output_dim) f32."""
    B, W = x_ids.shape
    assert W == WINDOW
    V, E = embedding.shape
    assert E == EMBEDDING_DIM
    in_dim, hidden_dim = w1.shape
    assert in_dim == IN_DIM
    output_dim = w2.shape[1]

    # Lane-pad hidden / output dims and the flat (window, vocab) axis.
    Hp = max(128, ((hidden_dim + 127) // 128) * 128)
    Op = max(128, ((output_dim + 127) // 128) * 128)
    WV = WINDOW * V
    WVp = max(128, ((WV + 127) // 128) * 128)

    # Pre-fold embedding into fc1:  ew1[w*V + v, h] = sum_e emb[v, e] * w1[w*E + e, h].
    emb = embedding.astype(jnp.float32)
    w1_3 = w1.astype(jnp.float32).reshape(WINDOW, E, hidden_dim)
    ew1 = jnp.einsum("ve,weh->wvh", emb, w1_3).reshape(WV, hidden_dim)
    ew1 = jnp.pad(ew1, ((0, WVp - WV), (0, Hp - hidden_dim)))     # (WVp, Hp)

    b1p = jnp.pad(b1.astype(jnp.float32).reshape(1, hidden_dim),
                  ((0, 0), (0, Hp - hidden_dim)))
    w2p = jnp.pad(w2.astype(jnp.float32),
                  ((0, Hp - hidden_dim), (0, Op - output_dim)))
    b2p = jnp.pad(b2.astype(jnp.float32).reshape(1, output_dim),
                  ((0, 0), (0, Op - output_dim)))

    # Pad batch to a multiple of tile_b so the grid tiles evenly.
    # (Out-of-range token ids would silently yield a zero embedding here,
    #  unlike nn.Embedding which raises; inputs are assumed valid.)
    ids = x_ids.astype(jnp.int32)
    pad = (-B) % tile_b
    if pad:
        ids = jnp.pad(ids, ((0, pad), (0, 0)))          # id 0 rows: valid, discarded
    Bp = ids.shape[0]

    kernel = functools.partial(_ffnn_kernel, V)

    out = pl.pallas_call(
        kernel,
        out_shape=jax.ShapeDtypeStruct((Bp, Op), jnp.float32),
        grid_spec=pltpu.PrefetchScalarGridSpec(
            num_scalar_prefetch=0,
            grid=(Bp // tile_b,),
            in_specs=[
                pl.BlockSpec((tile_b, WINDOW), lambda i: (i, 0)),   # ids tile
                pl.BlockSpec((WVp, Hp), lambda i: (0, 0)),          # folded emb@fc1
                pl.BlockSpec((1, Hp), lambda i: (0, 0)),            # fc1 bias
                pl.BlockSpec((Hp, Op), lambda i: (0, 0)),           # fc2 weight
                pl.BlockSpec((1, Op), lambda i: (0, 0)),            # fc2 bias
            ],
            out_specs=pl.BlockSpec((tile_b, Op), lambda i: (i, 0)),
        ),
        compiler_params=pltpu.CompilerParams(
            dimension_semantics=("parallel",)),
    )(ids, ew1, b1p, w2p, b2p)

    return out[:B, :output_dim]


if __name__ == "__main__":
    # Small, deterministic configuration consistent with the module.
    vocab_size = 50
    hidden_dim = 64
    output_dim = 16
    batch = 500            # pads to 512 -> 2 parallel grid steps at tile_b=256

    key = jax.random.PRNGKey(0)
    k_emb, k_w1, k_b1, k_w2, k_b2, k_x = jax.random.split(key, 6)

    embedding = jax.random.normal(k_emb, (vocab_size, EMBEDDING_DIM),
                                  dtype=jnp.float32)
    w1 = jax.random.normal(k_w1, (IN_DIM, hidden_dim),
                           dtype=jnp.float32) * 0.02
    b1 = jax.random.normal(k_b1, (hidden_dim,), dtype=jnp.float32) * 0.02
    w2 = jax.random.normal(k_w2, (hidden_dim, output_dim),
                           dtype=jnp.float32) * 0.02
    b2 = jax.random.normal(k_b2, (output_dim,), dtype=jnp.float32) * 0.02

    x_ids = jax.random.randint(k_x, (batch, WINDOW), 0, vocab_size,
                               dtype=jnp.int32)

    out = ffnn_forward(x_ids, embedding, w1, b1, w2, b2)
    out = jax.block_until_ready(out)

    # Reference check in plain JAX (same math, un-folded).
    feats = jnp.take(embedding, x_ids, axis=0).reshape(batch, IN_DIM)
    ref = jnp.maximum(feats @ w1 + b1, 0.0) @ w2 + b2
    assert out.shape == (batch, output_dim)
    assert jnp.allclose(out, ref, atol=1e-4, rtol=1e-4)

    print("KERNEL_OK")
</pallas_src>

<mosaic_0001>
module attributes {stable_mosaic.version = 11 : i64} {
  func.func @_ffnn_kernel(%arg0: i32, %arg1: memref<256x6xi32, #tpu.memory_space<vmem>>, %arg2: memref<384x128xf32, #tpu.memory_space<vmem>>, %arg3: memref<1x128xf32, #tpu.memory_space<vmem>>, %arg4: memref<128x128xf32, #tpu.memory_space<vmem>>, %arg5: memref<1x128xf32, #tpu.memory_space<vmem>>, %arg6: memref<256x128xf32, #tpu.memory_space<vmem>>) attributes {dimension_semantics = [#tpu.dimension_semantics<parallel>], iteration_bounds = array<i64: 2>, scalar_prefetch = 0 : i64, scratch_operands = 0 : i64, tpu.core_type = #tpu.core_type<tc>, window_params = [{transform_indices = @transform_0, window_bounds = array<i64: 256, 6>}, {pipeline_mode = #tpu.pipeline_mode<synchronous>, transform_indices = @transform_1, window_bounds = array<i64: 384, 128>}, {pipeline_mode = #tpu.pipeline_mode<synchronous>, transform_indices = @transform_2, window_bounds = array<i64: 1, 128>}, {pipeline_mode = #tpu.pipeline_mode<synchronous>, transform_indices = @transform_3, window_bounds = array<i64: 128, 128>}, {pipeline_mode = #tpu.pipeline_mode<synchronous>, transform_indices = @transform_4, window_bounds = array<i64: 1, 128>}, {transform_indices = @transform_5, window_bounds = array<i64: 256, 128>}]} {
    %c0 = arith.constant 0 : index
    %c0_0 = arith.constant 0 : index
    %0 = vector.load %arg1[%c0, %c0_0] : memref<256x6xi32, #tpu.memory_space<vmem>>, vector<256x6xi32>
    %1 = tpu.iota {dimensions = array<i32: 1>} : vector<256x384xi32>
    %cst = arith.constant 0.000000e+00 : f32
    %2 = vector.broadcast %cst : f32 to vector<256x384xf32>
    %3 = vector.extract_strided_slice %0 {offsets = [0, 0], sizes = [256, 1], strides = [1, 1]} : vector<256x6xi32> to vector<256x1xi32>
    %c0_i32 = arith.constant 0 : i32
    %4 = vector.broadcast %c0_i32 : i32 to vector<256x1xi32>
    %5 = arith.addi %3, %4 : vector<256x1xi32>
    %6 = vector.broadcast %5 : vector<256x1xi32> to vector<256x384xi32>
    %7 = arith.cmpi eq, %1, %6 : vector<256x384xi32>
    %8 = arith.extui %7 : vector<256x384xi1> to vector<256x384xi32>
    %9 = arith.sitofp %8 : vector<256x384xi32> to vector<256x384xf32>
    %10 = arith.addf %2, %9 : vector<256x384xf32>
    %11 = vector.extract_strided_slice %0 {offsets = [0, 1], sizes = [256, 1], strides = [1, 1]} : vector<256x6xi32> to vector<256x1xi32>
    %c50_i32 = arith.constant 50 : i32
    %12 = vector.broadcast %c50_i32 : i32 to vector<256x1xi32>
    %13 = arith.addi %11, %12 : vector<256x1xi32>
    %14 = vector.broadcast %13 : vector<256x1xi32> to vector<256x384xi32>
    %15 = arith.cmpi eq, %1, %14 : vector<256x384xi32>
    %16 = arith.extui %15 : vector<256x384xi1> to vector<256x384xi32>
    %17 = arith.sitofp %16 : vector<256x384xi32> to vector<256x384xf32>
    %18 = arith.addf %10, %17 : vector<256x384xf32>
    %19 = vector.extract_strided_slice %0 {offsets = [0, 2], sizes = [256, 1], strides = [1, 1]} : vector<256x6xi32> to vector<256x1xi32>
    %c100_i32 = arith.constant 100 : i32
    %20 = vector.broadcast %c100_i32 : i32 to vector<256x1xi32>
    %21 = arith.addi %19, %20 : vector<256x1xi32>
    %22 = vector.broadcast %21 : vector<256x1xi32> to vector<256x384xi32>
    %23 = arith.cmpi eq, %1, %22 : vector<256x384xi32>
    %24 = arith.extui %23 : vector<256x384xi1> to vector<256x384xi32>
    %25 = arith.sitofp %24 : vector<256x384xi32> to vector<256x384xf32>
    %26 = arith.addf %18, %25 : vector<256x384xf32>
    %27 = vector.extract_strided_slice %0 {offsets = [0, 3], sizes = [256, 1], strides = [1, 1]} : vector<256x6xi32> to vector<256x1xi32>
    %c150_i32 = arith.constant 150 : i32
    %28 = vector.broadcast %c150_i32 : i32 to vector<256x1xi32>
    %29 = arith.addi %27, %28 : vector<256x1xi32>
    %30 = vector.broadcast %29 : vector<256x1xi32> to vector<256x384xi32>
    %31 = arith.cmpi eq, %1, %30 : vector<256x384xi32>
    %32 = arith.extui %31 : vector<256x384xi1> to vector<256x384xi32>
    %33 = arith.sitofp %32 : vector<256x384xi32> to vector<256x384xf32>
    %34 = arith.addf %26, %33 : vector<256x384xf32>
    %35 = vector.extract_strided_slice %0 {offsets = [0, 4], sizes = [256, 1], strides = [1, 1]} : vector<256x6xi32> to vector<256x1xi32>
    %c200_i32 = arith.constant 200 : i32
    %36 = vector.broadcast %c200_i32 : i32 to vector<256x1xi32>
    %37 = arith.addi %35, %36 : vector<256x1xi32>
    %38 = vector.broadcast %37 : vector<256x1xi32> to vector<256x384xi32>
    %39 = arith.cmpi eq, %1, %38 : vector<256x384xi32>
    %40 = arith.extui %39 : vector<256x384xi1> to vector<256x384xi32>
    %41 = arith.sitofp %40 : vector<256x384xi32> to vector<256x384xf32>
    %42 = arith.addf %34, %41 : vector<256x384xf32>
    %43 = vector.extract_strided_slice %0 {offsets = [0, 5], sizes = [256, 1], strides = [1, 1]} : vector<256x6xi32> to vector<256x1xi32>
    %c250_i32 = arith.constant 250 : i32
    %44 = vector.broadcast %c250_i32 : i32 to vector<256x1xi32>
    %45 = arith.addi %43, %44 : vector<256x1xi32>
    %46 = vector.broadcast %45 : vector<256x1xi32> to vector<256x384xi32>
    %47 = arith.cmpi eq, %1, %46 : vector<256x384xi32>
    %48 = arith.extui %47 : vector<256x384xi1> to vector<256x384xi32>
    %49 = arith.sitofp %48 : vector<256x384xi32> to vector<256x384xf32>
    %50 = arith.addf %42, %49 : vector<256x384xf32>
    %c0_1 = arith.constant 0 : index
    %c0_2 = arith.constant 0 : index
    %51 = vector.load %arg2[%c0_1, %c0_2] : memref<384x128xf32, #tpu.memory_space<vmem>>, vector<384x128xf32>
    %cst_3 = arith.constant dense<0.000000e+00> : vector<256x128xf32>
    %52 = tpu.matmul %50, %51, %cst_3 {dimension_numbers = #tpu.dot_dimension_numbers<[1], [0], [0], [1], [0, 0, 1, 1], [], []>} : vector<256x384xf32>, vector<384x128xf32>, vector<256x128xf32> -> vector<256x128xf32>
    %c0_4 = arith.constant 0 : index
    %c0_5 = arith.constant 0 : index
    %53 = vector.load %arg3[%c0_4, %c0_5] : memref<1x128xf32, #tpu.memory_space<vmem>>, vector<1x128xf32>
    %54 = vector.broadcast %53 : vector<1x128xf32> to vector<256x128xf32>
    %55 = arith.addf %52, %54 : vector<256x128xf32>
    %cst_6 = arith.constant 0.000000e+00 : f32
    %56 = vector.broadcast %cst_6 : f32 to vector<256x128xf32>
    %57 = arith.maximumf %55, %56 : vector<256x128xf32>
    %c0_7 = arith.constant 0 : index
    %c0_8 = arith.constant 0 : index
    %58 = vector.load %arg4[%c0_7, %c0_8] : memref<128x128xf32, #tpu.memory_space<vmem>>, vector<128x128xf32>
    %cst_9 = arith.constant dense<0.000000e+00> : vector<256x128xf32>
    %59 = tpu.matmul %57, %58, %cst_9 {dimension_numbers = #tpu.dot_dimension_numbers<[1], [0], [0], [1], [0, 0, 1, 1], [], []>} : vector<256x128xf32>, vector<128x128xf32>, vector<256x128xf32> -> vector<256x128xf32>
    %c0_10 = arith.constant 0 : index
    %c0_11 = arith.constant 0 : index
    %60 = vector.load %arg5[%c0_10, %c0_11] : memref<1x128xf32, #tpu.memory_space<vmem>>, vector<1x128xf32>
    %61 = vector.broadcast %60 : vector<1x128xf32> to vector<256x128xf32>
    %62 = arith.addf %59, %61 : vector<256x128xf32>
    %c0_12 = arith.constant 0 : index
    %c0_13 = arith.constant 0 : index
    %63 = vector.load %arg6[%c0_12, %c0_13] : memref<256x128xf32, #tpu.memory_space<vmem>>, vector<256x128xf32>
    tpu.vector_store %arg6[%c0_12, %c0_13], %62 {strides = array<i32>} : memref<256x128xf32, #tpu.memory_space<vmem>>, vector<256x128xf32>,
    return
  }
  func.func @transform_0(%arg0: i32) -> (i32, i32) {
    %c0_i32 = arith.constant 0 : i32
    %c0_i32_0 = arith.constant 0 : i32
    return %arg0, %c0_i32 : i32, i32
  }
  func.func @transform_1(%arg0: i32) -> (i32, i32) {
    %c0_i32 = arith.constant 0 : i32
    %c0_i32_0 = arith.constant 0 : i32
    %c0_i32_1 = arith.constant 0 : i32
    return %c0_i32, %c0_i32_0 : i32, i32
  }
  func.func @transform_2(%arg0: i32) -> (i32, i32) {
    %c0_i32 = arith.constant 0 : i32
    %c0_i32_0 = arith.constant 0 : i32
    %c0_i32_1 = arith.constant 0 : i32
    return %c0_i32, %c0_i32_0 : i32, i32
  }
  func.func @transform_3(%arg0: i32) -> (i32, i32) {
    %c0_i32 = arith.constant 0 : i32
    %c0_i32_0 = arith.constant 0 : i32
    %c0_i32_1 = arith.constant 0 : i32
    return %c0_i32, %c0_i32_0 : i32, i32
  }
  func.func @transform_4(%arg0: i32) -> (i32, i32) {
    %c0_i32 = arith.constant 0 : i32
    %c0_i32_0 = arith.constant 0 : i32
    %c0_i32_1 = arith.constant 0 : i32
    return %c0_i32, %c0_i32_0 : i32, i32
  }
  func.func @transform_5(%arg0: i32) -> (i32, i32) {
    %c0_i32 = arith.constant 0 : i32
    %c0_i32_0 = arith.constant 0 : i32
    return %arg0, %c0_i32 : i32, i32
  }
}

</mosaic_0001>

<bundles_post_ra>
// kernel: tpu_custom_call.1
= control target key start
LH: loop header
LB: loop body
LE: loop exit
PB: predicated region body
PF: predicated region fallthrough
CT: control target
= control target key end

     0   :  { %10 = vsyncpa [#allocation3], 0  ;;  %s9668_s0 = inlined_call_operand.vmem [shape: s32[512,6], index: 0, kind: input, shape index: {}]   ;;  %s9669_s1 = inlined_call_operand.vmem [shape: f32[384,128], index: 1, kind: input, shape index: {}]   ;;  %s9670_s2 = inlined_call_operand.vmem [shape: f32[1,128], index: 2, kind: input, shape index: {}]   ;;  %s9671_s3 = inlined_call_operand.vmem [shape: f32[128,128], index: 3, kind: input, shape index: {}]   ;;  %s9672_s4 = inlined_call_operand.vmem [shape: f32[1,128], index: 4, kind: input, shape index: {}]   ;;  %s9673_s5 = inlined_call_operand.hbm [shape: f32[512,128], index: 5, kind: output, shape index: {}]  }
   0x1   :  { %12 = vsyncpa [#allocation3 + $0x1], 0  ;;  %s5442_s18 = smov 0   ;;  %s5444_s19 = smov 0  }
   0x2   :  { %s5446_s20 = smov 0   ;;  %s5448_s21 = smov 0  }
   0x3 LB: > { %s5463_s22 = sadd.s32 4294967295, %s5399_s21   ;;  %s4195_s23 = sadd.s32 4294967294, %s5399_s21   ;;  %s5399_s21 = sphi %s5448_s21, %s10029_s21   ;;  %s5395_s20 = sphi %s5446_s20, %s10028_s20   ;;  %s5391_s19 = sphi %s5444_s19, %s10027_s19   ;;  %s5387_s18 = sphi %s5442_s18, %s10026_s18  }
   0x4   : > { %s5467_s24 = sadd.s32 1, %s5399_s21   ;;  %s135_s25 = sadd.s32 1, %s5395_s20 }
   0x5   : > { %s132_s26 = ssub.s32 %s5399_s21, %s5467_s24  ;;  %p145_p0 = scmp.ne.s32.totalorder %s5395_s20, %s5391_s19 }
   0x6   : > { %p133_p1 = scmp.eq.s32.totalorder %s132_s26, 0  ;;  %p146_p2 = scmp.eq.s32.totalorder %s5463_s22, 1 }
   0x7   : > { %p151_p3 = scmp.ne.s32.totalorder %s5391_s19, %s5387_s18  ;;  %p152_p4 = scmp.eq.s32.totalorder %s4195_s23, 1 }
   0x8   : > { %s5478_s27 = scalar_select %p133_p1, %s5395_s20, %s135_s25  }
   0x9   : > { %p5480_p5 = por %p146_p2, %p145_p0  ;;  %p5484_p6 = por %p152_p4, %p151_p3 }
   0xa   : > { %p4198_p7 = scmp.ge.s32.totalorder %s5399_s21, 1  ;;  %p191_p8 = scmp.lt.s32.totalorder %s5399_s21, 3 }
   0xc   : > { %p192_p9 = pnand %p4198_p7, %p191_p8 }
   0xe   : > { %195 = sbr.rel (%p192_p9) target bundleno = 1208 (0x4b8), region = 40 }
  0x15   : > { %s4200_s30 = sshll.u32 %s5463_s22, 5  ;;  %v5401_v0 = vmov 0   ;;  %v9680_v35 = vmov 1   ;;  %v9676_v38 = vmov 2   ;;  %v9682_v43 = vmov 4   ;;  %v3302_v60 = vld [vmem:[%s9669_s1] sm:$0xff] }
  0x16   : > { %5204 = vset.pattern.permute.xlu1 %v5401_v0  ;;  %5203 = vset.pattern.permute.xlu0 %v5401_v0  ;;  %p220_p10 = scmp.lt.s32.totalorder %s4200_s30, 63  ;;  %v9674_v47 = vmov 3   ;;  %v9678_v50 = vmov 5   ;;  %v5407_v59 = vmov 0.0|0.0   ;;  %v3303_v61 = vld [vmem:[%s9669_s1 + $0x8] sm:$0xff]  ;;  %s216_s25 = sand.u32 1, %s5391_s19  }
  0x17   : > { %5042 = vmatprep.subr.bf16.mxu0 %v5407_v59  ;;  %v5043_v63 = vpack.c.bf16 %v3303_v61, %v3302_v60  ;;  %s4199_s26 = sshll.u32 %s216_s25, 8  ;;  %s4785_s8 = sshll.u32 %s5463_s22, 12 }
  0x18   : > { %s10031_s30 = smov (!%p220_p10, %s4200_s30), 63  ;;  %s9552_s7 = scalar_lea.vmem [#allocation2], %s4199_s26 }
  0x19   : > { %s4201_s6 = sshll.u32 %s10031_s30, 3  ;;  %5044 = vmatpush1.bf16.msra.mxu0 %v5043_v63  ;;  %s4133_s10 = sshll.u32 %s9552_s7, 4  ;;  %s9620_s10 = int_to_ptr.vmem [resolvable:$true] %s4133_s10 }
  0x1a   : > { %s5494_s9 = scalar_lea.vmem %s9668_s0, %s4201_s6  ;;  %5045 = vmatprep.subr.bf16.mxu0 %v5407_v59  ;;  %s9618_s13 = scalar_lea.hbm %s9673_s5, %s4785_s8 }
  0x1b   : > { %v5497_v1 = vld [vmem:[%s5494_s9 + $0x10] sm:$0xff]  ;;  %v5500_v2 = vld [vmem:[%s5494_s9] sm:$0xff]  ;;  %v5505_v3 = vld [vmem:[%s5494_s9 + $0x18] sm:$0xff]  ;;  %s9627_s22 = scalar_lea.sflag [#allocation3], %s216_s25  ;;  %s5337_s14 = scalar_lea.vmem %s9620_s10, 4096 }
  0x1c   : > { %269 = vperm.xlu1 %5204, %v5497_v1   ;;  %263 = vperm.xlu0 %5203, %v5500_v2   ;;  %v5508_v4 = vld [vmem:[%s5494_s9 + $0x8] sm:$0xff]  ;;  %v5516_v6 = vld [vmem:[%s5494_s9 + $0x20] sm:$0xff]  ;;  %v5521_v7 = vld [vmem:[%s5494_s9 + $0x38] sm:$0xff]  ;;  %v742_v34 = vadd.s32 50, %v5500_v2  ;;  %v744_v36 = vadd.s32 50, %v5497_v1  ;;  %v1254_v37 = vadd.s32 100, %v5500_v2  ;;  %p5338_p11 = scmp.ne.s32.totalorder %s9620_s10, %s5337_s14 }
  0x1d   : > { %v5513_v5 = vld [vmem:[%s5494_s9 + $0x28] sm:$0xff]  ;;  %v5524_v8 = vld [vmem:[%s5494_s9 + $0x30] sm:$0xff]  ;;  %v5532_v10 = vld [vmem:[%s5494_s9 + $0x40] sm:$0xff]  ;;  %v743_v33 = vadd.s32 50, %v5508_v4  ;;  %v1255_v40 = vadd.s32 100, %v5508_v4  ;;  %v1256_v41 = vadd.s32 100, %v5497_v1 }
  0x1e   : > { %v5529_v9 = vld [vmem:[%s5494_s9 + $0x48] sm:$0xff]  ;;  %v5537_v11 = vld [vmem:[%s5494_s9 + $0x58] sm:$0xff]  ;;  %v5540_v12 = vld [vmem:[%s5494_s9 + $0x50] sm:$0xff]  ;;  %v747_v39 = vadd.s32 50, %v5513_v5  ;;  %v2278_v42 = vadd.s32 200, %v5500_v2  ;;  %v1259_v44 = vadd.s32 100, %v5513_v5  ;;  %p5339_p12 = pnand %p5338_p11, %p5480_p5 }
  0x1f   : > { %v5545_v13 = vld [vmem:[%s5494_s9 + $0x68] sm:$0xff]  ;;  %v5548_v14 = vld [vmem:[%s5494_s9 + $0x60] sm:$0xff]  ;;  %v241_v15 = vld [vmem:[%s5494_s9 + $0x78] sm:$0xff]  ;;  %v1767_v45 = vadd.s32 150, %v5508_v4  ;;  %v1262_v46 = vadd.s32 100, %v5532_v10  ;;  %v2790_v48 = vadd.s32 250, %v5500_v2 }
  0x20   : > { %272 = vperm.xlu1 %5204, %v5505_v3   ;;  %266 = vperm.xlu0 %5203, %v5508_v4   ;;  %v5554_v16 = vld [vmem:[%s5494_s9 + $0x70] sm:$0xff]  ;;  %v5558_v17 = vld [vmem:[%s5494_s9 + $0x88] sm:$0xff]  ;;  %v242_v18 = vld [vmem:[%s5494_s9 + $0x80] sm:$0xff]  ;;  %v1265_v49 = vadd.s32 100, %v5537_v11  ;;  %v2279_v51 = vadd.s32 200, %v5508_v4  ;;  %v745_v53 = vadd.s32 50, %v5505_v3  ;;  %p5340_p13 = pneg %p5339_p12 }
  0x21   : > { %v245_v19 = vld [vmem:[%s5494_s9 + $0x98] sm:$0xff]  ;;  %v244_v20 = vld [vmem:[%s5494_s9 + $0x90] sm:$0xff]  ;;  %v247_v21 = vld [vmem:[%s5494_s9 + $0xa8] sm:$0xff]  ;;  %v1268_v52 = vadd.s32 100, %v5554_v16  ;;  %v2280_v54 = vadd.s32 200, %v5497_v1  ;;  %v2283_v55 = vadd.s32 200, %v5513_v5 }
  0x22   : > { %v5566_v22 = vld [vmem:[%s5494_s9 + $0xa0] sm:$0xff]  ;;  %v5570_v23 = vld [vmem:[%s5494_s9 + $0xb8] sm:$0xff]  ;;  %v248_v24 = vld [vmem:[%s5494_s9 + $0xb0] sm:$0xff]  ;;  %v2791_v56 = vadd.s32 250, %v5508_v4  ;;  %v2286_v57 = vadd.s32 200, %v5532_v10  ;;  %v1257_v58 = vadd.s32 100, %v5505_v3 }
  0x23   : > { %v251_v25 = vld [vmem:[%s5494_s9 + $0xc8] sm:$0xff]  ;;  %v250_v26 = vld [vmem:[%s5494_s9 + $0xc0] sm:$0xff]  ;;  %v253_v27 = vld [vmem:[%s5494_s9 + $0xd8] sm:$0xff]  ;;  %v2289_v62 = vadd.s32 200, %v5537_v11  ;;  %v746_v0 = vadd.s32 50, %v5516_v6  ;;  %s5409_s15 = smov [#allocation2]  }
  0x24   : > { %278 = vperm.xlu1 %5204, %v5513_v5   ;;  %275 = vperm.xlu0 %5203, %v5516_v6   ;;  %v5578_v28 = vld [vmem:[%s5494_s9 + $0xd0] sm:$0xff]  ;;  %v5582_v29 = vld [vmem:[%s5494_s9 + $0xe8] sm:$0xff]  ;;  %v254_v30 = vld [vmem:[%s5494_s9 + $0xe0] sm:$0xff]  ;;  %s5341_s16 = sshll.u32 %s5409_s15, 4  ;;  %s5342_s16 = int_to_ptr.vmem [resolvable:$false] %s5341_s16 }
  0x25   : > { %v257_v31 = vld [vmem:[%s5494_s9 + $0xf8] sm:$0xff]  ;;  %v256_v32 = vld [vmem:[%s5494_s9 + $0xf0] sm:$0xff]  ;;  %s5343_s17 = scalar_lea.vmem %s5342_s16, 8192  ;;  %p5344_p0 = scmp.lt.s32.totalorder %s9620_s10, %s5342_s16 }
  0x26   : > { %v3304_v4 = vld [vmem:[%s9669_s1 + $0x10] sm:$0xff]  ;;  %p5345_p1 = scmp.lt.s32.totalorder %s5343_s17, %s5337_s14 }
  0x28   : > { %284 = vperm.xlu1 %5204, %v5521_v7   ;;  %281 = vperm.xlu0 %5203, %v5524_v8   ;;  %p5346_p2 = por %p5345_p1, %p5344_p0 }
  0x2a   : > { %p5347_p3 = pnand %p5346_p2, %p5340_p13 }
  0x2c   : > { %290 = vperm.xlu1 %5204, %v5529_v9   ;;  %287 = vperm.xlu0 %5203, %v5532_v10  }
  0x30   : > { %296 = vperm.xlu1 %5204, %v5537_v11   ;;  %293 = vperm.xlu0 %5203, %v5540_v12  }
  0x34   : > { %302 = vperm.xlu1 %5204, %v5545_v13   ;;  %299 = vperm.xlu0 %5203, %v5548_v14  }
  0x38   : > { %308 = vperm.xlu1 %5204, %v241_v15   ;;  %305 = vperm.xlu0 %5203, %v5554_v16   ;;  %v3305_v15 = vld [vmem:[%s9669_s1 + $0x18] sm:$0xff] }
  0x3c   : > { %314 = vperm.xlu1 %5204, %v5558_v17   ;;  %311 = vperm.xlu0 %5203, %v242_v18   ;;  %v2292_v18 = vadd.s32 200, %v5554_v16 }
  0x40   : > { %320 = vperm.xlu1 %5204, %v245_v19   ;;  %317 = vperm.xlu0 %5203, %v244_v20   ;;  %v5046_v19 = vpack.c.bf16 %v3305_v15, %v3304_v4  ;;  %v3306_v20 = vld [vmem:[%s9669_s1 + $0x20] sm:$0xff]  ;;  %v3335_v15 = vld [vmem:[%s9669_s1 + $0x108] sm:$0xff] }
  0x41   : > { %v3334_v4 = vld [vmem:[%s9669_s1 + $0x100] sm:$0xff] }
  0x42   : > { %5047 = vmatpush1.bf16.msra.mxu0 %v5046_v19 }
  0x43   : > { %5048 = vmatprep.subr.bf16.mxu0 %v5407_v59 }
  0x44   : > { %326 = vperm.xlu1 %5204, %v247_v21   ;;  %323 = vperm.xlu0 %5203, %v5566_v22   ;;  %v3307_v21 = vld [vmem:[%s9669_s1 + $0x28] sm:$0xff] }
  0x48   : > { %332 = vperm.xlu1 %5204, %v5570_v23   ;;  %329 = vperm.xlu0 %5203, %v248_v24   ;;  %v1769_v24 = vadd.s32 150, %v5505_v3 }
  0x4c   : > { %338 = vperm.xlu1 %5204, %v251_v25   ;;  %335 = vperm.xlu0 %5203, %v250_v26   ;;  %v2295_v25 = vadd.s32 200, %v5558_v17  ;;  %v5049_v26 = vpack.c.bf16 %v3307_v21, %v3306_v20  ;;  %v5090_v21 = vpack.c.bf16 %v3335_v15, %v3334_v4  ;;  %v3325_v4 = vld [vmem:[%s9669_s1 + $0xb8] sm:$0xff] }
  0x4e   : > { %5050 = vmatpush1.bf16.msra.mxu0 %v5049_v26  ;;  %v2804_v26 = vadd.s32 250, %v5554_v16  ;;  %5091 = vmatprep.subr.bf16.mxu1 %v5090_v21 }
  0x4f   : > { %5051 = vmatprep.subr.bf16.mxu0 %v5407_v59  ;;  %5093 = vmatpush3.bf16.msra.mxu1 %v5090_v21  ;;  %v3342_v21 = vld [vmem:[%s9669_s1 + $0x140] sm:$0xff] }
  0x50   : > { %344 = vperm.xlu1 %5204, %v253_v27   ;;  %341 = vperm.xlu0 %5203, %v5578_v28   ;;  %v3308_v27 = vld [vmem:[%s9669_s1 + $0x30] sm:$0xff] }
  0x54   : > { %350 = vperm.xlu1 %5204, %v5582_v29   ;;  %347 = vperm.xlu0 %5203, %v254_v30   ;;  %v3309_v30 = vld [vmem:[%s9669_s1 + $0x38] sm:$0xff] }
  0x58   : > { %356 = vperm.xlu1 %5204, %v257_v31   ;;  %353 = vperm.xlu0 %5203, %v256_v32   ;;  %v2298_v31 = vadd.s32 200, %v5566_v22  ;;  %v5052_v32 = vpack.c.bf16 %v3309_v30, %v3308_v27  ;;  %v3336_v27 = vld [vmem:[%s9669_s1 + $0x110] sm:$0xff]  ;;  %v3337_v30 = vld [vmem:[%s9669_s1 + $0x118] sm:$0xff] }
  0x5a   : > { %5053 = vmatpush1.bf16.msra.mxu0 %v5052_v32  ;;  %v3321_v32 = vld [vmem:[%s9669_s1 + $0x98] sm:$0xff] }
  0x5b   : > { %5054 = vmatprep.subr.bf16.mxu0 %v5407_v59 }
  0x5c   : > { %5206 = vset.pattern.permute.xlu1 %v9680_v35  ;;  %5205 = vset.pattern.permute.xlu0 %v9680_v35 }
  0x5d   : > { %778 = vperm.xlu1 %5206, %v743_v33   ;;  %775 = vperm.xlu0 %5205, %v742_v34   ;;  %v1258_v33 = vadd.s32 100, %v5516_v6  ;;  %v3310_v34 = vld [vmem:[%s9669_s1 + $0x40] sm:$0xff] }
  0x61   : > { %5207 = vset.pattern.permute.xlu1 %v9676_v38  ;;  %781 = vperm.xlu0 %5205, %v744_v36   ;;  %v3311_v36 = vld [vmem:[%s9669_s1 + $0x48] sm:$0xff] }
  0x62   : > { %1287 = vperm.xlu1 %5207, %v1254_v37   ;;  %v5055_v37 = vpack.c.bf16 %v3311_v36, %v3310_v34  ;;  %v5094_v36 = vpack.c.bf16 %v3337_v30, %v3336_v27  ;;  %v3327_v27 = vld [vmem:[%s9669_s1 + $0xc8] sm:$0xff] }
  0x64   : > { %5056 = vmatpush1.bf16.msra.mxu0 %v5055_v37  ;;  %5095 = vmatprep.subr.bf16.mxu1 %v5094_v36 }
  0x65   : > { %790 = vperm.xlu0 %5205, %v747_v39   ;;  %v2792_v39 = vadd.s32 250, %v5497_v1  ;;  %5057 = vmatprep.subr.bf16.mxu0 %v5407_v59 }
  0x66   : > { %1290 = vperm.xlu1 %5207, %v1255_v40   ;;  %v2281_v40 = vadd.s32 200, %v5505_v3  ;;  %5097 = vmatpush3.bf16.msra.mxu1 %v5094_v36 }
  0x69   : > { %5219 = vset.pattern.permute.xlu0 %v9676_v38 }
  0x6a   : > { %5208 = vset.pattern.permute.xlu1 %v9682_v43  ;;  %1293 = vperm.xlu0 %5219, %v1256_v41   ;;  %v3312_v41 = vld [vmem:[%s9669_s1 + $0x50] sm:$0xff] }
  0x6b   : > { %2311 = vperm.xlu1 %5208, %v2278_v42   ;;  %v3313_v42 = vld [vmem:[%s9669_s1 + $0x58] sm:$0xff] }
  0x6e   : > { %1302 = vperm.xlu0 %5219, %v1259_v44  }
  0x6f   : > { %5209 = vset.pattern.permute.xlu1 %v9674_v47 }
  0x70   : > { %1802 = vperm.xlu1 %5209, %v1767_v45  }
  0x72   : > { %1311 = vperm.xlu0 %5219, %v1262_v46   ;;  %v5058_v46 = vpack.c.bf16 %v3313_v42, %v3312_v41  ;;  %v3338_v41 = vld [vmem:[%s9669_s1 + $0x120] sm:$0xff]  ;;  %v3339_v42 = vld [vmem:[%s9669_s1 + $0x128] sm:$0xff] }
  0x74   : > { %5210 = vset.pattern.permute.xlu1 %v9678_v50  ;;  %5059 = vmatpush1.bf16.msra.mxu0 %v5058_v46  ;;  %v5098_v46 = vpack.c.bf16 %v3339_v42, %v3338_v41  ;;  %v3328_v42 = vld [vmem:[%s9669_s1 + $0xd0] sm:$0xff] }
  0x75   : > { %2823 = vperm.xlu1 %5210, %v2790_v48   ;;  %v2795_v48 = vadd.s32 250, %v5513_v5  ;;  %5060 = vmatprep.subr.bf16.mxu0 %v5407_v59 }
  0x76   : > { %1320 = vperm.xlu0 %5219, %v1265_v49   ;;  %v1770_v49 = vadd.s32 150, %v5516_v6  ;;  %5099 = vmatprep.subr.bf16.mxu1 %v5098_v46 }
  0x77   : > { %5101 = vmatpush3.bf16.msra.mxu1 %v5098_v46  ;;  %v3329_v46 = vld [vmem:[%s9669_s1 + $0xd8] sm:$0xff] }
  0x79   : > { %5211 = vset.pattern.permute.xlu1 %v9682_v43 }
  0x7a   : > { %2314 = vperm.xlu1 %5211, %v2279_v51   ;;  %1329 = vperm.xlu0 %5219, %v1268_v52   ;;  %v3314_v51 = vld [vmem:[%s9669_s1 + $0x60] sm:$0xff]  ;;  %v3315_v52 = vld [vmem:[%s9669_s1 + $0x68] sm:$0xff] }
  0x7e   : > { %5212 = vset.pattern.permute.xlu1 %v9680_v35  ;;  %5252 = vset.pattern.permute.xlu0 %v9682_v43 }
  0x7f   : > { %784 = vperm.xlu1 %5212, %v745_v53   ;;  %2317 = vperm.xlu0 %5252, %v2280_v54  }
  0x83   : > { %5213 = vset.pattern.permute.xlu1 %v9678_v50  ;;  %2326 = vperm.xlu0 %5252, %v2283_v55   ;;  %v5061_v55 = vpack.c.bf16 %v3315_v52, %v3314_v51 }
  0x84   : > { %2826 = vperm.xlu1 %5213, %v2791_v56   ;;  %v2798_v56 = vadd.s32 250, %v5532_v10 }
  0x85   : > { %5062 = vmatpush1.bf16.msra.mxu0 %v5061_v55 }
  0x86   : > { %5063 = vmatprep.subr.bf16.mxu0 %v5407_v59 }
  0x87   : > { %2335 = vperm.xlu0 %5252, %v2286_v57   ;;  %v3316_v57 = vld [vmem:[%s9669_s1 + $0x70] sm:$0xff] }
  0x88   : > { %5214 = vset.pattern.permute.xlu1 %v9676_v38 }
  0x89   : > { %1296 = vperm.xlu1 %5214, %v1257_v58   ;;  %v3317_v58 = vld [vmem:[%s9669_s1 + $0x78] sm:$0xff] }
  0x8a   : > { %v5064_v63 = vpack.c.bf16 %v3317_v58, %v3316_v57  ;;  %v3340_v57 = vld [vmem:[%s9669_s1 + $0x130] sm:$0xff]  ;;  %v3341_v58 = vld [vmem:[%s9669_s1 + $0x138] sm:$0xff] }
  0x8b   : > { %2344 = vperm.xlu0 %5252, %v2289_v62   ;;  %v2793_v62 = vadd.s32 250, %v5505_v3  ;;  %v3318_v3 = vld [vmem:[%s9669_s1 + $0x80] sm:$0xff] }
  0x8c   : > { %5065 = vmatpush1.bf16.msra.mxu0 %v5064_v63  ;;  %v5102_v63 = vpack.c.bf16 %v3341_v58, %v3340_v57 }
  0x8d   : > { %5215 = vset.pattern.permute.xlu1 %v9680_v35  ;;  %5066 = vmatprep.subr.bf16.mxu0 %v5407_v59 }
  0x8e   : > { %787 = vperm.xlu1 %5215, %v746_v0   ;;  %v2801_v0 = vadd.s32 250, %v5537_v11  ;;  %5103 = vmatprep.subr.bf16.mxu1 %v5102_v63 }
  0x8f   : > { %2353 = vperm.xlu0 %5252, %v2292_v18   ;;  %v3319_v18 = vld [vmem:[%s9669_s1 + $0x88] sm:$0xff]  ;;  %5105 = vmatpush3.bf16.msra.mxu1 %v5102_v63 }
  0x90   : > { %v3347_v63 = vld [vmem:[%s9669_s1 + $0x168] sm:$0xff] }
  0x92   : > { %5216 = vset.pattern.permute.xlu1 %v9674_v47 }
  0x93   : > { %1808 = vperm.xlu1 %5216, %v1769_v24   ;;  %2362 = vperm.xlu0 %5252, %v2295_v25   ;;  %v5067_v24 = vpack.c.bf16 %v3319_v18, %v3318_v3  ;;  %v2282_v25 = vadd.s32 200, %v5516_v6 }
  0x95   : > { %5068 = vmatpush1.bf16.msra.mxu0 %v5067_v24  ;;  %v3343_v24 = vld [vmem:[%s9669_s1 + $0x148] sm:$0xff] }
  0x96   : > { %5069 = vmatprep.subr.bf16.mxu0 %v5407_v59 }
  0x97   : > { %5217 = vset.pattern.permute.xlu1 %v9676_v38  ;;  %2371 = vperm.xlu0 %5252, %v2298_v31   ;;  %v3320_v31 = vld [vmem:[%s9669_s1 + $0x90] sm:$0xff] }
  0x98   : > { %1299 = vperm.xlu1 %5217, %v1258_v33   ;;  %v5070_v37 = vpack.c.bf16 %v3321_v32, %v3320_v31  ;;  %v1260_v32 = vadd.s32 100, %v5524_v8 }
  0x9a   : > { %5071 = vmatpush1.bf16.msra.mxu0 %v5070_v37  ;;  %v3344_v37 = vld [vmem:[%s9669_s1 + $0x150] sm:$0xff] }
  0x9b   : > { %v5675_v44 = vpop.permute.xlu1 %269  ;;  %5277 = vset.pattern.permute.xlu0 %v9678_v50  ;;  %v5678_v45 = vpop.permute.xlu0 %263  ;;  %5072 = vmatprep.subr.bf16.mxu0 %v5407_v59 }
  0x9c   : > { %5218 = vset.pattern.permute.xlu1 %v9682_v43  ;;  %2829 = vperm.xlu0 %5277, %v2792_v39   ;;  %v2807_v39 = vadd.s32 250, %v5558_v17 }
  0x9d   : > { %2320 = vperm.xlu1 %5218, %v2281_v40   ;;  %v748_v40 = vadd.s32 50, %v5524_v8 }
  0x9f   : > { %v5689_v53 = vpop.permute.xlu1 %272  ;;  %v5691_v54 = vpop.permute.xlu0 %266 }
  0xa0   : > { %2838 = vperm.xlu0 %5277, %v2795_v48   ;;  %v3322_v48 = vld [vmem:[%s9669_s1 + $0xa0] sm:$0xff] }
  0xa1   : > { %5220 = vset.pattern.permute.xlu1 %v9674_v47 }
  0xa2   : > { %1811 = vperm.xlu1 %5220, %v1770_v49   ;;  %v3323_v49 = vld [vmem:[%s9669_s1 + $0xa8] sm:$0xff] }
  0xa3   : > { %v5702_v60 = vpop.permute.xlu1 %278  ;;  %v5704_v61 = vpop.permute.xlu0 %275  ;;  %v5073_v55 = vpack.c.bf16 %v3323_v49, %v3322_v48 }
  0xa4   : > { %2847 = vperm.xlu0 %5277, %v2798_v56   ;;  %v2810_v56 = vadd.s32 250, %v5566_v22 }
  0xa5   : > { %5074 = vmatpush1.bf16.msra.mxu0 %v5073_v55  ;;  %v5082_v55 = vpack.c.bf16 %v3329_v46, %v3328_v42  ;;  %v1777_v46 = vadd.s32 150, %v5537_v11 }
  0xa6   : > { %5221 = vset.pattern.permute.xlu1 %v9678_v50  ;;  %5075 = vmatprep.subr.bf16.mxu0 %v5407_v59 }
  0xa7   : > { %v5722_v19 = vpop.permute.xlu1 %284  ;;  %2832 = vperm.xlu1 %5221, %v2793_v62   ;;  %v5724_v20 = vpop.permute.xlu0 %281  ;;  %v2794_v62 = vadd.s32 250, %v5516_v6  ;;  %v2813_v6 = vadd.s32 250, %v5570_v23 }
  0xa8   : > { %2856 = vperm.xlu0 %5277, %v2801_v0   ;;  %v3324_v0 = vld [vmem:[%s9669_s1 + $0xb0] sm:$0xff] }
  0xa9   : > { %v5076_v18 = vpack.c.bf16 %v3325_v4, %v3324_v0  ;;  %v1772_v0 = vadd.s32 150, %v5524_v8 }
  0xab   : > { %v5741_v33 = vpop.permute.xlu1 %290  ;;  %5222 = vset.pattern.permute.xlu1 %v9682_v43  ;;  %v5744_v34 = vpop.permute.xlu0 %287  ;;  %5077 = vmatpush1.bf16.msra.mxu0 %v5076_v18  ;;  %v3331_v18 = vld [vmem:[%s9669_s1 + $0xe8] sm:$0xff] }
  0xac   : > { %2323 = vperm.xlu1 %5222, %v2282_v25   ;;  %2865 = vperm.xlu0 %5277, %v2804_v26   ;;  %v5106_v25 = vpack.c.bf16 %v3343_v24, %v3342_v21  ;;  %v3326_v26 = vld [vmem:[%s9669_s1 + $0xc0] sm:$0xff] }
  0xad   : > { %5078 = vmatprep.subr.bf16.mxu0 %v5407_v59  ;;  %v5079_v36 = vpack.c.bf16 %v3327_v27, %v3326_v26  ;;  %v3348_v26 = vld [vmem:[%s9669_s1 + $0x170] sm:$0xff]  ;;  %v3349_v27 = vld [vmem:[%s9669_s1 + $0x178] sm:$0xff] }
  0xae   : > { %5107 = vmatprep.subr.bf16.mxu1 %v5106_v25 }
  0xaf   : > { %v5761_v51 = vpop.permute.xlu1 %296  ;;  %v5763_v52 = vpop.permute.xlu0 %293  ;;  %5080 = vmatpush1.bf16.msra.mxu0 %v5079_v36  ;;  %5109 = vmatpush3.bf16.msra.mxu1 %v5106_v25  ;;  %v3333_v36 = vld [vmem:[%s9669_s1 + $0xf8] sm:$0xff] }
  0xb0   : > { %5223 = vset.pattern.permute.xlu1 %v9680_v35  ;;  %2874 = vperm.xlu0 %5277, %v2807_v39   ;;  %v3345_v39 = vld [vmem:[%s9669_s1 + $0x158] sm:$0xff] }
  0xb1   : > { %793 = vperm.xlu1 %5223, %v748_v40   ;;  %v1766_v40 = vadd.s32 150, %v5500_v2  ;;  %v5110_v41 = vpack.c.bf16 %v3345_v39, %v3344_v37  ;;  %5081 = vmatprep.subr.bf16.mxu0 %v5407_v59  ;;  %v1768_v2 = vadd.s32 150, %v5497_v1  ;;  %v3330_v1 = vld [vmem:[%s9669_s1 + $0xe0] sm:$0xff]  ;;  %v1774_v37 = vadd.s32 150, %v5532_v10 }
  0xb2   : > { %v5085_v21 = vpack.c.bf16 %v3331_v18, %v3330_v1  ;;  %v1261_v39 = vadd.s32 100, %v5521_v7 }
  0xb3   : > { %v5781_v15 = vpop.permute.xlu1 %302  ;;  %v5783_v3 = vpop.permute.xlu0 %299  ;;  %5111 = vmatprep.subr.bf16.mxu1 %v5110_v41  ;;  %5083 = vmatpush1.bf16.msra.mxu0 %v5082_v55 }
  0xb4   : > { %2883 = vperm.xlu0 %5277, %v2810_v56   ;;  %v749_v56 = vadd.s32 50, %v5521_v7  ;;  %5113 = vmatpush3.bf16.msra.mxu1 %v5110_v41 }
  0xb5   : > { %5224 = vset.pattern.permute.xlu1 %v9678_v50  ;;  %5084 = vmatprep.subr.bf16.mxu0 %v5407_v59 }
  0xb6   : > { %2835 = vperm.xlu1 %5224, %v2794_v62   ;;  %v3346_v62 = vld [vmem:[%s9669_s1 + $0x160] sm:$0xff] }
  0xb7   : > { %v5800_v30 = vpop.permute.xlu1 %308  ;;  %v5802_v31 = vpop.permute.xlu0 %305  ;;  %v5114_v4 = vpack.c.bf16 %v3347_v63, %v3346_v62  ;;  %5086 = vmatpush1.bf16.msra.mxu0 %v5085_v21  ;;  %v258_v62 = vlaneseq }
  0xb8   : > { %9716 = vst [vmem:[#allocation5_spill] sm:$0xff] %v5800_v30  ;;  %2892 = vperm.xlu0 %5277, %v2813_v6   ;;  %v1771_v6 = vadd.s32 150, %v5513_v5  ;;  %v3332_v5 = vld [vmem:[%s9669_s1 + $0xf0] sm:$0xff]  ;;  %5087 = vmatprep.subr.bf16.mxu0 %v5407_v59  ;;  %v1780_v59 = vadd.s32 150, %v5554_v16 }
  0xb9   : > { %5115 = vmatprep.subr.bf16.mxu1 %v5114_v4  ;;  %v5887_v18 = vand.u32 127, %v258_v62  ;;  %v5918_v62 = vadd.s32 50, %v5537_v11  ;;  %v5939_v11 = vadd.s32 50, %v5570_v23 }
  0xba   : > { %5225 = vset.pattern.permute.xlu1 %v9676_v38  ;;  %5117 = vmatpush3.bf16.msra.mxu1 %v5114_v4  ;;  %v1783_v4 = vadd.s32 150, %v5558_v17 }
  0xbb   : > { %v5820_v48 = vpop.permute.xlu1 %314  ;;  %1305 = vperm.xlu1 %5225, %v1260_v32   ;;  %v5822_v49 = vpop.permute.xlu0 %311  ;;  %v5118_v32 = vpack.c.bf16 %v3349_v27, %v3348_v26  ;;  %v2796_v26 = vadd.s32 250, %v5524_v8  ;;  %v1786_v27 = vadd.s32 150, %v5566_v22  ;;  %vm364_vm0 = vcmp.eq.s32.totalorder %v5887_v18, %v5675_v44 }
  0xbc   : > { %9717 = vst [vmem:[#allocation6_spill] sm:$0xff] %v5822_v49  ;;  %5290 = vset.pattern.permute.xlu0 %v9674_v47  ;;  %vm358_vm3 = vcmp.eq.s32.totalorder %v5887_v18, %v5678_v45  ;;  %v6018_v49 = vadd.s32 250, %v5540_v12  ;;  %vm367_vm6 = vcmp.eq.s32.totalorder %v5887_v18, %v5689_v53  ;;  %vm361_vm9 = vcmp.eq.s32.totalorder %v5887_v18, %v5691_v54 }
  0xbd   : > { %1799 = vperm.xlu0 %5290, %v1766_v40   ;;  %v5088_v40 = vpack.c.bf16 %v3333_v36, %v3332_v5  ;;  %5119 = vmatprep.subr.bf16.mxu1 %v5118_v32  ;;  %v5900_v5 = vadd.s32 256, %v5887_v18  ;;  %vm373_vm12 = vcmp.eq.s32.totalorder %v5887_v18, %v5702_v60  ;;  %vm370_vm15 = vcmp.eq.s32.totalorder %v5887_v18, %v5704_v61 }
  0xbe   : > { %5121 = vmatpush3.bf16.msra.mxu1 %v5118_v32  ;;  %v5897_v32 = vadd.s32 128, %v5887_v18  ;;  %9735 = vst [vmem:[#allocation23_spill] sm:$0xff] %v6018_v49 }
  0xbf   : > { %v5828_v57 = vpop.permute.xlu1 %320  ;;  %5226 = vset.pattern.permute.xlu1 %v9680_v35  ;;  %v5831_v58 = vpop.permute.xlu0 %317  ;;  %5089 = vmatpush1.bf16.msra.mxu0 %v5088_v40  ;;  %v2285_v40 = vadd.s32 200, %v5521_v7  ;;  %vm366_vm2 = vcmp.eq.s32.totalorder %v5900_v5, %v5675_v44  ;;  %vm360_vm5 = vcmp.eq.s32.totalorder %v5900_v5, %v5678_v45  ;;  %vm369_vm8 = vcmp.eq.s32.totalorder %v5900_v5, %v5689_v53 }
  0xc0   : > { %9718 = vst [vmem:[#allocation7_spill] sm:$0xff] %v5828_v57  ;;  %9719 = vst [vmem:[#allocation8_spill] sm:$0xff] %v5831_v58  ;;  %796 = vperm.xlu1 %5226, %v749_v56   ;;  %vm365_vm1 = vcmp.eq.s32.totalorder %v5897_v32, %v5675_v44  ;;  %vm359_vm4 = vcmp.eq.s32.totalorder %v5897_v32, %v5678_v45  ;;  %vm368_vm7 = vcmp.eq.s32.totalorder %v5897_v32, %v5689_v53  ;;  %v9736_v45 = vmov 1  }
  0xc1   : > { %1805 = vperm.xlu0 %5290, %v1768_v2   ;;  %v2284_v2 = vadd.s32 200, %v5524_v8  ;;  %v1792_v8 = vadd.s32 150, %v5578_v28  ;;  %vm362_vm10 = vcmp.eq.s32.totalorder %v5897_v32, %v5691_v54  ;;  %vm363_vm11 = vcmp.eq.s32.totalorder %v5900_v5, %v5691_v54 }
  0xc2   : > { %v6053_v53 = vadd.s32 100, %v5548_v14  ;;  %vm374_vm13 = vcmp.eq.s32.totalorder %v5897_v32, %v5702_v60  ;;  %vm375_vm14 = vcmp.eq.s32.totalorder %v5900_v5, %v5702_v60  ;;  %v6090_v60 = vadd.s32 200, %v5578_v28 }
  0xc3   : > { %v5848_v24 = vpop.permute.xlu1 %326  ;;  %v5850_v25 = vpop.permute.xlu0 %323 }
  0xc4   : > { %9720 = vst [vmem:[#allocation9_spill] sm:$0xff] %v5848_v24  ;;  %9721 = vst [vmem:[#allocation10_spill] sm:$0xff] %v5850_v25  ;;  %5227 = vset.pattern.permute.xlu1 %v9674_v47 }
  0xc5   : > { %1817 = vperm.xlu1 %5227, %v1772_v0   ;;  %1814 = vperm.xlu0 %5290, %v1771_v6   ;;  %v1773_v0 = vadd.s32 150, %v5521_v7  ;;  %9738 = vst [vmem:[#allocation25_spill] sm:$0xff] %v6053_v53  ;;  %9742 = vst [vmem:[#allocation29_spill] sm:$0xff] %v6090_v60 }
  0xc7   : > { %v5867_v41 = vpop.permute.xlu1 %332  ;;  %v5869_v42 = vpop.permute.xlu0 %329 }
  0xc8   : > { %9722 = vst [vmem:[#allocation11_spill] sm:$0xff] %v5869_v42 }
  0xc9   : > { %5228 = vset.pattern.permute.xlu1 %v9676_v38  ;;  %1823 = vperm.xlu0 %5290, %v1774_v37   ;;  %v5942_v38 = vadd.s32 100, %v5540_v12 }
  0xca   : > { %1308 = vperm.xlu1 %5228, %v1261_v39   ;;  %v1789_v39 = vadd.s32 150, %v5570_v23 }
  0xcb   : > { %v5874_v55 = vpop.permute.xlu1 %338  ;;  %v5876_v56 = vpop.permute.xlu0 %335 }
  0xcc   : > { %9723 = vst [vmem:[#allocation12_spill] sm:$0xff] %v5874_v55  ;;  %9724 = vst [vmem:[#allocation13_spill] sm:$0xff] %v5876_v56  ;;  %v5974_v55 = vadd.s32 100, %v5566_v22  ;;  %v5985_v56 = vadd.s32 100, %v5578_v28 }
  0xcd   : > { %1832 = vperm.xlu0 %5290, %v1777_v46   ;;  %v751_v46 = vadd.s32 50, %v5529_v9 }
  0xce   : > { %5229 = vset.pattern.permute.xlu1 %v9682_v43  ;;  %v5955_v43 = vadd.s32 50, %v5582_v29  ;;  %9732 = vst [vmem:[#allocation20_spill] sm:$0xff] %v5985_v56 }
  0xcf   : > { %v5881_v63 = vpop.permute.xlu1 %344  ;;  %2329 = vperm.xlu1 %5229, %v2284_v2   ;;  %v5883_v1 = vpop.permute.xlu0 %341  ;;  %v5912_v2 = vadd.s32 50, %v5532_v10  ;;  %v5930_v10 = vadd.s32 50, %v5558_v17 }
  0xd0   : > { %9725 = vst [vmem:[#allocation14_spill] sm:$0xff] %v5881_v63  ;;  %9726 = vst [vmem:[#allocation15_spill] sm:$0xff] %v5883_v1  ;;  %v9730_v63 = vmov 4  }
  0xd1   : > { %1841 = vperm.xlu0 %5290, %v1780_v59   ;;  %v5915_v59 = vadd.s32 250, %v5521_v7  ;;  %v5936_v7 = vadd.s32 150, %v5529_v9 }
  0xd3   : > { %v5889_v6 = vpop.permute.xlu1 %350  ;;  %5230 = vset.pattern.permute.xlu1 %v9674_v47  ;;  %v5892_v21 = vpop.permute.xlu0 %347  ;;  %v5927_v47 = vadd.s32 50, %v5540_v12 }
  0xd4   : > { %9727 = vst [vmem:[#allocation16_spill] sm:$0xff] %v5892_v21  ;;  %1820 = vperm.xlu1 %5230, %v1773_v0   ;;  %v5921_v0 = vadd.s32 100, %v5529_v9  ;;  %v5964_v21 = vadd.s32 250, %v5529_v9 }
  0xd5   : > { %1850 = vperm.xlu0 %5290, %v1783_v4   ;;  %v5924_v4 = vadd.s32 50, %v5554_v16  ;;  %v5945_v16 = vadd.s32 50, %v5578_v28 }
  0xd7   : > { %v5902_v36 = vpop.permute.xlu1 %356  ;;  %v5904_v37 = vpop.permute.xlu0 %353 }
  0xd8   : > { %9728 = vst [vmem:[#allocation17_spill] sm:$0xff] %v5902_v36  ;;  %9729 = vst [vmem:[#allocation18_spill] sm:$0xff] %v5904_v37  ;;  %5231 = vset.pattern.permute.xlu1 %v9678_v50  ;;  %v5958_v37 = vadd.s32 150, %v5540_v12  ;;  %v5961_v36 = vadd.s32 100, %v5558_v17  ;;  %v5982_v17 = vadd.s32 200, %v5540_v12 }
  0xd9   : > { %2841 = vperm.xlu1 %5231, %v2796_v26   ;;  %1859 = vperm.xlu0 %5290, %v1786_v27   ;;  %v5933_v26 = vadd.s32 50, %v5566_v22  ;;  %v5948_v27 = vadd.s32 200, %v5529_v9  ;;  %v5979_v9 = vadd.s32 100, %v5570_v23  ;;  %v5992_v22 = vadd.s32 50, %v5548_v14 }
  0xda   : > { %9731 = vst [vmem:[#allocation19_spill] sm:$0xff] %v5982_v17  ;;  %v6138_v17 = vadd.s32 200, %v5582_v29 }
  0xdb   : > { %9733 = vst [vmem:[#allocation21_spill] sm:$0xff] %v5992_v22  ;;  %v9743_v22 = vmov 5  }
  0xdc   : > { %v5950_v50 = vpop.permute.xlu1 %778  ;;  %v5952_v35 = vpop.permute.xlu0 %775  ;;  %9749 = vst [vmem:[#allocation35_spill] sm:$0xff] %v6138_v17  ;;  %v6161_v17 = vadd.s32 150, %v5548_v14 }
  0xdd   : > { %5232 = vset.pattern.permute.xlu1 %v9730_v63  ;;  %1868 = vperm.xlu0 %5290, %v1789_v39   ;;  %v5995_v39 = vadd.s32 100, %v5582_v29 }
  0xde   : > { %2332 = vperm.xlu1 %5232, %v2285_v40   ;;  %v9698_v40 = vmov 0.0  }
  0xdf   : > { %9734 = vst [vmem:[#allocation22_spill] sm:$0xff] %v5995_v39  ;;  %v6001_v42 = vsel %vm364_vm0, 1.0, %v9698_v40  ;;  %v6007_v24 = vsel %vm365_vm1, 1.0, %v9698_v40  ;;  %v6013_v57 = vsel %vm366_vm2, 1.0, %v9698_v40  ;;  %v6024_v30 = vsel %vm358_vm3, 1.0, %v9698_v40 }
  0xe0   : > { %v6015_v58 = vpop.permute.xlu0 %781  ;;  %v6035_v12 = vsel %vm359_vm4, 1.0, %v9698_v40  ;;  %v6038_v49 = vsel %vm360_vm5, 1.0, %v9698_v40  ;;  %v6044_v39 = vadd.s32 200, %v5570_v23  ;;  %v6059_v1 = vsel %vm368_vm7, 1.0, %v9698_v40 }
  0xe1   : > { %v6032_v44 = vpop.permute.xlu1 %1287  ;;  %1877 = vperm.xlu0 %5290, %v1792_v8   ;;  %v6056_v8 = vsel %vm367_vm6, 1.0, %v9698_v40  ;;  %9740 = vst [vmem:[#allocation27_spill] sm:$0xff] %v6059_v1  ;;  %v6062_v23 = vsel %vm369_vm8, 1.0, %v9698_v40  ;;  %vm371_vm0 = vcmp.eq.s32.totalorder %v5897_v32, %v5704_v61  ;;  %v6083_v1 = vsel %vm363_vm11, 1.0, %v9698_v40 }
  0xe2   : > { %5233 = vset.pattern.permute.xlu1 %v9736_v45  ;;  %9737 = vst [vmem:[#allocation24_spill] sm:$0xff] %v6044_v39  ;;  %9739 = vst [vmem:[#allocation26_spill] sm:$0xff] %v6056_v8  ;;  %v6069_v39 = vsel %vm361_vm9, 1.0, %v9698_v40  ;;  %v6086_v53 = vsel %vm373_vm12, 1.0, %v9698_v40  ;;  %v6093_v8 = vsel %vm374_vm13, 1.0, %v9698_v40  ;;  %vm372_vm1 = vcmp.eq.s32.totalorder %v5900_v5, %v5704_v61 }
  0xe3   : > { %802 = vperm.xlu1 %5233, %v751_v46   ;;  %9741 = vst [vmem:[#allocation28_spill] sm:$0xff] %v6062_v23  ;;  %v6080_v23 = vsel %vm362_vm10, 1.0, %v9698_v40  ;;  %vm379_vm2 = vcmp.eq.s32.totalorder %v5887_v18, %v5722_v19  ;;  %vm380_vm3 = vcmp.eq.s32.totalorder %v5897_v32, %v5722_v19  ;;  %v6104_v56 = vsel %vm375_vm14, 1.0, %v9698_v40 }
  0xe4   : > { %v6066_v54 = vpop.permute.xlu0 %790  ;;  %v6107_v60 = vsel %vm370_vm15, 1.0, %v9698_v40  ;;  %v6110_v25 = vsel %vm371_vm0, 1.0, %v9698_v40  ;;  %vm381_vm4 = vcmp.eq.s32.totalorder %v5900_v5, %v5722_v19  ;;  %vm376_vm5 = vcmp.eq.s32.totalorder %v5887_v18, %v5724_v20 }
  0xe5   : > { %v6077_v46 = vpop.permute.xlu1 %1290  ;;  %5297 = vset.pattern.permute.xlu0 %v9736_v45  ;;  %9744 = vst [vmem:[#allocation30_spill] sm:$0xff] %v6107_v60  ;;  %9745 = vst [vmem:[#allocation31_spill] sm:$0xff] %v6110_v25  ;;  %vm377_vm6 = vcmp.eq.s32.totalorder %v5897_v32, %v5724_v20  ;;  %vm378_vm7 = vcmp.eq.s32.totalorder %v5900_v5, %v5724_v20  ;;  %v6127_v25 = vsel %vm372_vm1, 1.0, %v9698_v40  ;;  %v6130_v19 = vsel %vm379_vm2, 1.0, %v9698_v40 }
  0xe6   : > { %799 = vperm.xlu0 %5297, %v5912_v2   ;;  %v6124_v2 = vadd.s32 50, %v5545_v13  ;;  %9746 = vst [vmem:[#allocation32_spill] sm:$0xff] %v6127_v25  ;;  %9747 = vst [vmem:[#allocation33_spill] sm:$0xff] %v6130_v19  ;;  %v6141_v20 = vsel %vm381_vm4, 1.0, %v9698_v40  ;;  %vm385_vm8 = vcmp.eq.s32.totalorder %v5887_v18, %v5741_v33  ;;  %vm386_vm9 = vcmp.eq.s32.totalorder %v5897_v32, %v5741_v33 }
  0xe7   : > { %5234 = vset.pattern.permute.xlu1 %v9743_v22  ;;  %9750 = vst [vmem:[#allocation36_spill] sm:$0xff] %v6141_v20  ;;  %vm387_vm10 = vcmp.eq.s32.totalorder %v5900_v5, %v5741_v33  ;;  %v6154_v19 = vsel %vm377_vm6, 1.0, %v9698_v40  ;;  %v6157_v25 = vsel %vm378_vm7, 1.0, %v9698_v40  ;;  %v9754_v20 = vmov 2  }
  0xe8   : > { %2844 = vperm.xlu1 %5234, %v5915_v59   ;;  %v6133_v59 = vsel %vm380_vm3, 1.0, %v9698_v40  ;;  %9752 = vst [vmem:[#allocation38_spill] sm:$0xff] %v6154_v19  ;;  %9753 = vst [vmem:[#allocation39_spill] sm:$0xff] %v6157_v25  ;;  %vm391_vm11 = vcmp.eq.s32.totalorder %v5887_v18, %v5761_v51  ;;  %vm388_vm12 = vcmp.eq.s32.totalorder %v5887_v18, %v5763_v52  ;;  %v6176_v25 = vsel %vm385_vm8, 1.0, %v9698_v40 }
  0xe9   : > { %v6121_v61 = vpop.permute.xlu0 %1293  ;;  %9748 = vst [vmem:[#allocation34_spill] sm:$0xff] %v6133_v59  ;;  %v6151_v59 = vsel %vm376_vm5, 1.0, %v9698_v40  ;;  %vm389_vm13 = vcmp.eq.s32.totalorder %v5897_v32, %v5763_v52  ;;  %9755 = vst [vmem:[#allocation40_spill] sm:$0xff] %v6176_v25  ;;  %v6179_v19 = vsel %vm386_vm9, 1.0, %v9698_v40  ;;  %vm390_vm14 = vcmp.eq.s32.totalorder %v5900_v5, %v5763_v52 }
  0xea   : > { %v6135_v60 = vpop.permute.xlu1 %2311  ;;  %808 = vperm.xlu0 %5297, %v5918_v62   ;;  %9751 = vst [vmem:[#allocation37_spill] sm:$0xff] %v6151_v59  ;;  %v6173_v62 = vadd.s32 250, %v5578_v28  ;;  %9756 = vst [vmem:[#allocation41_spill] sm:$0xff] %v6179_v19  ;;  %v6182_v59 = vsel %vm387_vm10, 1.0, %v9698_v40  ;;  %vm392_vm15 = vcmp.eq.s32.totalorder %v5897_v32, %v5761_v51  ;;  %vm393_vm0 = vcmp.eq.s32.totalorder %v5900_v5, %v5761_v51 }
  0xeb   : > { %9757 = vst [vmem:[#allocation42_spill] sm:$0xff] %v6182_v59  ;;  %v6197_v19 = vadd.s32 100, %v5545_v13  ;;  %v6200_v59 = vsel %vm388_vm12, 1.0, %v9698_v40  ;;  %v6203_v52 = vsel %vm389_vm13, 1.0, %v9698_v40  ;;  %vm397_vm1 = vcmp.eq.s32.totalorder %v5887_v18, %v5781_v15 }
  0xec   : > { %5235 = vset.pattern.permute.xlu1 %v9754_v20  ;;  %9760 = vst [vmem:[#allocation45_spill] sm:$0xff] %v6200_v59  ;;  %9761 = vst [vmem:[#allocation46_spill] sm:$0xff] %v6203_v52  ;;  %v6214_v25 = vsel %vm390_vm14, 1.0, %v9698_v40  ;;  %vm398_vm2 = vcmp.eq.s32.totalorder %v5897_v32, %v5781_v15  ;;  %vm399_vm3 = vcmp.eq.s32.totalorder %v5900_v5, %v5781_v15  ;;  %v6224_v59 = vadd.s32 150, %v5582_v29 }
  0xed   : > { %1314 = vperm.xlu1 %5235, %v5921_v0   ;;  %v6170_v33 = vpop.permute.xlu0 %1302  ;;  %v6194_v0 = vadd.s32 250, %v5582_v29  ;;  %9759 = vst [vmem:[#allocation44_spill] sm:$0xff] %v6197_v19  ;;  %9763 = vst [vmem:[#allocation48_spill] sm:$0xff] %v6214_v25  ;;  %vm394_vm4 = vcmp.eq.s32.totalorder %v5887_v18, %v5783_v3  ;;  %vm395_vm5 = vcmp.eq.s32.totalorder %v5897_v32, %v5783_v3  ;;  %v9766_v25 = vmov 0.0  }
  0xee   : > { %817 = vperm.xlu0 %5297, %v5924_v4   ;;  %v6211_v4 = vsel %vm391_vm11, 1.0, %v9698_v40  ;;  %9764 = vst [vmem:[#allocation49_spill] sm:$0xff] %v6224_v59  ;;  %v6232_v40 = vadd.s32 200, %v5548_v14  ;;  %v6238_v15 = vsel %vm392_vm15, 1.0, %v9766_v25  ;;  %v6241_v29 = vsel %vm397_vm1, 1.0, %v9766_v25 }
  0xef   : > { %v6191_v28 = vpop.permute.xlu1 %1802  ;;  %9758 = vst [vmem:[#allocation43_spill] sm:$0xff] %v6194_v0  ;;  %9762 = vst [vmem:[#allocation47_spill] sm:$0xff] %v6211_v4  ;;  %vm396_vm6 = vcmp.eq.s32.totalorder %v5900_v5, %v5783_v3  ;;  %vm409_vm7 = vcmp.eq.s32.totalorder %v5887_v18, %v5820_v48  ;;  %v6255_v4 = vsel %vm398_vm2, 1.0, %v9766_v25  ;;  %vm410_vm8 = vcmp.eq.s32.totalorder %v5897_v32, %v5820_v48 }
  0xf0   : > { %9765 = vst [vmem:[#allocation50_spill] sm:$0xff] %v6232_v40  ;;  %9767 = vst [vmem:[#allocation51_spill] sm:$0xff] %v6238_v15  ;;  %v6258_v15 = vsel %vm399_vm3, 1.0, %v9766_v25  ;;  %vm411_vm9 = vcmp.eq.s32.totalorder %v5900_v5, %v5820_v48  ;;  %v6270_v51 = vsel %vm395_vm5, 1.0, %v9766_v25  ;;  %vm427_vm10 = vcmp.eq.s32.totalorder %v5887_v18, %v5867_v41  ;;  %v6421_v40 = vld [vmem:[%s5494_s9 + $0x80] sm:$0xff] }
  0xf1   : > { %5236 = vset.pattern.permute.xlu1 %v9736_v45  ;;  %v6221_v52 = vpop.permute.xlu0 %1311  ;;  %9768 = vst [vmem:[#allocation52_spill] sm:$0xff] %v6241_v29  ;;  %9770 = vst [vmem:[#allocation54_spill] sm:$0xff] %v6255_v4  ;;  %vm428_vm11 = vcmp.eq.s32.totalorder %v5897_v32, %v5867_v41  ;;  %vm429_vm12 = vcmp.eq.s32.totalorder %v5900_v5, %v5867_v41  ;;  %v9775_v4 = vmov 3   ;;  %vm445_vm13 = vcmp.eq.s32.totalorder %v5887_v18, %v5889_v6  ;;  %v5322_v41 = vld [vmem:[%s5494_s9 + $0x68] sm:$0xff] }
  0xf2   : > { %805 = vperm.xlu1 %5236, %v5927_v47   ;;  %826 = vperm.xlu0 %5297, %v5930_v10   ;;  %v6252_v47 = vsel %vm393_vm0, 1.0, %v9766_v25  ;;  %9771 = vst [vmem:[#allocation55_spill] sm:$0xff] %v6258_v15  ;;  %v6267_v10 = vsel %vm394_vm4, 1.0, %v9766_v25  ;;  %9773 = vst [vmem:[#allocation57_spill] sm:$0xff] %v6270_v51  ;;  %v6279_v15 = vsel %vm396_vm6, 1.0, %v9766_v25  ;;  %v6291_v51 = vsel %vm409_vm7, 1.0, %v9766_v25 }
  0xf3   : > { %9769 = vst [vmem:[#allocation53_spill] sm:$0xff] %v6252_v47  ;;  %9772 = vst [vmem:[#allocation56_spill] sm:$0xff] %v6267_v10  ;;  %v6285_v10 = vadd.s32 150, %v5545_v13  ;;  %v6299_v47 = vadd.s32 200, %v5545_v13  ;;  %vm446_vm14 = vcmp.eq.s32.totalorder %v5897_v32, %v5889_v6  ;;  %v6321_v13 = vsel %vm427_vm10, 1.0, %v9766_v25 }
  0xf4   : > { %v6264_v3 = vpop.permute.xlu1 %2823  ;;  %9774 = vst [vmem:[#allocation58_spill] sm:$0xff] %v6279_v15  ;;  %9777 = vst [vmem:[#allocation60_spill] sm:$0xff] %v6291_v51  ;;  %v6296_v15 = vadd.s32 250, %v5548_v14  ;;  %v6327_v14 = vsel %vm428_vm11, 1.0, %v9766_v25  ;;  %vm873_vm15 = vcmp.eq.s32.totalorder %v5887_v18, %v5950_v50  ;;  %vm874_vm0 = vcmp.eq.s32.totalorder %v5897_v32, %v5950_v50 }
  0xf5   : > { %v6276_v29 = vpop.permute.xlu0 %1320  ;;  %9776 = vst [vmem:[#allocation59_spill] sm:$0xff] %v6285_v10  ;;  %9779 = vst [vmem:[#allocation62_spill] sm:$0xff] %v6299_v47  ;;  %v6305_v10 = vsel %vm410_vm8, 1.0, %v9766_v25  ;;  %vm875_vm1 = vcmp.eq.s32.totalorder %v5900_v5, %v5950_v50  ;;  %vm447_vm2 = vcmp.eq.s32.totalorder %v5900_v5, %v5889_v6  ;;  %vm870_vm3 = vcmp.eq.s32.totalorder %v5887_v18, %v5952_v35 }
  0xf6   : > { %5237 = vset.pattern.permute.xlu1 %v9775_v4  ;;  %835 = vperm.xlu0 %5297, %v5933_v26   ;;  %9778 = vst [vmem:[#allocation61_spill] sm:$0xff] %v6296_v15  ;;  %9780 = vst [vmem:[#allocation63_spill] sm:$0xff] %v6305_v10  ;;  %v6311_v26 = vsel %vm411_vm9, 1.0, %v9766_v25  ;;  %vm871_vm4 = vcmp.eq.s32.totalorder %v5897_v32, %v5952_v35  ;;  %v6352_v10 = vld [vmem:[%s5494_s9 + $0x78] sm:$0xff]  ;;  %vm872_vm5 = vcmp.eq.s32.totalorder %v5900_v5, %v5952_v35 }
  0xf7   : > { %1826 = vperm.xlu1 %5237, %v5936_v7   ;;  %9781 = vst [vmem:[#allocation64_spill] sm:$0xff] %v6311_v26  ;;  %9782 = vst [vmem:[#allocation65_spill] sm:$0xff] %v6321_v13  ;;  %v6343_v26 = vsel %vm429_vm12, 1.0, %v9766_v25  ;;  %v6355_v51 = vadd.s32 50, %v6352_v10  ;;  %v6374_v13 = vsel %vm446_vm14, 1.0, %v9766_v25  ;;  %vm876_vm6 = vcmp.eq.s32.totalorder %v5887_v18, %v6015_v58 }
  0xf8   : > { %9783 = vst [vmem:[#allocation66_spill] sm:$0xff] %v6327_v14  ;;  %9784 = vst [vmem:[#allocation67_spill] sm:$0xff] %v6343_v26  ;;  %v6362_v26 = vadd.s32 250, %v5322_v41  ;;  %v6368_v14 = vsel %vm445_vm13, 1.0, %v9766_v25  ;;  %v4302_v41 = vsel %vm874_vm0, 1.0, %v9766_v25  ;;  %vm877_vm7 = vcmp.eq.s32.totalorder %v5897_v32, %v6015_v58 }
  0xf9   : > { %v6335_v48 = vpop.permute.xlu1 %2314  ;;  %v6337_v7 = vpop.permute.xlu0 %1329  ;;  %9785 = vst [vmem:[#allocation68_spill] sm:$0xff] %v6355_v51  ;;  %9787 = vst [vmem:[#allocation70_spill] sm:$0xff] %v6368_v14  ;;  %v4303_v14 = vsel %vm875_vm1, 1.0, %v9766_v25  ;;  %v6405_v50 = vsel %vm447_vm2, 1.0, %v9766_v25  ;;  %vm878_vm8 = vcmp.eq.s32.totalorder %v5900_v5, %v6015_v58  ;;  %v6418_v15 = vadd.s32 100, %v6352_v10 }
  0xfa   : > { %844 = vperm.xlu0 %5297, %v5939_v11   ;;  %9786 = vst [vmem:[#allocation69_spill] sm:$0xff] %v6362_v26  ;;  %9788 = vst [vmem:[#allocation71_spill] sm:$0xff] %v6374_v13  ;;  %v4301_v11 = vsel %vm873_vm15, 1.0, %v9766_v25  ;;  %v4298_v13 = vsel %vm870_vm3, 1.0, %v9766_v25  ;;  %v4299_v26 = vsel %vm871_vm4, 1.0, %v9766_v25  ;;  %v6424_v6 = vadd.s32 50, %v6421_v40 }
  0xfb   : > { %5238 = vset.pattern.permute.xlu1 %v9754_v20  ;;  %9789 = vst [vmem:[#allocation72_spill] sm:$0xff] %v6405_v50  ;;  %9790 = vst [vmem:[#allocation73_spill] sm:$0xff] %v6418_v15  ;;  %v1161_v50 = vadd.f32 %v4301_v11, %v6069_v39  ;;  %v1162_v35 = vadd.f32 %v4302_v41, %v6080_v23  ;;  %v1163_v59 = vadd.f32 %v4303_v14, %v6083_v1 }
  0xfc   : > { %1317 = vperm.xlu1 %5238, %v5942_v38   ;;  %v4300_v38 = vsel %vm872_vm5, 1.0, %v9766_v25  ;;  %9791 = vst [vmem:[#allocation74_spill] sm:$0xff] %v6424_v6  ;;  %v4304_v19 = vsel %vm876_vm6, 1.0, %v9766_v25  ;;  %v1158_v15 = vadd.f32 %v4298_v13, %v6024_v30  ;;  %v6436_v0 = vadd.f32 %v4299_v26, %v6035_v12 }
  0xfd   : > { %v4305_v39 = vsel %vm877_vm7, 1.0, %v9766_v25  ;;  %vm885_vm9 = vcmp.eq.s32.totalorder %v5887_v18, %v6066_v54  ;;  %v6446_v1 = vadd.f32 %v4300_v38, %v6038_v49  ;;  %v4306_v30 = vsel %vm878_vm8, 1.0, %v9766_v25 }
  0xfe   : > { %v6413_v51 = vpop.permute.xlu1 %784  ;;  %v6415_v47 = vpop.permute.xlu0 %2317  ;;  %853 = vperm.xlu0 %5297, %v5945_v16   ;;  %vm1382_vm10 = vcmp.eq.s32.totalorder %v5887_v18, %v6032_v44  ;;  %vm886_vm11 = vcmp.eq.s32.totalorder %v5897_v32, %v6066_v54  ;;  %v1164_v16 = vadd.f32 %v4304_v19, %v6001_v42  ;;  %vm1383_vm12 = vcmp.eq.s32.totalorder %v5897_v32, %v6032_v44 }
  0xff   : > { %vm887_vm13 = vcmp.eq.s32.totalorder %v5900_v5, %v6066_v54  ;;  %vm1385_vm14 = vcmp.eq.s32.totalorder %v5887_v18, %v6077_v46  ;;  %v1165_v58 = vadd.f32 %v4305_v39, %v6007_v24  ;;  %vm1384_vm15 = vcmp.eq.s32.totalorder %v5900_v5, %v6032_v44 }
 0x100   : > { %5239 = vset.pattern.permute.xlu1 %v9730_v63  ;;  %vm1386_vm0 = vcmp.eq.s32.totalorder %v5897_v32, %v6077_v46  ;;  %v1166_v12 = vadd.f32 %v4306_v30, %v6013_v57  ;;  %v4394_v23 = vsel %vm1382_vm10, 1.0, %v9766_v25  ;;  %v4314_v54 = vsel %vm886_vm11, 1.0, %v9766_v25 }
 0x101   : > { %2338 = vperm.xlu1 %5239, %v5948_v27   ;;  %v4313_v27 = vsel %vm885_vm9, 1.0, %v9766_v25  ;;  %vm1387_vm1 = vcmp.eq.s32.totalorder %v5900_v5, %v6077_v46  ;;  %v4315_v24 = vsel %vm887_vm13, 1.0, %v9766_v25  ;;  %v4397_v19 = vsel %vm1385_vm14, 1.0, %v9766_v25 }
 0x102   : > { %v6464_v49 = vpop.permute.xlu0 %2326  ;;  %862 = vperm.xlu0 %5297, %v5955_v43   ;;  %vm1388_vm2 = vcmp.eq.s32.totalorder %v5887_v18, %v6121_v61  ;;  %vm1389_vm3 = vcmp.eq.s32.totalorder %v5897_v32, %v6121_v61  ;;  %v4395_v43 = vsel %vm1383_vm12, 1.0, %v9766_v25  ;;  %v4396_v57 = vsel %vm1384_vm15, 1.0, %v9766_v25 }
 0x103   : > { %v6473_v42 = vpop.permute.xlu1 %2826  ;;  %v1173_v46 = vadd.f32 %v4313_v27, %v6086_v53  ;;  %v4398_v26 = vsel %vm1386_vm0, 1.0, %v9766_v25  ;;  %v1174_v14 = vadd.f32 %v4314_v54, %v6093_v8  ;;  %v4399_v11 = vsel %vm1387_vm1, 1.0, %v9766_v25 }
 0x104   : > { %vm1390_vm4 = vcmp.eq.s32.totalorder %v5900_v5, %v6121_v61  ;;  %vm2406_vm5 = vcmp.eq.s32.totalorder %v5887_v18, %v6135_v60  ;;  %v6505_v44 = vadd.f32 %v4315_v24, %v6104_v56  ;;  %v1673_v53 = vadd.f32 %v4397_v19, %v1161_v50 }
 0x105   : > { %5240 = vset.pattern.permute.xlu1 %v9775_v4  ;;  %v4401_v8 = vsel %vm1389_vm3, 1.0, %v9766_v25  ;;  %v1674_v38 = vadd.f32 %v4398_v26, %v1162_v35  ;;  %vm1397_vm6 = vcmp.eq.s32.totalorder %v5887_v18, %v6170_v33  ;;  %vm1398_vm7 = vcmp.eq.s32.totalorder %v5897_v32, %v6170_v33 }
 0x106   : > { %1829 = vperm.xlu1 %5240, %v5958_v37   ;;  %v6495_v13 = vpop.permute.xlu0 %2335  ;;  %5304 = vset.pattern.permute.xlu0 %v9754_v20  ;;  %v4400_v37 = vsel %vm1388_vm2, 1.0, %v9766_v25  ;;  %v6522_v56 = vadd.f32 %v4394_v23, %v1158_v15  ;;  %v1675_v50 = vadd.f32 %v4399_v11, %v1163_v59  ;;  %v4402_v39 = vsel %vm1390_vm4, 1.0, %v9766_v25 }
 0x107   : > { %1338 = vperm.xlu0 %5304, %v5961_v36   ;;  %v6526_v30 = vsel %vm2406_vm5, 1.0, %v9766_v25  ;;  %vm1897_vm8 = vcmp.eq.s32.totalorder %v5887_v18, %v6191_v28  ;;  %vm1898_vm9 = vcmp.eq.s32.totalorder %v5897_v32, %v6191_v28  ;;  %vm1899_vm10 = vcmp.eq.s32.totalorder %v5900_v5, %v6191_v28 }
 0x108   : > { %v6516_v41 = vpop.permute.xlu1 %1296  ;;  %v6538_v61 = vadd.f32 %v4400_v37, %v1164_v16  ;;  %v6540_v59 = vadd.f32 %v4401_v8, %v1165_v58  ;;  %vm382_vm11 = vcmp.eq.s32.totalorder %v5887_v18, %v5744_v34  ;;  %vm383_vm12 = vcmp.eq.s32.totalorder %v5897_v32, %v5744_v34 }
 0x109   : > { %vm384_vm13 = vcmp.eq.s32.totalorder %v5900_v5, %v5744_v34  ;;  %vm1399_vm14 = vcmp.eq.s32.totalorder %v5900_v5, %v6170_v33  ;;  %v4410_v15 = vsel %vm1398_vm7, 1.0, %v9766_v25  ;;  %vm2407_vm15 = vcmp.eq.s32.totalorder %v5897_v32, %v6135_v60  ;;  %v9792_v33 = vld [vmem:[#allocation19_spill] sm:$0xff]  ;;  %v9811_v34 = vld [vmem:[#allocation22_spill] sm:$0xff] }
 0x10a   : > { %5241 = vset.pattern.permute.xlu1 %v9743_v22  ;;  %v6531_v36 = vpop.permute.xlu0 %2344  ;;  %v4493_v35 = vsel %vm1897_vm8, 1.0, %v9766_v25  ;;  %v6567_v58 = vadd.f32 %v4402_v39, %v1166_v12  ;;  %v6570_v27 = vadd.f32 %v4395_v43, %v6436_v0  ;;  %vm2408_vm0 = vcmp.eq.s32.totalorder %v5900_v5, %v6135_v60 }
 0x10b   : > { %2850 = vperm.xlu1 %5241, %v5964_v21   ;;  %v4409_v21 = vsel %vm1397_vm6, 1.0, %v9766_v25  ;;  %1347 = vperm.xlu0 %5304, %v5974_v55   ;;  %vm400_vm1 = vcmp.eq.s32.totalorder %v5887_v18, %v5802_v31  ;;  %v4494_v55 = vsel %vm1898_vm9, 1.0, %v9766_v25  ;;  %v4495_v12 = vsel %vm1899_vm10, 1.0, %v9766_v25 }
 0x10c   : > { %vm1406_vm2 = vcmp.eq.s32.totalorder %v5887_v18, %v6221_v52  ;;  %v6589_v23 = vadd.f32 %v4396_v57, %v6446_v1  ;;  %vm401_vm3 = vcmp.eq.s32.totalorder %v5897_v32, %v5802_v31  ;;  %vm402_vm4 = vcmp.eq.s32.totalorder %v5900_v5, %v5802_v31 }
 0x10d   : > { %v6565_v16 = vpop.permute.xlu1 %787  ;;  %v4411_v28 = vsel %vm1399_vm14, 1.0, %v9766_v25  ;;  %v6600_v54 = vadd.f32 %v4409_v21, %v1173_v46  ;;  %v6602_v24 = vadd.f32 %v4410_v15, %v1174_v14  ;;  %v6608_v1 = vsel %vm2407_vm15, 1.0, %v9766_v25 }
 0x10e   : > { %v6586_v0 = vpop.permute.xlu0 %2353  ;;  %v6610_v19 = vadd.f32 %v4493_v35, %v1673_v53  ;;  %vm1407_vm5 = vcmp.eq.s32.totalorder %v5897_v32, %v6221_v52  ;;  %vm1408_vm6 = vcmp.eq.s32.totalorder %v5900_v5, %v6221_v52  ;;  %v6622_v43 = vsel %vm2408_vm0, 1.0, %v9766_v25  ;;  %v9804_v35 = vld [vmem:[#allocation21_spill] sm:$0xff] }
 0x10f   : > { %5242 = vset.pattern.permute.xlu1 %v9730_v63  ;;  %1356 = vperm.xlu0 %5304, %v5979_v9   ;;  %v6624_v57 = vadd.f32 %v4494_v55, %v1674_v38  ;;  %v2187_v46 = vadd.f32 %v4495_v12, %v1675_v50  ;;  %v6630_v26 = vsel %vm1406_vm2, 1.0, %v9766_v25  ;;  %vm2919_vm7 = vcmp.eq.s32.totalorder %v5897_v32, %v6264_v3  ;;  %v9794_v9 = vld [vmem:[#allocation10_spill] sm:$0xff] }
 0x110   : > { %2341 = vperm.xlu1 %5242, %v9792_v33   ;;  %9793 = vst [vmem:[#allocation19_spill] sm:$0xff] %v6630_v26  ;;  %vm418_vm8 = vcmp.eq.s32.totalorder %v5887_v18, %v9794_v9  ;;  %vm1415_vm9 = vcmp.eq.s32.totalorder %v5887_v18, %v6276_v29  ;;  %vm1416_vm10 = vcmp.eq.s32.totalorder %v5897_v32, %v6276_v29  ;;  %v6657_v53 = vsel %vm1407_vm5, 1.0, %v9766_v25 }
 0x111   : > { %vm1417_vm14 = vcmp.eq.s32.totalorder %v5900_v5, %v6276_v29  ;;  %v6647_v11 = vadd.f32 %v4411_v28, %v6505_v44  ;;  %vm2918_vm0 = vcmp.eq.s32.totalorder %v5887_v18, %v6264_v3  ;;  %9795 = vst [vmem:[#allocation10_spill] sm:$0xff] %v6657_v53  ;;  %v6663_v37 = vsel %vm1408_vm6, 1.0, %v9766_v25  ;;  %v9797_v44 = vld [vmem:[#allocation20_spill] sm:$0xff] }
 0x112   : > { %v6642_v60 = vpop.permute.xlu1 %1808  ;;  %v6644_v14 = vpop.permute.xlu0 %2362  ;;  %9796 = vst [vmem:[#allocation75_spill] sm:$0xff] %v6663_v37  ;;  %vm2920_vm2 = vcmp.eq.s32.totalorder %v5900_v5, %v6264_v3  ;;  %vm420_vm15 = vcmp.eq.s32.totalorder %v5900_v5, %v9794_v9  ;;  %v6675_v8 = vsel %vm2919_vm7, 1.0, %v9766_v25  ;;  %v6678_v52 = vadd.s32 150, %v6352_v10 }
 0x113   : > { %1365 = vperm.xlu0 %5304, %v9797_v44   ;;  %v6681_v38 = vadd.s32 100, %v6421_v40  ;;  %v6684_v50 = vadd.s32 200, %v6352_v10  ;;  %v6690_v39 = vsel %vm1415_vm9, 1.0, %v9766_v25  ;;  %v6696_v21 = vsel %vm1416_vm10, 1.0, %v9766_v25 }
 0x114   : > { %5243 = vset.pattern.permute.xlu1 %v9736_v45  ;;  %9798 = vst [vmem:[#allocation20_spill] sm:$0xff] %v6678_v52  ;;  %9801 = vst [vmem:[#allocation78_spill] sm:$0xff] %v6690_v39  ;;  %v6702_v15 = vsel %vm1417_vm14, 1.0, %v9766_v25  ;;  %vm2411_vm5 = vcmp.eq.s32.totalorder %v5900_v5, %v6335_v48  ;;  %vm2409_vm6 = vcmp.eq.s32.totalorder %v5887_v18, %v6335_v48  ;;  %v6717_v29 = vsel %vm2920_vm2, 1.0, %v9766_v25 }
 0x115   : > { %9799 = vst [vmem:[#allocation76_spill] sm:$0xff] %v6681_v38  ;;  %9800 = vst [vmem:[#allocation77_spill] sm:$0xff] %v6684_v50  ;;  %811 = vperm.xlu1 %5243, %v9804_v35   ;;  %vm2410_vm7 = vcmp.eq.s32.totalorder %v5897_v32, %v6335_v48  ;;  %v6723_v12 = vsel %vm2918_vm0, 1.0, %v9766_v25  ;;  %v6731_v33 = vsel %vm382_vm11, 1.0, %v9766_v25  ;;  %v6737_v44 = vsel %vm383_vm12, 1.0, %v9766_v25 }
 0x116   : > { %9802 = vst [vmem:[#allocation79_spill] sm:$0xff] %v6696_v21  ;;  %9803 = vst [vmem:[#allocation80_spill] sm:$0xff] %v6702_v15  ;;  %v6711_v55 = vpop.permute.xlu0 %2371  ;;  %v6743_v3 = vsel %vm384_vm13, 1.0, %v9766_v25  ;;  %v6746_v35 = vadd.s32 150, %v6421_v40  ;;  %v4591_v39 = vsel %vm2411_vm5, 1.0, %v9766_v25  ;;  %vm1424_vm11 = vcmp.eq.s32.totalorder %v5887_v18, %v6337_v7 }
 0x117   : > { %9805 = vst [vmem:[#allocation21_spill] sm:$0xff] %v6711_v55  ;;  %v6725_v28 = vpop.permute.xlu1 %1299  ;;  %9806 = vst [vmem:[#allocation81_spill] sm:$0xff] %v6731_v33  ;;  %v9810_v55 = vld [vmem:[#allocation15_spill] sm:$0xff]  ;;  %vm1425_vm12 = vcmp.eq.s32.totalorder %v5897_v32, %v6337_v7  ;;  %vm1426_vm10 = vcmp.eq.s32.totalorder %v5900_v5, %v6337_v7  ;;  %1374 = vperm.xlu0 %5304, %v9811_v34   ;;  %v4589_v15 = vsel %vm2409_vm6, 1.0, %v9766_v25  ;;  %v4590_v21 = vsel %vm2410_vm7, 1.0, %v9766_v25 }
 0x118   : > { %9807 = vst [vmem:[#allocation82_spill] sm:$0xff] %v6737_v44  ;;  %9808 = vst [vmem:[#allocation83_spill] sm:$0xff] %v6743_v3  ;;  %vm436_vm9 = vcmp.eq.s32.totalorder %v5887_v18, %v9810_v55  ;;  %vm879_vm13 = vcmp.eq.s32.totalorder %v5887_v18, %v6413_v51  ;;  %v6773_v7 = vsel %vm400_vm1, 1.0, %v9766_v25  ;;  %vm880_vm14 = vcmp.eq.s32.totalorder %v5897_v32, %v6413_v51  ;;  %v9813_v34 = vld [vmem:[#allocation23_spill] sm:$0xff] }
 0x119   : > { %9809 = vst [vmem:[#allocation84_spill] sm:$0xff] %v6746_v35  ;;  %5244 = vset.pattern.permute.xlu1 %v9743_v22  ;;  %9812 = vst [vmem:[#allocation15_spill] sm:$0xff] %v6773_v7  ;;  %vm881_vm0 = vcmp.eq.s32.totalorder %v5900_v5, %v6413_v51  ;;  %v6784_v48 = vsel %vm401_vm3, 1.0, %v9766_v25  ;;  %v6790_v37 = vsel %vm402_vm4, 1.0, %v9766_v25  ;;  %vm437_vm1 = vcmp.eq.s32.totalorder %v5897_v32, %v9810_v55  ;;  %v9835_v35 = vld [vmem:[#allocation35_spill] sm:$0xff] }
 0x11a   : > { %2853 = vperm.xlu1 %5244, %v9813_v34   ;;  %9814 = vst [vmem:[#allocation22_spill] sm:$0xff] %v6784_v48  ;;  %9815 = vst [vmem:[#allocation23_spill] sm:$0xff] %v6790_v37  ;;  %v6795_v7 = vsel %vm1424_vm11, 1.0, %v9766_v25  ;;  %v6798_v34 = vsel %vm1425_vm12, 1.0, %v9766_v25  ;;  %v6801_v53 = vsel %vm1426_vm10, 1.0, %v9766_v25  ;;  %v2699_v26 = vadd.f32 %v4591_v39, %v2187_v46 }
 0x11b   : > { %9816 = vst [vmem:[#allocation85_spill] sm:$0xff] %v6795_v7  ;;  %9817 = vst [vmem:[#allocation86_spill] sm:$0xff] %v6798_v34  ;;  %v4307_v48 = vsel %vm879_vm13, 1.0, %v9766_v25  ;;  %5307 = vset.pattern.permute.xlu0 %v9730_v63  ;;  %v6807_v37 = vpop.permute.xlu0 %2829  ;;  %v2698_v3 = vadd.f32 %v4590_v21, %v6624_v57  ;;  %v2697_v44 = vadd.f32 %v4589_v15, %v6610_v19  ;;  %v6812_v7 = vadd.s32 250, %v6352_v10  ;;  %v9825_v57 = vld [vmem:[#allocation26_spill] sm:$0xff]  ;;  %v9826_v21 = vld [vmem:[#allocation25_spill] sm:$0xff] }
 0x11c   : > { %9818 = vst [vmem:[#allocation87_spill] sm:$0xff] %v6801_v53  ;;  %v6805_v31 = vpop.permute.xlu1 %2320  ;;  %vm438_vm3 = vcmp.eq.s32.totalorder %v5900_v5, %v9810_v55  ;;  %v4308_v46 = vsel %vm880_vm14, 1.0, %v9766_v25  ;;  %v4309_v39 = vsel %vm881_vm0, 1.0, %v9766_v25  ;;  %v9820_v53 = vld [vmem:[#allocation24_spill] sm:$0xff]  ;;  %v6826_v19 = vadd.s32 200, %v6421_v40  ;;  %v9828_v15 = vld [vmem:[#allocation27_spill] sm:$0xff] }
 0x11d   : > { %9819 = vst [vmem:[#allocation88_spill] sm:$0xff] %v6812_v7  ;;  %2380 = vperm.xlu0 %5307, %v9820_v53   ;;  %v6832_v10 = vsel %vm418_vm8, 1.0, %v9766_v25  ;;  %vm2412_vm4 = vcmp.eq.s32.totalorder %v5887_v18, %v6415_v47  ;;  %vm2413_vm2 = vcmp.eq.s32.totalorder %v5897_v32, %v6415_v47  ;;  %vm2414_vm5 = vcmp.eq.s32.totalorder %v5900_v5, %v6415_v47 }
 0x11e   : > { %9821 = vst [vmem:[#allocation24_spill] sm:$0xff] %v6826_v19  ;;  %9822 = vst [vmem:[#allocation89_spill] sm:$0xff] %v6832_v10  ;;  %5245 = vset.pattern.permute.xlu1 %v9754_v20  ;;  %vm9823_vm6 = vcmp.eq.s32.totalorder %v5897_v32, %v9794_v9  ;;  %v1167_v53 = vadd.f32 %v4307_v48, %v9825_v57  ;;  %vm2922_vm8 = vcmp.eq.s32.totalorder %v5897_v32, %v6473_v42 }
 0x11f   : > { %v6845_v51 = vsel %vm9823_vm6, 1.0, %v9766_v25  ;;  %vm2923_vm7 = vcmp.eq.s32.totalorder %v5900_v5, %v6473_v42  ;;  %1323 = vperm.xlu1 %5245, %v9826_v21   ;;  %v6857_v47 = vsel %vm420_vm15, 1.0, %v9766_v25  ;;  %v1168_v34 = vadd.f32 %v4308_v46, %v9828_v15  ;;  %v6865_v48 = vpop.permute.xlu0 %2838  ;;  %v9830_v46 = vld [vmem:[#allocation29_spill] sm:$0xff] }
 0x120   : > { %9824 = vst [vmem:[#allocation90_spill] sm:$0xff] %v6845_v51  ;;  %9827 = vst [vmem:[#allocation26_spill] sm:$0xff] %v6857_v47  ;;  %v9829_v51 = vld [vmem:[#allocation28_spill] sm:$0xff]  ;;  %vm2921_vm11 = vcmp.eq.s32.totalorder %v5887_v18, %v6473_v42  ;;  %vm2421_vm12 = vcmp.eq.s32.totalorder %v5887_v18, %v6464_v49  ;;  %v6868_v57 = vsel %vm2412_vm4, 1.0, %v9766_v25  ;;  %v6871_v9 = vsel %vm2413_vm2, 1.0, %v9766_v25  ;;  %v6889_v47 = vld [vmem:[%s5494_s9 + $0x90] sm:$0xff] }
 0x121   : > { %v1169_v10 = vadd.f32 %v4309_v39, %v9829_v51  ;;  %v6874_v21 = vsel %vm2414_vm5, 1.0, %v9766_v25  ;;  %vm2422_vm15 = vcmp.eq.s32.totalorder %v5897_v32, %v6464_v49  ;;  %2389 = vperm.xlu0 %5307, %v9830_v46   ;;  %v6879_v39 = vpop.permute.xlu1 %1811  ;;  %vm2423_vm10 = vcmp.eq.s32.totalorder %v5900_v5, %v6464_v49 }
 0x122   : > { %v4687_v51 = vsel %vm2923_vm7, 1.0, %v9766_v25  ;;  %v4686_v15 = vsel %vm2922_vm8, 1.0, %v9766_v25  ;;  %v6892_v19 = vadd.s32 50, %v6889_v47  ;;  %v6895_v33 = vsel %vm2421_vm12, 1.0, %v9766_v25 }
 0x123   : > { %9832 = vst [vmem:[#allocation27_spill] sm:$0xff] %v6895_v33  ;;  %vm2430_vm13 = vcmp.eq.s32.totalorder %v5887_v18, %v6495_v13  ;;  %5246 = vset.pattern.permute.xlu1 %v9736_v45  ;;  %v4685_v46 = vsel %vm2921_vm11, 1.0, %v9766_v25  ;;  %v6908_v7 = vsel %vm436_vm9, 1.0, %v9766_v25  ;;  %vm1391_vm14 = vcmp.eq.s32.totalorder %v5887_v18, %v6516_v41  ;;  %v6920_v42 = vpop.permute.xlu0 %2847 }
 0x124   : > { %9831 = vst [vmem:[#allocation25_spill] sm:$0xff] %v6892_v19  ;;  %9833 = vst [vmem:[#allocation28_spill] sm:$0xff] %v6908_v7  ;;  %v6911_v19 = vsel %vm2422_vm15, 1.0, %v9766_v25  ;;  %vm2431_vm0 = vcmp.eq.s32.totalorder %v5897_v32, %v6495_v13  ;;  %vm2432_vm4 = vcmp.eq.s32.totalorder %v5900_v5, %v6495_v13  ;;  %814 = vperm.xlu1 %5246, %v6124_v2   ;;  %v6926_v7 = vsel %vm2423_vm10, 1.0, %v9766_v25 }
 0x125   : > { %9834 = vst [vmem:[#allocation29_spill] sm:$0xff] %v6911_v19  ;;  %vm1392_vm9 = vcmp.eq.s32.totalorder %v5897_v32, %v6516_v41  ;;  %2398 = vperm.xlu0 %5307, %v9835_v35   ;;  %v6931_v50 = vadd.f32 %v4687_v51, %v2699_v26  ;;  %v6933_v38 = vadd.f32 %v4686_v15, %v2698_v3  ;;  %v6941_v2 = vsel %vm2430_vm13, 1.0, %v9766_v25 }
 0x126   : > { %vm1393_vm2 = vcmp.eq.s32.totalorder %v5900_v5, %v6516_v41  ;;  %9836 = vst [vmem:[#allocation35_spill] sm:$0xff] %v6941_v2  ;;  %v6943_v49 = vpop.permute.xlu1 %2832  ;;  %v6945_v52 = vadd.f32 %v4685_v46, %v2697_v44  ;;  %v6951_v26 = vsel %vm437_vm1, 1.0, %v9766_v25  ;;  %v4403_v3 = vsel %vm1391_vm14, 1.0, %v9766_v25 }
 0x127   : > { %9837 = vst [vmem:[#allocation91_spill] sm:$0xff] %v6951_v26  ;;  %v6955_v41 = vsel %vm2431_vm0, 1.0, %v9766_v25  ;;  %v6958_v35 = vsel %vm2432_vm4, 1.0, %v9766_v25  ;;  %vm882_vm5 = vcmp.eq.s32.totalorder %v5887_v18, %v6565_v16  ;;  %v4404_v13 = vsel %vm1392_vm9, 1.0, %v9766_v25  ;;  %v6968_v44 = vpop.permute.xlu0 %2856 }
 0x128   : > { %9838 = vst [vmem:[#allocation92_spill] sm:$0xff] %v6955_v41  ;;  %9839 = vst [vmem:[#allocation93_spill] sm:$0xff] %v6958_v35  ;;  %vm883_vm6 = vcmp.eq.s32.totalorder %v5897_v32, %v6565_v16  ;;  %vm884_vm1 = vcmp.eq.s32.totalorder %v5900_v5, %v6565_v16  ;;  %5247 = vset.pattern.permute.xlu1 %v9775_v4  ;;  %v6974_v51 = vsel %vm438_vm3, 1.0, %v9766_v25  ;;  %v4405_v15 = vsel %vm1393_vm2, 1.0, %v9766_v25  ;;  %v9848_v41 = vld [vmem:[#allocation32_spill] sm:$0xff] }
 0x129   : > { %9840 = vst [vmem:[#allocation94_spill] sm:$0xff] %v6974_v51  ;;  %vm2439_vm8 = vcmp.eq.s32.totalorder %v5887_v18, %v6531_v36  ;;  %5312 = vset.pattern.permute.xlu0 %v9743_v22  ;;  %1835 = vperm.xlu1 %5247, %v6161_v17   ;;  %v6982_v46 = vadd.s32 250, %v6421_v40  ;;  %v6985_v35 = vadd.s32 100, %v6889_v47  ;;  %v1679_v2 = vadd.f32 %v4403_v3, %v1167_v53 }
 0x12a   : > { %vm2440_vm3 = vcmp.eq.s32.totalorder %v5897_v32, %v6531_v36  ;;  %vm2441_vm7 = vcmp.eq.s32.totalorder %v5900_v5, %v6531_v36  ;;  %v4310_v55 = vsel %vm882_vm5, 1.0, %v9766_v25  ;;  %2901 = vperm.xlu0 %5312, %v6173_v62   ;;  %v1680_v17 = vadd.f32 %v4404_v13, %v1168_v34  ;;  %v9847_v36 = vld [vmem:[#allocation31_spill] sm:$0xff] }
 0x12b   : > { %9841 = vst [vmem:[#allocation95_spill] sm:$0xff] %v6982_v46  ;;  %9842 = vst [vmem:[#allocation96_spill] sm:$0xff] %v6985_v35  ;;  %v4311_v40 = vsel %vm883_vm6, 1.0, %v9766_v25  ;;  %v4312_v53 = vsel %vm884_vm1, 1.0, %v9766_v25  ;;  %vm2448_vm11 = vcmp.eq.s32.totalorder %v5887_v18, %v6586_v0  ;;  %v7006_v3 = vpop.permute.xlu1 %2323  ;;  %v1681_v51 = vadd.f32 %v4405_v15, %v1169_v10  ;;  %v7018_v16 = vpop.permute.xlu0 %2865  ;;  %v9846_v10 = vld [vmem:[#allocation30_spill] sm:$0xff] }
 0x12c   : > { %v7012_v62 = vsel %vm2439_vm8, 1.0, %v9766_v25  ;;  %vm1903_vm12 = vcmp.eq.s32.totalorder %v5887_v18, %v6642_v60  ;;  %vm1904_vm15 = vcmp.eq.s32.totalorder %v5897_v32, %v6642_v60  ;;  %v7021_v34 = vsel %vm2440_vm3, 1.0, %v9766_v25 }
 0x12d   : > { %9843 = vst [vmem:[#allocation97_spill] sm:$0xff] %v7012_v62  ;;  %9844 = vst [vmem:[#allocation98_spill] sm:$0xff] %v7021_v34  ;;  %v7024_v13 = vsel %vm2441_vm7, 1.0, %v9766_v25  ;;  %v1170_v15 = vadd.f32 %v4310_v55, %v9846_v10  ;;  %vm1905_vm10 = vcmp.eq.s32.totalorder %v5900_v5, %v6642_v60  ;;  %5248 = vset.pattern.permute.xlu1 %v9754_v20  ;;  %v7035_v35 = vsel %vm2448_vm11, 1.0, %v9766_v25  ;;  %v9850_v34 = vld [vmem:[#allocation43_spill] sm:$0xff] }
 0x12e   : > { %9845 = vst [vmem:[#allocation99_spill] sm:$0xff] %v7024_v13  ;;  %v1171_v62 = vadd.f32 %v4311_v40, %v9847_v36  ;;  %v1172_v26 = vadd.f32 %v4312_v53, %v9848_v41  ;;  %vm2449_vm13 = vcmp.eq.s32.totalorder %v5897_v32, %v6586_v0  ;;  %9849 = vst [vmem:[#allocation30_spill] sm:$0xff] %v7035_v35  ;;  %2910 = vperm.xlu0 %5312, %v9850_v34   ;;  %v9851_v13 = vld [vmem:[#allocation44_spill] sm:$0xff] }
 0x12f   : > { %1326 = vperm.xlu1 %5248, %v9851_v13   ;;  %vm2450_vm14 = vcmp.eq.s32.totalorder %v5900_v5, %v6586_v0  ;;  %v4499_v60 = vsel %vm1903_vm12, 1.0, %v9766_v25  ;;  %v4500_v55 = vsel %vm1904_vm15, 1.0, %v9766_v25  ;;  %vm1394_vm0 = vcmp.eq.s32.totalorder %v5887_v18, %v6725_v28  ;;  %v7054_v0 = vpop.permute.xlu0 %2874  ;;  %v7064_v34 = vld [vmem:[%s5494_s9 + $0x98] sm:$0xff] }
 0x130   : > { %v4501_v41 = vsel %vm1905_vm10, 1.0, %v9766_v25  ;;  %vm2457_vm4 = vcmp.eq.s32.totalorder %v5887_v18, %v6644_v14  ;;  %vm1395_vm9 = vcmp.eq.s32.totalorder %v5897_v32, %v6725_v28  ;;  %vm1396_vm2 = vcmp.eq.s32.totalorder %v5900_v5, %v6725_v28  ;;  %v7052_v40 = vpop.permute.xlu1 %793  ;;  %9852 = vst [vmem:[#allocation31_spill] sm:$0xff] %v7054_v0  ;;  %9854 = vst [vmem:[#allocation43_spill] sm:$0xff] %v7064_v34 }
 0x131   : > { %v7057_v53 = vsel %vm2449_vm13, 1.0, %v9766_v25  ;;  %vm2458_vm5 = vcmp.eq.s32.totalorder %v5897_v32, %v6644_v14  ;;  %vm2459_vm6 = vcmp.eq.s32.totalorder %v5900_v5, %v6644_v14  ;;  %v7067_v13 = vadd.s32 50, %v7064_v34  ;;  %v9861_v14 = vld [vmem:[#allocation50_spill] sm:$0xff] }
 0x132   : > { %9853 = vst [vmem:[#allocation32_spill] sm:$0xff] %v7057_v53  ;;  %v7070_v10 = vsel %vm2450_vm14, 1.0, %v9766_v25  ;;  %v2191_v36 = vadd.f32 %v4499_v60, %v1679_v2  ;;  %v2192_v35 = vadd.f32 %v4500_v55, %v1680_v17  ;;  %v4406_v46 = vsel %vm1394_vm0, 1.0, %v9766_v25  ;;  %5315 = vset.pattern.permute.xlu0 %v9775_v4  ;;  %v9858_v17 = vld [vmem:[#allocation49_spill] sm:$0xff] }
 0x133   : > { %9855 = vst [vmem:[#allocation44_spill] sm:$0xff] %v7067_v13  ;;  %9856 = vst [vmem:[#allocation100_spill] sm:$0xff] %v7070_v10  ;;  %5249 = vset.pattern.permute.xlu1 %v9730_v63  ;;  %v2193_v53 = vadd.f32 %v4501_v41, %v1681_v51  ;;  %v7079_v33 = vsel %vm2457_vm4, 1.0, %v9766_v25  ;;  %v4407_v10 = vsel %vm1395_vm9, 1.0, %v9766_v25  ;;  %v4408_v2 = vsel %vm1396_vm2, 1.0, %v9766_v25  ;;  %1886 = vperm.xlu0 %5315, %v9858_v17   ;;  %v7099_v55 = vpop.permute.xlu0 %2883 }
 0x134   : > { %9857 = vst [vmem:[#allocation101_spill] sm:$0xff] %v7079_v33  ;;  %v7091_v51 = vsel %vm2458_vm5, 1.0, %v9766_v25  ;;  %v7094_v60 = vsel %vm2459_vm6, 1.0, %v9766_v25  ;;  %vm2417_vm1 = vcmp.eq.s32.totalorder %v5900_v5, %v6805_v31  ;;  %2347 = vperm.xlu1 %5249, %v9861_v14   ;;  %9862 = vst [vmem:[#allocation50_spill] sm:$0xff] %v7099_v55  ;;  %v7102_v41 = vadd.s32 150, %v6889_v47 }
 0x135   : > { %9859 = vst [vmem:[#allocation49_spill] sm:$0xff] %v7091_v51  ;;  %9860 = vst [vmem:[#allocation102_spill] sm:$0xff] %v7094_v60  ;;  %v1682_v28 = vadd.f32 %v4406_v46, %v1170_v15  ;;  %vm2415_vm8 = vcmp.eq.s32.totalorder %v5887_v18, %v6805_v31  ;;  %vm2416_vm3 = vcmp.eq.s32.totalorder %v5897_v32, %v6805_v31  ;;  %v7110_v17 = vpop.permute.xlu1 %2835  ;;  %v7115_v14 = vadd.s32 100, %v7064_v34 }
 0x136   : > { %9863 = vst [vmem:[#allocation103_spill] sm:$0xff] %v7102_v41  ;;  %vm2924_vm7 = vcmp.eq.s32.totalorder %v5887_v18, %v6807_v37  ;;  %v1683_v33 = vadd.f32 %v4407_v10, %v1171_v62  ;;  %v1684_v51 = vadd.f32 %v4408_v2, %v1172_v26  ;;  %vm1906_vm11 = vcmp.eq.s32.totalorder %v5887_v18, %v6879_v39  ;;  %v9866_v10 = vld [vmem:[#allocation59_spill] sm:$0xff] }
 0x137   : > { %9864 = vst [vmem:[#allocation104_spill] sm:$0xff] %v7115_v14  ;;  %v4597_v46 = vsel %vm2417_vm1, 1.0, %v9766_v25  ;;  %vm2925_vm12 = vcmp.eq.s32.totalorder %v5897_v32, %v6807_v37  ;;  %vm1907_vm15 = vcmp.eq.s32.totalorder %v5897_v32, %v6879_v39  ;;  %vm1908_vm10 = vcmp.eq.s32.totalorder %v5900_v5, %v6879_v39  ;;  %v7132_v15 = vpop.permute.xlu0 %2892 }
 0x138   : > { %v4595_v31 = vsel %vm2415_vm8, 1.0, %v9766_v25  ;;  %v4596_v26 = vsel %vm2416_vm3, 1.0, %v9766_v25  ;;  %vm2926_vm13 = vcmp.eq.s32.totalorder %v5900_v5, %v6807_v37  ;;  %v7129_v62 = vsel %vm2924_vm7, 1.0, %v9766_v25  ;;  %5250 = vset.pattern.permute.xlu1 %v9775_v4  ;;  %9865 = vst [vmem:[#allocation105_spill] sm:$0xff] %v7132_v15 }
 0x139   : > { %vm2933_vm14 = vcmp.eq.s32.totalorder %v5887_v18, %v6865_v48  ;;  %vm2934_vm0 = vcmp.eq.s32.totalorder %v5897_v32, %v6865_v48  ;;  %vm2935_vm4 = vcmp.eq.s32.totalorder %v5900_v5, %v6865_v48  ;;  %v4502_v39 = vsel %vm1906_vm11, 1.0, %v9766_v25  ;;  %1838 = vperm.xlu1 %5250, %v9866_v10  }
 0x13a   : > { %v7143_v37 = vsel %vm2925_vm12, 1.0, %v9766_v25  ;;  %v4503_v2 = vsel %vm1907_vm15, 1.0, %v9766_v25  ;;  %v4504_v15 = vsel %vm1908_vm10, 1.0, %v9766_v25  ;;  %v7147_v60 = vpop.permute.xlu1 %1305  ;;  %v2705_v55 = vadd.f32 %v4597_v46, %v2193_v53 }
 0x13b   : > { %v7150_v14 = vsel %vm2926_vm13, 1.0, %v9766_v25  ;;  %v2704_v41 = vadd.f32 %v4596_v26, %v2192_v35  ;;  %v2703_v13 = vadd.f32 %v4595_v31, %v2191_v36  ;;  %v7153_v48 = vadd.s32 200, %v6889_v47 }
 0x13c   : > { %v7156_v10 = vsel %vm2933_vm14, 1.0, %v9766_v25  ;;  %v7159_v4 = vsel %vm2934_vm0, 1.0, %v9766_v25  ;;  %v7162_v19 = vsel %vm2935_vm4, 1.0, %v9766_v25  ;;  %v7164_v6 = vadd.f32 %v4502_v39, %v1682_v28  ;;  %v1800_v35 = vpop.permute.xlu0 %1799 }
 0x13d   : > { %9867 = vst [vmem:[#allocation59_spill] sm:$0xff] %v7153_v48  ;;  %9868 = vst [vmem:[#allocation106_spill] sm:$0xff] %v7156_v10  ;;  %v7166_v53 = vadd.f32 %v4503_v2, %v1683_v33  ;;  %v7168_v46 = vadd.f32 %v4504_v15, %v1684_v51  ;;  %vm2942_vm9 = vcmp.eq.s32.totalorder %v5887_v18, %v6920_v42  ;;  %5251 = vset.pattern.permute.xlu1 %v9743_v22  ;;  %v9870_v33 = vld [vmem:[#allocation61_spill] sm:$0xff] }
 0x13e   : > { %v7174_v36 = vadd.s32 150, %v7064_v34  ;;  %vm2943_vm2 = vcmp.eq.s32.totalorder %v5897_v32, %v6920_v42  ;;  %vm2944_vm5 = vcmp.eq.s32.totalorder %v5900_v5, %v6920_v42  ;;  %vm2927_vm6 = vcmp.eq.s32.totalorder %v5887_v18, %v6943_v49  ;;  %2859 = vperm.xlu1 %5251, %v9870_v33  }
 0x13f   : > { %vm1895_vm1 = vcmp.eq.s32.totalorder %v5897_v32, %v1800_v35  ;;  %vm2928_vm8 = vcmp.eq.s32.totalorder %v5897_v32, %v6943_v49  ;;  %vm2929_vm3 = vcmp.eq.s32.totalorder %v5900_v5, %v6943_v49  ;;  %vm2951_vm7 = vcmp.eq.s32.totalorder %v5887_v18, %v6968_v44  ;;  %v7191_v28 = vpop.permute.xlu1 %796 }
 0x140   : > { %9869 = vst [vmem:[#allocation107_spill] sm:$0xff] %v7174_v36  ;;  %v4491_v51 = vsel %vm1895_vm1, 1.0, %v9766_v25  ;;  %v7194_v42 = vsel %vm2942_vm9, 1.0, %v9766_v25  ;;  %vm2952_vm11 = vcmp.eq.s32.totalorder %v5897_v32, %v6968_v44  ;;  %vm1894_vm12 = vcmp.eq.s32.totalorder %v5887_v18, %v1800_v35  ;;  %v1806_v15 = vpop.permute.xlu0 %1805 }
 0x141   : > { %9871 = vst [vmem:[#allocation61_spill] sm:$0xff] %v7194_v42  ;;  %vm1896_vm15 = vcmp.eq.s32.totalorder %v5900_v5, %v1800_v35  ;;  %v7201_v31 = vsel %vm2943_vm2, 1.0, %v9766_v25  ;;  %v7204_v26 = vsel %vm2944_vm5, 1.0, %v9766_v25  ;;  %vm2953_vm10 = vcmp.eq.s32.totalorder %v5900_v5, %v6968_v44 }
 0x142   : > { %9872 = vst [vmem:[#allocation108_spill] sm:$0xff] %v7201_v31  ;;  %9873 = vst [vmem:[#allocation109_spill] sm:$0xff] %v7204_v26  ;;  %v2183_v39 = vadd.f32 %v4491_v51, %v6570_v27  ;;  %v7210_v2 = vsel %vm2951_vm7, 1.0, %v9766_v25  ;;  %5253 = vset.pattern.permute.xlu1 %v9730_v63  ;;  %v4693_v33 = vsel %vm2929_vm3, 1.0, %v9766_v25  ;;  %v4692_v35 = vsel %vm2928_vm8, 1.0, %v9766_v25 }
 0x143   : > { %9874 = vst [vmem:[#allocation110_spill] sm:$0xff] %v7210_v2  ;;  %v4691_v44 = vsel %vm2927_vm6, 1.0, %v9766_v25  ;;  %v7223_v36 = vsel %vm2952_vm11, 1.0, %v9766_v25  ;;  %v4490_v27 = vsel %vm1894_vm12, 1.0, %v9766_v25  ;;  %v4492_v51 = vsel %vm1896_vm15, 1.0, %v9766_v25  ;;  %v9876_v2 = vld [vmem:[#allocation62_spill] sm:$0xff] }
 0x144   : > { %9875 = vst [vmem:[#allocation111_spill] sm:$0xff] %v7223_v36  ;;  %vm1902_vm13 = vcmp.eq.s32.totalorder %v5900_v5, %v1806_v15  ;;  %2350 = vperm.xlu1 %5253, %v9876_v2   ;;  %v7230_v48 = vsel %vm2953_vm10, 1.0, %v9766_v25  ;;  %vm2418_vm14 = vcmp.eq.s32.totalorder %v5887_v18, %v7006_v3  ;;  %vm2420_vm0 = vcmp.eq.s32.totalorder %v5900_v5, %v7006_v3  ;;  %v7237_v36 = vpop.permute.xlu1 %1817  ;;  %v7242_v26 = vpop.permute.xlu0 %1814 }
 0x145   : > { %9877 = vst [vmem:[#allocation62_spill] sm:$0xff] %v7230_v48  ;;  %v4498_v49 = vsel %vm1902_vm13, 1.0, %v9766_v25  ;;  %vm2419_vm4 = vcmp.eq.s32.totalorder %v5897_v32, %v7006_v3  ;;  %vm1901_vm9 = vcmp.eq.s32.totalorder %v5897_v32, %v1806_v15  ;;  %v2695_v2 = vadd.f32 %v6608_v1, %v2183_v39 }
 0x146   : > { %v7245_v48 = vadd.f32 %v4693_v33, %v2705_v55  ;;  %vm2960_vm2 = vcmp.eq.s32.totalorder %v5887_v18, %v7018_v16  ;;  %v2182_v42 = vadd.f32 %v4490_v27, %v6522_v56  ;;  %v2184_v31 = vadd.f32 %v4492_v51, %v6589_v23  ;;  %v9878_v23 = vld [vmem:[#allocation68_spill] sm:$0xff] }
 0x147   : > { %v7251_v63 = vadd.f32 %v4692_v35, %v2704_v41  ;;  %v4598_v34 = vsel %vm2418_vm14, 1.0, %v9766_v25  ;;  %v4600_v3 = vsel %vm2420_vm0, 1.0, %v9766_v25  ;;  %v2190_v10 = vadd.f32 %v4498_v49, %v6567_v58 }
 0x148   : > { %5254 = vset.pattern.permute.xlu1 %v9736_v45  ;;  %v7257_v1 = vadd.f32 %v4691_v44, %v2703_v13  ;;  %v4599_v55 = vsel %vm2419_vm4, 1.0, %v9766_v25  ;;  %vm2961_vm5 = vcmp.eq.s32.totalorder %v5897_v32, %v7018_v16  ;;  %vm1900_vm6 = vcmp.eq.s32.totalorder %v5887_v18, %v1806_v15  ;;  %v7277_v39 = vpop.permute.xlu0 %1823 }
 0x149   : > { %v4497_v56 = vsel %vm1901_vm9, 1.0, %v9766_v25  ;;  %820 = vperm.xlu1 %5254, %v9878_v23   ;;  %vm2962_vm1 = vcmp.eq.s32.totalorder %v5900_v5, %v7018_v16  ;;  %v7270_v58 = vsel %vm2960_vm2, 1.0, %v9766_v25  ;;  %vm1911_vm8 = vcmp.eq.s32.totalorder %v5900_v5, %v7242_v26  ;;  %v7275_v41 = vpop.permute.xlu1 %1308  ;;  %v9885_v23 = vld [vmem:[#allocation73_spill] sm:$0xff] }
 0x14a   : > { %9879 = vst [vmem:[#allocation68_spill] sm:$0xff] %v7270_v58  ;;  %v3207_v13 = vadd.f32 %v6675_v8, %v2695_v2  ;;  %vm888_vm3 = vcmp.eq.s32.totalorder %v5887_v18, %v7052_v40  ;;  %v2696_v15 = vadd.f32 %v6622_v43, %v2184_v31  ;;  %v2694_v33 = vadd.f32 %v6526_v30, %v2182_v42  ;;  %v9924_v58 = vld [vmem:[#allocation19_spill] sm:$0xff] }
 0x14b   : > { %v2708_v35 = vadd.f32 %v4600_v3, %v7168_v46  ;;  %vm889_vm7 = vcmp.eq.s32.totalorder %v5897_v32, %v7052_v40  ;;  %v4496_v44 = vsel %vm1900_vm6, 1.0, %v9766_v25  ;;  %v2189_v8 = vadd.f32 %v4497_v56, %v6540_v59  ;;  %v9883_v3 = vld [vmem:[#allocation37_spill] sm:$0xff] }
 0x14c   : > { %3421 = vmatprep.mubr.f32.mxu0 %v3207_v13  ;;  %v2702_v27 = vadd.f32 %v6874_v21, %v2190_v10  ;;  %vm2932_vm11 = vcmp.eq.s32.totalorder %v5900_v5, %v7110_v17  ;;  %v4507_v51 = vsel %vm1911_vm8, 1.0, %v9766_v25  ;;  %v3208_v43 = vadd.f32 %v6717_v29, %v2696_v15  ;;  %v9881_v21 = vld [vmem:[#allocation69_spill] sm:$0xff] }
 0x14d   : > { %v3206_v30 = vadd.f32 %v6723_v12, %v2694_v33  ;;  %5255 = vset.pattern.permute.xlu1 %v9743_v22  ;;  %v7299_v46 = vsel %vm2961_vm5, 1.0, %v9766_v25  ;;  %vm890_vm12 = vcmp.eq.s32.totalorder %v5900_v5, %v7052_v40  ;;  %v4316_v59 = vsel %vm888_vm3, 1.0, %v9766_v25  ;;  %v7309_v12 = vpop.permute.xlu0 %1832 }
 0x14e   : > { %9880 = vst [vmem:[#allocation112_spill] sm:$0xff] %v7299_v46  ;;  %v3214_v29 = vadd.f32 %v7150_v14, %v2702_v27  ;;  %2862 = vperm.xlu1 %5255, %v9881_v21   ;;  %v7315_v10 = vsel %vm2962_vm1, 1.0, %v9766_v25  ;;  %v4317_v42 = vsel %vm889_vm7, 1.0, %v9766_v25  ;;  %v2188_v31 = vadd.f32 %v4496_v44, %v6538_v61  ;;  %4914 = vmatprep.mubr.f32.mxu1 %v3208_v43  ;;  %v7322_v14 = vpop.permute.xlu1 %2329  ;;  %v9888_v21 = vld [vmem:[#allocation29_spill] sm:$0xff] }
 0x14f   : > { %9882 = vst [vmem:[#allocation69_spill] sm:$0xff] %v7315_v10  ;;  %3422 = vmatmul.mubr.f32.vlgmr.msra.gmra.mrb[0].mxu0 %v3206_v30  ;;  %v2707_v49 = vadd.f32 %v4599_v55, %v7166_v53  ;;  %vm1910_vm15 = vcmp.eq.s32.totalorder %v5897_v32, %v7242_v26  ;;  %v2199_v16 = vadd.f32 %v4507_v51, %v6647_v11  ;;  %v4696_v61 = vsel %vm2932_vm11, 1.0, %v9766_v25  ;;  %v9887_v30 = vld [vmem:[#allocation74_spill] sm:$0xff] }
 0x150   : > { %4915 = vmatmul.mubr.f32.vlgmr.msra.gmra.mrb[0].mxu1 %v6931_v50  ;;  %3426 = vmatprep.mubr.f32.mxu0 %v6933_v38  ;;  %v2701_v2 = vadd.f32 %v6871_v9, %v2189_v8  ;;  %v4318_v53 = vsel %vm890_vm12, 1.0, %v9766_v25  ;;  %v1176_v55 = vadd.f32 %v4316_v59, %v9883_v3  ;;  %vm2930_vm10 = vcmp.eq.s32.totalorder %v5887_v18, %v7110_v17  ;;  %v9884_v38 = vld [vmem:[#allocation38_spill] sm:$0xff] }
 0x151   : > { %4917 = vmatprep.mubr.f32.mxu1 %v3214_v29  ;;  %v2706_v11 = vadd.f32 %v4598_v34, %v7164_v6  ;;  %v1177_v50 = vadd.f32 %v4317_v42, %v9884_v38  ;;  %vm2931_vm13 = vcmp.eq.s32.totalorder %v5897_v32, %v7110_v17  ;;  %vm1400_vm14 = vcmp.eq.s32.totalorder %v5887_v18, %v7147_v60  ;;  %v7350_v40 = vpop.permute.xlu0 %1841  ;;  %v9891_v38 = vld [vmem:[#allocation20_spill] sm:$0xff] }
 0x152   : > { %v3213_v9 = vadd.f32 %v7143_v37, %v2701_v2  ;;  %5256 = vset.pattern.permute.xlu1 %v9754_v20  ;;  %vm1909_vm0 = vcmp.eq.s32.totalorder %v5887_v18, %v7242_v26  ;;  %v4506_v6 = vsel %vm1910_vm15, 1.0, %v9766_v25  ;;  %v3220_v34 = vadd.f32 %v4696_v61, %v2708_v35 }
 0x153   : > { %3427 = vmatmul.mubr.f32.gmra.mrb[2].mxu0 %v6945_v52  ;;  %v2700_v56 = vadd.f32 %v6868_v57, %v2188_v31  ;;  %1332 = vperm.xlu1 %5256, %v9885_v23   ;;  %vm1401_vm4 = vcmp.eq.s32.totalorder %v5897_v32, %v7147_v60  ;;  %vm1402_vm9 = vcmp.eq.s32.totalorder %v5900_v5, %v7147_v60  ;;  %v7367_v13 = vpop.permute.xlu1 %1820  ;;  %v4694_v52 = vsel %vm2930_vm10, 1.0, %v9766_v25  ;;  %v9886_v57 = vld [vmem:[#allocation39_spill] sm:$0xff] }
 0x154   : > { %4918 = vmatmul.mubr.f32.gmra.mrb[2].mxu1 %v7245_v48  ;;  %3431 = vmatprep.mubr.f32.mxu0 %v3213_v9  ;;  %v2711_v37 = vadd.f32 %v6926_v7, %v2199_v16  ;;  %v1178_v15 = vadd.f32 %v4318_v53, %v9886_v57  ;;  %v4412_v33 = vsel %vm1400_vm14, 1.0, %v9766_v25  ;;  %v4695_v7 = vsel %vm2931_vm13, 1.0, %v9766_v25  ;;  %v9890_v53 = vld [vmem:[#allocation27_spill] sm:$0xff] }
 0x155   : > { %4920 = vmatprep.mubr.f32.mxu1 %v3220_v34  ;;  %v3212_v48 = vadd.f32 %v7129_v62, %v2700_v56  ;;  %vm1913_vm2 = vcmp.eq.s32.totalorder %v5897_v32, %v7237_v36  ;;  %v4505_v35 = vsel %vm1909_vm0, 1.0, %v9766_v25  ;;  %v2198_v44 = vadd.f32 %v4506_v6, %v6602_v24  ;;  %v7391_v27 = vpop.permute.xlu0 %1850 }
 0x156   : > { %v3223_v8 = vadd.f32 %v7162_v19, %v2711_v37  ;;  %vm2969_vm5 = vcmp.eq.s32.totalorder %v5887_v18, %v7054_v0  ;;  %v4413_v17 = vsel %vm1401_vm4, 1.0, %v9766_v25  ;;  %v4414_v62 = vsel %vm1402_vm9, 1.0, %v9766_v25  ;;  %v9892_v37 = vld [vmem:[#allocation106_spill] sm:$0xff] }
 0x157   : > { %vm1914_vm6 = vcmp.eq.s32.totalorder %v5900_v5, %v7237_v36  ;;  %3432 = vmatmul.mubr.f32.gmra.mrb[4].mxu0 %v3212_v48  ;;  %5257 = vset.pattern.permute.xlu1 %v9736_v45  ;;  %v3218_v24 = vadd.f32 %v4694_v52, %v2706_v11  ;;  %vm2970_vm1 = vcmp.eq.s32.totalorder %v5897_v32, %v7054_v0  ;;  %v7412_v60 = vadd.s32 250, %v6889_v47 }
 0x158   : > { %v1688_v19 = vadd.f32 %v4412_v33, %v1176_v55  ;;  %vm2425_vm8 = vcmp.eq.s32.totalorder %v5897_v32, %v7322_v14  ;;  %4921 = vmatmul.mubr.f32.gmra.mrb[4].mxu1 %v3223_v8  ;;  %3436 = vmatprep.mubr.f32.mxu0 %v7251_v63  ;;  %v3219_v26 = vadd.f32 %v4695_v7, %v2707_v49  ;;  %v4509_v51 = vsel %vm1913_vm2, 1.0, %v9766_v25  ;;  %v2842_v63 = vpop.permute.xlu1 %2841 }
 0x159   : > { %vm1912_vm3 = vcmp.eq.s32.totalorder %v5887_v18, %v7237_v36  ;;  %v2197_v43 = vadd.f32 %v4505_v35, %v6600_v54  ;;  %vm2426_vm7 = vcmp.eq.s32.totalorder %v5900_v5, %v7322_v14  ;;  %823 = vperm.xlu1 %5257, %v9887_v30   ;;  %v1689_v59 = vadd.f32 %v4413_v17, %v1177_v50  ;;  %v7429_v31 = vpop.permute.xlu0 %1859  ;;  %v7526_v30 = vld [vmem:[%s5494_s9 + $0xa8] sm:$0xff] }
 0x15a   : > { %v1690_v29 = vadd.f32 %v4414_v62, %v1178_v15  ;;  %v4510_v47 = vsel %vm1914_vm6, 1.0, %v9766_v25  ;;  %v2710_v42 = vadd.f32 %v9888_v21, %v2198_v44  ;;  %vm2424_vm11 = vcmp.eq.s32.totalorder %v5887_v18, %v7322_v14  ;;  %9898 = vst [vmem:[#allocation39_spill] sm:$0xff] %v7526_v30 }
 0x15b   : > { %v4605_v54 = vsel %vm2425_vm8, 1.0, %v9766_v25  ;;  %3437 = vmatmul.mubr.f32.gmra.mrb[6].mxu0 %v7257_v1  ;;  %vm2937_vm12 = vcmp.eq.s32.totalorder %v5897_v32, %v2842_v63  ;;  %vm2938_vm15 = vcmp.eq.s32.totalorder %v5900_v5, %v2842_v63  ;;  %vm891_vm10 = vcmp.eq.s32.totalorder %v5887_v18, %v7191_v28 }
 0x15c   : > { %v4508_v49 = vsel %vm1912_vm3, 1.0, %v9766_v25  ;;  %v2201_v16 = vadd.f32 %v4509_v51, %v1689_v59  ;;  %v4606_v2 = vsel %vm2426_vm7, 1.0, %v9766_v25  ;;  %3441 = vmatprep.mubr.f32.mxu0 %v3219_v26  ;;  %v2202_v1 = vadd.f32 %v4510_v47, %v1690_v29  ;;  %v9900_v59 = vld [vmem:[#allocation33_spill] sm:$0xff]  ;;  %v9901_v47 = vld [vmem:[#allocation34_spill] sm:$0xff] }
 0x15d   : > { %vm2936_vm13 = vcmp.eq.s32.totalorder %v5887_v18, %v2842_v63  ;;  %v9889_v61 = vmov 3   ;;  %v2709_v3 = vadd.f32 %v9890_v53, %v2197_v43  ;;  %v4701_v55 = vsel %vm2937_vm12, 1.0, %v9766_v25  ;;  %v7457_v50 = vpop.permute.xlu1 %2332  ;;  %v7462_v6 = vpop.permute.xlu0 %1868  ;;  %v9897_v43 = vld [vmem:[#allocation76_spill] sm:$0xff] }
 0x15e   : > { %5258 = vset.pattern.permute.xlu1 %v9889_v61  ;;  %v4604_v11 = vsel %vm2424_vm11, 1.0, %v9766_v25  ;;  %v3222_v36 = vadd.f32 %v7159_v4, %v2710_v42  ;;  %v2713_v14 = vadd.f32 %v4605_v54, %v2201_v16  ;;  %v4702_v9 = vsel %vm2938_vm15, 1.0, %v9766_v25  ;;  %v9902_v42 = vld [vmem:[#allocation36_spill] sm:$0xff] }
 0x15f   : > { %1844 = vperm.xlu1 %5258, %v9891_v38   ;;  %vm892_vm14 = vcmp.eq.s32.totalorder %v5897_v32, %v7191_v28  ;;  %vm893_vm0 = vcmp.eq.s32.totalorder %v5900_v5, %v7191_v28  ;;  %v2200_v34 = vadd.f32 %v4508_v49, %v1688_v19  ;;  %3442 = vmatmul.mubr.f32.gmra.mrb[8].mxu0 %v3218_v24  ;;  %v4700_v23 = vsel %vm2936_vm13, 1.0, %v9766_v25  ;;  %v9895_v28 = vld [vmem:[#allocation43_spill] sm:$0xff] }
 0x160   : > { %v2714_v4 = vadd.f32 %v4606_v2, %v2202_v1  ;;  %vm1403_vm4 = vcmp.eq.s32.totalorder %v5887_v18, %v7275_v41  ;;  %vm1404_vm9 = vcmp.eq.s32.totalorder %v5897_v32, %v7275_v41  ;;  %3446 = vmatprep.mubr.f32.mxu0 %v3222_v36  ;;  %v3225_v56 = vadd.f32 %v4701_v55, %v2713_v14  ;;  %v7551_v55 = vld [vmem:[%s5494_s9 + $0xb0] sm:$0xff] }
 0x161   : > { %vm1405_vm2 = vcmp.eq.s32.totalorder %v5900_v5, %v7275_v41  ;;  %v3221_v52 = vadd.f32 %v9892_v37, %v2709_v3  ;;  %v2712_v15 = vadd.f32 %v4604_v11, %v2200_v34  ;;  %v7482_v33 = vsel %vm2969_vm5, 1.0, %v9766_v25  ;;  %v7497_v44 = vpop.permute.xlu0 %1877  ;;  %9905 = vst [vmem:[#allocation20_spill] sm:$0xff] %v7551_v55 }
 0x162   : > { %v3226_v57 = vadd.f32 %v4702_v9, %v2714_v4  ;;  %9893 = vst [vmem:[#allocation37_spill] sm:$0xff] %v7482_v33  ;;  %v4319_v48 = vsel %vm891_vm10, 1.0, %v9766_v25  ;;  %v4320_v7 = vsel %vm892_vm14, 1.0, %v9766_v25  ;;  %v4321_v35 = vsel %vm893_vm0, 1.0, %v9766_v25  ;;  %v7507_v62 = vpop.permute.xlu1 %802  ;;  %v9908_v4 = vld [vmem:[#allocation77_spill] sm:$0xff] }
 0x163   : > { %5259 = vset.pattern.permute.xlu1 %v9754_v20  ;;  %v7503_v8 = vsel %vm2970_vm1, 1.0, %v9766_v25  ;;  %vm1916_vm5 = vcmp.eq.s32.totalorder %v5897_v32, %v7367_v13  ;;  %3447 = vmatmul.mubr.f32.gmra.mrb[10].mxu0 %v3221_v52  ;;  %v3224_v17 = vadd.f32 %v4700_v23, %v2712_v15  ;;  %v7510_v24 = vadd.s32 200, %v9895_v28 }
 0x164   : > { %9894 = vst [vmem:[#allocation38_spill] sm:$0xff] %v7503_v8  ;;  %4923 = vmatprep.mubr.f32.mxu1 %v3226_v57  ;;  %v4415_v19 = vsel %vm1403_vm4, 1.0, %v9766_v25  ;;  %v4416_v26 = vsel %vm1404_vm9, 1.0, %v9766_v25  ;;  %v4417_v51 = vsel %vm1405_vm2, 1.0, %v9766_v25  ;;  %3451 = vmatprep.mubr.f32.mxu0 %v3225_v56  ;;  %v7529_v63 = vadd.s32 50, %v7526_v30  ;;  %v9923_v8 = vld [vmem:[#allocation42_spill] sm:$0xff] }
 0x165   : > { %9896 = vst [vmem:[#allocation73_spill] sm:$0xff] %v7510_v24  ;;  %1335 = vperm.xlu1 %5259, %v9897_v43   ;;  %v1179_v29 = vadd.f32 %v4319_v48, %v9900_v59  ;;  %v1180_v21 = vadd.f32 %v4320_v7, %v9901_v47  ;;  %v1181_v54 = vadd.f32 %v4321_v35, %v9902_v42  ;;  %v4512_v41 = vsel %vm1916_vm5, 1.0, %v9766_v25  ;;  %v7548_v3 = vpop.permute.xlu0 %799  ;;  %v9943_v24 = vld [vmem:[#allocation67_spill] sm:$0xff] }
 0x166   : > { %9899 = vst [vmem:[#allocation74_spill] sm:$0xff] %v7529_v63  ;;  %vm2428_vm6 = vcmp.eq.s32.totalorder %v5897_v32, %v7457_v50  ;;  %vm1918_vm1 = vcmp.eq.s32.totalorder %v5887_v18, %v7277_v39  ;;  %v7543_v49 = vadd.s32 250, %v9895_v28  ;;  %v7546_v16 = vadd.s32 100, %v7526_v30 }
 0x167   : > { %v1691_v2 = vadd.f32 %v4415_v19, %v1179_v29  ;;  %v1692_v1 = vadd.f32 %v4416_v26, %v1180_v21  ;;  %v1693_v53 = vadd.f32 %v4417_v51, %v1181_v54  ;;  %3452 = vmatmul.mubr.f32.gmra.mrb[12].mxu0 %v3224_v17  ;;  %v7554_v11 = vadd.s32 50, %v7551_v55  ;;  %v2845_v14 = vpop.permute.xlu1 %2844  ;;  %v9911_v51 = vld [vmem:[#allocation84_spill] sm:$0xff] }
 0x168   : > { %9903 = vst [vmem:[#allocation29_spill] sm:$0xff] %v7543_v49  ;;  %9904 = vst [vmem:[#allocation27_spill] sm:$0xff] %v7546_v16  ;;  %vm1919_vm8 = vcmp.eq.s32.totalorder %v5897_v32, %v7277_v39  ;;  %vm1920_vm3 = vcmp.eq.s32.totalorder %v5900_v5, %v7277_v39  ;;  %vm1915_vm7 = vcmp.eq.s32.totalorder %v5887_v18, %v7367_v13  ;;  %v4608_v36 = vsel %vm2428_vm6, 1.0, %v9766_v25  ;;  %v9933_v49 = vld [vmem:[#allocation45_spill] sm:$0xff] }
 0x169   : > { %9906 = vst [vmem:[#allocation106_spill] sm:$0xff] %v7554_v11  ;;  %v9907_v38 = vmov 4   ;;  %v7568_v9 = vsel %vm1918_vm1, 1.0, %v9766_v25  ;;  %vm1917_vm11 = vcmp.eq.s32.totalorder %v5900_v5, %v7367_v13  ;;  %v2204_v34 = vadd.f32 %v4512_v41, %v1692_v1  ;;  %v7586_v13 = vpop.permute.xlu0 %808 }
 0x16a   : > { %5260 = vset.pattern.permute.xlu1 %v9907_v38  ;;  %v7574_v56 = vadd.s32 150, %v7526_v30  ;;  %vm1927_vm12 = vcmp.eq.s32.totalorder %v5887_v18, %v7309_v12  ;;  %vm1928_vm15 = vcmp.eq.s32.totalorder %v5897_v32, %v7309_v12  ;;  %vm2427_vm10 = vcmp.eq.s32.totalorder %v5887_v18, %v7457_v50 }
 0x16b   : > { %2356 = vperm.xlu1 %5260, %v9908_v4   ;;  %vm2940_vm13 = vcmp.eq.s32.totalorder %v5897_v32, %v2845_v14  ;;  %v4511_v23 = vsel %vm1915_vm7, 1.0, %v9766_v25  ;;  %vm2429_vm14 = vcmp.eq.s32.totalorder %v5900_v5, %v7457_v50  ;;  %v2716_v37 = vadd.f32 %v4608_v36, %v2204_v34 }
 0x16c   : > { %9909 = vst [vmem:[#allocation43_spill] sm:$0xff] %v7574_v56  ;;  %v4704_v52 = vsel %vm2940_vm13, 1.0, %v9766_v25  ;;  %v7593_v57 = vsel %vm1919_vm8, 1.0, %v9766_v25  ;;  %vm1929_vm0 = vcmp.eq.s32.totalorder %v5900_v5, %v7309_v12  ;;  %v4513_v15 = vsel %vm1917_vm11, 1.0, %v9766_v25  ;;  %v7610_v17 = vpop.permute.xlu1 %1314 }
 0x16d   : > { %vm2939_vm4 = vcmp.eq.s32.totalorder %v5887_v18, %v2845_v14  ;;  %v7603_v48 = vsel %vm1920_vm3, 1.0, %v9766_v25  ;;  %v7606_v7 = vsel %vm1927_vm12, 1.0, %v9766_v25  ;;  %v4607_v35 = vsel %vm2427_vm10, 1.0, %v9766_v25  ;;  %v7632_v29 = vpop.permute.xlu0 %817 }
 0x16e   : > { %9910 = vst [vmem:[#allocation76_spill] sm:$0xff] %v7606_v7  ;;  %v3228_v28 = vadd.f32 %v4704_v52, %v2716_v37  ;;  %v7616_v19 = vsel %vm1928_vm15, 1.0, %v9766_v25  ;;  %vm1936_vm9 = vcmp.eq.s32.totalorder %v5887_v18, %v7350_v40  ;;  %v2203_v39 = vadd.f32 %v4511_v23, %v1691_v2  ;;  %v9942_v7 = vld [vmem:[#allocation66_spill] sm:$0xff] }
 0x16f   : > { %5261 = vset.pattern.permute.xlu1 %v9889_v61  ;;  %v4609_v26 = vsel %vm2429_vm14, 1.0, %v9766_v25  ;;  %v7626_v43 = vsel %vm1929_vm0, 1.0, %v9766_v25  ;;  %v2205_v59 = vadd.f32 %v4513_v15, %v1693_v53  ;;  %vm2941_vm2 = vcmp.eq.s32.totalorder %v5900_v5, %v2845_v14  ;;  %v9915_v53 = vld [vmem:[#allocation88_spill] sm:$0xff] }
 0x170   : > { %1847 = vperm.xlu1 %5261, %v9911_v51   ;;  %3456 = vmatprep.mubr.f32.mxu0 %v3228_v28  ;;  %v4703_v12 = vsel %vm2939_vm4, 1.0, %v9766_v25  ;;  %vm1937_vm5 = vcmp.eq.s32.totalorder %v5897_v32, %v7350_v40  ;;  %vm1938_vm6 = vcmp.eq.s32.totalorder %v5900_v5, %v7350_v40  ;;  %vm1954_vm1 = vcmp.eq.s32.totalorder %v5887_v18, %v7429_v31  ;;  %v9916_v28 = vld [vmem:[#allocation81_spill] sm:$0xff] }
 0x171   : > { %v2715_v50 = vadd.f32 %v4607_v35, %v2203_v39  ;;  %v7641_v47 = vsel %vm1936_vm9, 1.0, %v9766_v25  ;;  %vm1955_vm8 = vcmp.eq.s32.totalorder %v5897_v32, %v7429_v31  ;;  %vm1956_vm3 = vcmp.eq.s32.totalorder %v5900_v5, %v7429_v31  ;;  %v7653_v54 = vpop.permute.xlu1 %805  ;;  %v7665_v36 = vpop.permute.xlu0 %826 }
 0x172   : > { %9912 = vst [vmem:[#allocation33_spill] sm:$0xff] %v7641_v47  ;;  %v2717_v21 = vadd.f32 %v4609_v26, %v2205_v59  ;;  %vm894_vm7 = vcmp.eq.s32.totalorder %v5887_v18, %v7548_v3  ;;  %vm895_vm11 = vcmp.eq.s32.totalorder %v5897_v32, %v7548_v3  ;;  %v4705_v40 = vsel %vm2941_vm2, 1.0, %v9766_v25  ;;  %v9917_v26 = vld [vmem:[#allocation82_spill] sm:$0xff]  ;;  %v9918_v59 = vld [vmem:[#allocation24_spill] sm:$0xff] }
 0x173   : > { %v3227_v42 = vadd.f32 %v4703_v12, %v2715_v50  ;;  %v7656_v41 = vsel %vm1937_vm5, 1.0, %v9766_v25  ;;  %v7659_v2 = vsel %vm1938_vm6, 1.0, %v9766_v25  ;;  %v7662_v31 = vsel %vm1954_vm1, 1.0, %v9766_v25 }
 0x174   : > { %5262 = vset.pattern.permute.xlu1 %v9743_v22  ;;  %9913 = vst [vmem:[#allocation34_spill] sm:$0xff] %v7656_v41  ;;  %9914 = vst [vmem:[#allocation36_spill] sm:$0xff] %v7659_v2  ;;  %v3229_v1 = vadd.f32 %v4705_v40, %v2717_v21  ;;  %v7668_v14 = vsel %vm1955_vm8, 1.0, %v9766_v25  ;;  %v7671_v34 = vsel %vm1956_vm3, 1.0, %v9766_v25  ;;  %vm897_vm12 = vcmp.eq.s32.totalorder %v5887_v18, %v7507_v62  ;;  %v9932_v41 = vld [vmem:[#allocation95_spill] sm:$0xff] }
 0x175   : > { %2868 = vperm.xlu1 %5262, %v9915_v53   ;;  %vm898_vm15 = vcmp.eq.s32.totalorder %v5897_v32, %v7507_v62  ;;  %3457 = vmatmul.mubr.f32.gmra.mrb[14].mxu0 %v3227_v42  ;;  %vm1963_vm10 = vcmp.eq.s32.totalorder %v5887_v18, %v7462_v6  ;;  %vm896_vm13 = vcmp.eq.s32.totalorder %v5900_v5, %v7548_v3  ;;  %v4322_v4 = vsel %vm894_vm7, 1.0, %v9766_v25  ;;  %v7704_v52 = vpop.permute.xlu0 %835 }
 0x176   : > { %v4323_v23 = vsel %vm895_vm11, 1.0, %v9766_v25  ;;  %4924 = vmatmul.mubr.f32.gmra.mrb[6].mxu1 %v3229_v1  ;;  %vm1964_vm14 = vcmp.eq.s32.totalorder %v5897_v32, %v7462_v6  ;;  %vm1965_vm0 = vcmp.eq.s32.totalorder %v5900_v5, %v7462_v6  ;;  %vm1972_vm4 = vcmp.eq.s32.totalorder %v5887_v18, %v7497_v44  ;;  %v7706_v15 = vpop.permute.xlu1 %1826 }
 0x177   : > { %vm899_vm9 = vcmp.eq.s32.totalorder %v5900_v5, %v7507_v62  ;;  %vm1973_vm2 = vcmp.eq.s32.totalorder %v5897_v32, %v7497_v44  ;;  %vm1974_vm5 = vcmp.eq.s32.totalorder %v5900_v5, %v7497_v44  ;;  %v4325_v3 = vsel %vm897_vm12, 1.0, %v9766_v25  ;;  %v9920_v62 = vld [vmem:[#allocation40_spill] sm:$0xff]  ;;  %v9925_v44 = vld [vmem:[#allocation10_spill] sm:$0xff] }
 0x178   : > { %v4326_v37 = vsel %vm898_vm15, 1.0, %v9766_v25  ;;  %v4324_v35 = vsel %vm896_vm13, 1.0, %v9766_v25  ;;  %v1182_v39 = vadd.f32 %v4322_v4, %v9916_v28  ;;  %v1183_v51 = vadd.f32 %v4323_v23, %v9917_v26  ;;  %v9921_v4 = vld [vmem:[#allocation41_spill] sm:$0xff]  ;;  %v9922_v28 = vld [vmem:[#allocation83_spill] sm:$0xff] }
 0x179   : > { %5263 = vset.pattern.permute.xlu1 %v9907_v38  ;;  %vm904_vm6 = vcmp.eq.s32.totalorder %v5897_v32, %v7586_v13  ;;  %v7718_v12 = vsel %vm1963_vm10, 1.0, %v9766_v25  ;;  %v7724_v50 = vsel %vm1964_vm14, 1.0, %v9766_v25  ;;  %v7730_v21 = vsel %vm1965_vm0, 1.0, %v9766_v25  ;;  %v7760_v33 = vpop.permute.xlu0 %844 }
 0x17a   : > { %2359 = vperm.xlu1 %5263, %v9918_v59   ;;  %v4327_v40 = vsel %vm899_vm9, 1.0, %v9766_v25  ;;  %v7740_v42 = vsel %vm1972_vm4, 1.0, %v9766_v25  ;;  %v7746_v1 = vsel %vm1973_vm2, 1.0, %v9766_v25  ;;  %v7752_v6 = vsel %vm1974_vm5, 1.0, %v9766_v25 }
 0x17b   : > { %9919 = vst [vmem:[#allocation77_spill] sm:$0xff] %v7752_v6  ;;  %vm903_vm1 = vcmp.eq.s32.totalorder %v5887_v18, %v7586_v13  ;;  %v1185_v53 = vadd.f32 %v4325_v3, %v9920_v62  ;;  %v1186_v23 = vadd.f32 %v4326_v37, %v9921_v4  ;;  %v1184_v26 = vadd.f32 %v4324_v35, %v9922_v28  ;;  %v7772_v3 = vpop.permute.xlu1 %1317 }
 0x17c   : > { %v4332_v59 = vsel %vm904_vm6, 1.0, %v9766_v25  ;;  %v1187_v30 = vadd.f32 %v4327_v40, %v9923_v8  ;;  %v7764_v46 = vadd.f32 %v9924_v58, %v1182_v39  ;;  %v7767_v10 = vadd.f32 %v9925_v44, %v1183_v51  ;;  %v9926_v58 = vld [vmem:[#allocation25_spill] sm:$0xff]  ;;  %v9927_v8 = vld [vmem:[#allocation51_spill] sm:$0xff] }
 0x17d   : > { %vm905_vm8 = vcmp.eq.s32.totalorder %v5900_v5, %v7586_v13  ;;  %v4331_v37 = vsel %vm903_vm1, 1.0, %v9766_v25  ;;  %vm1409_vm3 = vcmp.eq.s32.totalorder %v5887_v18, %v7610_v17  ;;  %vm1410_vm7 = vcmp.eq.s32.totalorder %v5897_v32, %v7610_v17  ;;  %v9928_v13 = vld [vmem:[#allocation75_spill] sm:$0xff] }
 0x17e   : > { %5264 = vset.pattern.permute.xlu1 %v9736_v45  ;;  %vm1411_vm11 = vcmp.eq.s32.totalorder %v5900_v5, %v7610_v17  ;;  %v1192_v35 = vadd.f32 %v4332_v59, %v9927_v8  ;;  %vm900_vm12 = vcmp.eq.s32.totalorder %v5887_v18, %v7653_v54  ;;  %vm901_vm15 = vcmp.eq.s32.totalorder %v5897_v32, %v7653_v54  ;;  %v7797_v17 = vpop.permute.xlu0 %853  ;;  %v9929_v40 = vld [vmem:[#allocation47_spill] sm:$0xff] }
 0x17f   : > { %829 = vperm.xlu1 %5264, %v9926_v58   ;;  %vm902_vm10 = vcmp.eq.s32.totalorder %v5900_v5, %v7653_v54  ;;  %v7790_v39 = vadd.f32 %v9928_v13, %v1184_v26  ;;  %v4333_v51 = vsel %vm905_vm8, 1.0, %v9766_v25  ;;  %vm930_vm13 = vcmp.eq.s32.totalorder %v5887_v18, %v7704_v52  ;;  %v9931_v13 = vld [vmem:[#allocation79_spill] sm:$0xff] }
 0x180   : > { %vm931_vm14 = vcmp.eq.s32.totalorder %v5897_v32, %v7704_v52  ;;  %v7800_v62 = vadd.f32 %v4331_v37, %v9929_v40  ;;  %v4421_v4 = vsel %vm1409_vm3, 1.0, %v9766_v25  ;;  %v4422_v54 = vsel %vm1410_vm7, 1.0, %v9766_v25  ;;  %v7811_v58 = vpop.permute.xlu1 %2338  ;;  %v9930_v37 = vld [vmem:[#allocation53_spill] sm:$0xff] }
 0x181   : > { %v4423_v28 = vsel %vm1411_vm11, 1.0, %v9766_v25  ;;  %v4328_v26 = vsel %vm900_vm12, 1.0, %v9766_v25  ;;  %v4329_v59 = vsel %vm901_vm15, 1.0, %v9766_v25  ;;  %v4330_v44 = vsel %vm902_vm10, 1.0, %v9766_v25 }
 0x182   : > { %vm932_vm0 = vcmp.eq.s32.totalorder %v5900_v5, %v7704_v52  ;;  %v7814_v8 = vadd.f32 %v4333_v51, %v9930_v37  ;;  %v7817_v40 = vadd.f32 %v9931_v13, %v1192_v35  ;;  %v4358_v56 = vsel %vm930_vm13, 1.0, %v9766_v25  ;;  %v7824_v16 = vpop.permute.xlu0 %862  ;;  %v9934_v37 = vld [vmem:[#allocation46_spill] sm:$0xff]  ;;  %v9935_v35 = vld [vmem:[#allocation48_spill] sm:$0xff] }
 0x183   : > { %5265 = vset.pattern.permute.xlu1 %v9743_v22  ;;  %v4359_v47 = vsel %vm931_vm14, 1.0, %v9766_v25  ;;  %v1697_v2 = vadd.f32 %v4421_v4, %v1185_v53  ;;  %v1698_v11 = vadd.f32 %v4422_v54, %v1186_v23  ;;  %v1699_v0 = vadd.f32 %v4423_v28, %v1187_v30  ;;  %v9937_v23 = vld [vmem:[#allocation90_spill] sm:$0xff] }
 0x184   : > { %2871 = vperm.xlu1 %5265, %v9932_v41   ;;  %vm1921_vm4 = vcmp.eq.s32.totalorder %v5887_v18, %v7706_v15  ;;  %v1188_v51 = vadd.f32 %v4328_v26, %v9933_v49  ;;  %v1189_v55 = vadd.f32 %v4329_v59, %v9934_v37  ;;  %v1190_v13 = vadd.f32 %v4330_v44, %v9935_v35  ;;  %v9936_v41 = vld [vmem:[#allocation89_spill] sm:$0xff] }
 0x185   : > { %v4360_v63 = vsel %vm932_vm0, 1.0, %v9766_v25  ;;  %v1218_v53 = vadd.f32 %v4358_v56, %v9936_v41  ;;  %v1219_v30 = vadd.f32 %v4359_v47, %v9937_v23  ;;  %vm1922_vm9 = vcmp.eq.s32.totalorder %v5897_v32, %v7706_v15  ;;  %v7847_v56 = vpop.permute.xlu1 %1829  ;;  %v9938_v47 = vld [vmem:[#allocation26_spill] sm:$0xff] }
 0x186   : > { %vm1923_vm2 = vcmp.eq.s32.totalorder %v5900_v5, %v7706_v15  ;;  %v4517_v49 = vsel %vm1921_vm4, 1.0, %v9766_v25  ;;  %vm939_vm5 = vcmp.eq.s32.totalorder %v5887_v18, %v7760_v33  ;;  %vm940_vm6 = vcmp.eq.s32.totalorder %v5897_v32, %v7760_v33  ;;  %v9939_v15 = vld [vmem:[#allocation96_spill] sm:$0xff] }
 0x187   : > { %vm941_vm1 = vcmp.eq.s32.totalorder %v5900_v5, %v7760_v33  ;;  %v1220_v52 = vadd.f32 %v4360_v63, %v9938_v47  ;;  %vm1412_vm8 = vcmp.eq.s32.totalorder %v5887_v18, %v7772_v3  ;;  %vm1413_vm3 = vcmp.eq.s32.totalorder %v5897_v32, %v7772_v3  ;;  %v7863_v63 = vpop.permute.xlu0 %1338  ;;  %v9941_v47 = vld [vmem:[#allocation65_spill] sm:$0xff] }
 0x188   : > { %5266 = vset.pattern.permute.xlu1 %v9754_v20  ;;  %vm1414_vm7 = vcmp.eq.s32.totalorder %v5900_v5, %v7772_v3  ;;  %v4518_v4 = vsel %vm1922_vm9, 1.0, %v9766_v25  ;;  %v4519_v54 = vsel %vm1923_vm2, 1.0, %v9766_v25  ;;  %vm948_vm11 = vcmp.eq.s32.totalorder %v5887_v18, %v7797_v17  ;;  %9940 = vst [vmem:[#allocation84_spill] sm:$0xff] %v7863_v63 }
 0x189   : > { %1341 = vperm.xlu1 %5266, %v9939_v15   ;;  %vm949_vm12 = vcmp.eq.s32.totalorder %v5897_v32, %v7797_v17  ;;  %v7865_v28 = vadd.f32 %v4517_v49, %v1697_v2  ;;  %v4367_v3 = vsel %vm939_vm5, 1.0, %v9766_v25  ;;  %v4368_v26 = vsel %vm940_vm6, 1.0, %v9766_v25 }
 0x18a   : > { %v4369_v59 = vsel %vm941_vm1, 1.0, %v9766_v25  ;;  %v4424_v44 = vsel %vm1412_vm8, 1.0, %v9766_v25  ;;  %v4425_v2 = vsel %vm1413_vm3, 1.0, %v9766_v25  ;;  %v4426_v37 = vsel %vm1414_vm7, 1.0, %v9766_v25  ;;  %v7891_v33 = vpop.permute.xlu1 %2850 }
 0x18b   : > { %vm950_vm15 = vcmp.eq.s32.totalorder %v5900_v5, %v7797_v17  ;;  %v7884_v35 = vadd.f32 %v4518_v4, %v1698_v11  ;;  %v7886_v41 = vadd.f32 %v4519_v54, %v1699_v0  ;;  %v4376_v23 = vsel %vm948_vm11, 1.0, %v9766_v25  ;;  %v9944_v0 = vld [vmem:[#allocation44_spill] sm:$0xff]  ;;  %v1348_v11 = vpop.permute.xlu0 %1347 }
 0x18c   : > { %v4377_v49 = vsel %vm949_vm12, 1.0, %v9766_v25  ;;  %v7894_v15 = vadd.f32 %v4367_v3, %v9941_v47  ;;  %v7897_v63 = vadd.f32 %v4368_v26, %v9942_v7  ;;  %v7900_v6 = vadd.f32 %v4369_v59, %v9943_v24  ;;  %v9945_v24 = vld [vmem:[#allocation28_spill] sm:$0xff]  ;;  %v9946_v26 = vld [vmem:[#allocation91_spill] sm:$0xff] }
 0x18d   : > { %5267 = vset.pattern.permute.xlu1 %v9736_v45  ;;  %vm2433_vm10 = vcmp.eq.s32.totalorder %v5887_v18, %v7811_v58  ;;  %v7905_v4 = vadd.f32 %v4424_v44, %v1188_v51  ;;  %v7907_v54 = vadd.f32 %v4425_v2, %v1189_v55  ;;  %v7909_v45 = vadd.f32 %v4426_v37, %v1190_v13 }
 0x18e   : > { %832 = vperm.xlu1 %5267, %v9944_v0   ;;  %v7915_v7 = vsel %vm950_vm15, 1.0, %v9766_v25  ;;  %v7918_v3 = vadd.f32 %v4376_v23, %v9945_v24  ;;  %v7921_v59 = vadd.f32 %v4377_v49, %v9946_v26  ;;  %vm2434_vm13 = vcmp.eq.s32.totalorder %v5897_v32, %v7811_v58  ;;  %v9947_v0 = vld [vmem:[#allocation103_spill] sm:$0xff] }
 0x18f   : > { %vm1442_vm14 = vcmp.eq.s32.totalorder %v5887_v18, %v1348_v11  ;;  %vm2435_vm0 = vcmp.eq.s32.totalorder %v5900_v5, %v7811_v58  ;;  %v4613_v55 = vsel %vm2433_vm10, 1.0, %v9766_v25  ;;  %vm1443_vm4 = vcmp.eq.s32.totalorder %v5897_v32, %v1348_v11  ;;  %v1357_v44 = vpop.permute.xlu0 %1356  ;;  %v7937_v2 = vpop.permute.xlu1 %2341 }
 0x190   : > { %vm1444_vm9 = vcmp.eq.s32.totalorder %v5900_v5, %v1348_v11  ;;  %vm957_vm2 = vcmp.eq.s32.totalorder %v5887_v18, %v7824_v16  ;;  %v4454_v17 = vsel %vm1442_vm14, 1.0, %v9766_v25  ;;  %v4455_v51 = vsel %vm1443_vm4, 1.0, %v9766_v25 }
 0x191   : > { %v4456_v13 = vsel %vm1444_vm9, 1.0, %v9766_v25  ;;  %v1730_v37 = vadd.f32 %v4454_v17, %v1218_v53  ;;  %v1731_v23 = vadd.f32 %v4455_v51, %v1219_v30  ;;  %v2207_v47 = vadd.f32 %v7593_v57, %v7767_v10  ;;  %v9948_v57 = vld [vmem:[#allocation92_spill] sm:$0xff] }
 0x192   : > { %5268 = vset.pattern.permute.xlu1 %v9889_v61  ;;  %v1732_v49 = vadd.f32 %v4456_v13, %v1220_v52  ;;  %vm958_vm5 = vcmp.eq.s32.totalorder %v5897_v32, %v7824_v16  ;;  %vm959_vm6 = vcmp.eq.s32.totalorder %v5900_v5, %v7824_v16  ;;  %v2206_v11 = vadd.f32 %v7568_v9, %v7764_v46  ;;  %v9949_v9 = vld [vmem:[#allocation35_spill] sm:$0xff]  ;;  %v9951_v17 = vld [vmem:[#allocation108_spill] sm:$0xff] }
 0x193   : > { %1853 = vperm.xlu1 %5268, %v9947_v0   ;;  %v2208_v24 = vadd.f32 %v7603_v48, %v7790_v39  ;;  %v7951_v53 = vadd.f32 %v7662_v31, %v1730_v37  ;;  %v7954_v30 = vadd.f32 %v7668_v14, %v1731_v23  ;;  %v2719_v52 = vadd.f32 %v9948_v57, %v2207_v47  ;;  %v9950_v31 = vld [vmem:[#allocation93_spill] sm:$0xff]  ;;  %v7979_v58 = vpop.permute.xlu0 %1365 }
 0x194   : > { %v7957_v10 = vadd.f32 %v7671_v34, %v1732_v49  ;;  %v4614_v26 = vsel %vm2434_vm13, 1.0, %v9766_v25  ;;  %v4615_v46 = vsel %vm2435_vm0, 1.0, %v9766_v25  ;;  %v2718_v48 = vadd.f32 %v9949_v9, %v2206_v11  ;;  %v7981_v13 = vpop.permute.xlu1 %811  ;;  %v9952_v23 = vld [vmem:[#allocation61_spill] sm:$0xff]  ;;  %v9954_v11 = vld [vmem:[#allocation104_spill] sm:$0xff] }
 0x195   : > { %v2720_v14 = vadd.f32 %v9950_v31, %v2208_v24  ;;  %v4385_v34 = vsel %vm957_vm2, 1.0, %v9766_v25  ;;  %v4386_v39 = vsel %vm958_vm5, 1.0, %v9766_v25  ;;  %vm2946_vm1 = vcmp.eq.s32.totalorder %v5897_v32, %v7891_v33  ;;  %v9953_v47 = vld [vmem:[#allocation109_spill] sm:$0xff] }
 0x196   : > { %v3231_v51 = vadd.f32 %v9951_v17, %v2719_v52  ;;  %v4387_v37 = vsel %vm959_vm6, 1.0, %v9766_v25  ;;  %vm2947_vm8 = vcmp.eq.s32.totalorder %v5900_v5, %v7891_v33  ;;  %v3230_v49 = vadd.f32 %v9952_v23, %v2718_v48  ;;  %v9957_v23 = vld [vmem:[#allocation70_spill] sm:$0xff] }
 0x197   : > { %5269 = vset.pattern.permute.xlu1 %v9754_v20  ;;  %v3232_v0 = vadd.f32 %v9953_v47, %v2720_v14  ;;  %vm2945_vm3 = vcmp.eq.s32.totalorder %v5887_v18, %v7891_v33  ;;  %vm1451_vm7 = vcmp.eq.s32.totalorder %v5887_v18, %v1357_v44  ;;  %vm1452_vm11 = vcmp.eq.s32.totalorder %v5897_v32, %v1357_v44  ;;  %v1375_v17 = vpop.permute.xlu0 %1374  ;;  %v9958_v47 = vld [vmem:[#allocation71_spill] sm:$0xff] }
 0x198   : > { %1344 = vperm.xlu1 %5269, %v9954_v11   ;;  %3461 = vmatprep.mubr.f32.mxu0 %v3231_v51  ;;  %v2722_v16 = vadd.f32 %v4614_v26, %v7884_v35  ;;  %vm1924_vm12 = vcmp.eq.s32.totalorder %v5887_v18, %v7847_v56  ;;  %vm1925_vm15 = vcmp.eq.s32.totalorder %v5897_v32, %v7847_v56  ;;  %v4710_v24 = vsel %vm2946_vm1, 1.0, %v9766_v25  ;;  %v9956_v51 = vld [vmem:[#allocation59_spill] sm:$0xff] }
 0x199   : > { %3462 = vmatmul.mubr.f32.gmra.mrb[16].mxu0 %v3230_v49  ;;  %4926 = vmatprep.mubr.f32.mxu1 %v3232_v0  ;;  %vm1453_vm10 = vcmp.eq.s32.totalorder %v5900_v5, %v1357_v44  ;;  %v2723_v52 = vadd.f32 %v4615_v46, %v7886_v41  ;;  %v4711_v35 = vsel %vm2947_vm8, 1.0, %v9766_v25  ;;  %v2721_v26 = vadd.f32 %v4613_v55, %v7865_v28  ;;  %v8021_v41 = vpop.permute.xlu1 %2853  ;;  %v9955_v46 = vld [vmem:[#allocation94_spill] sm:$0xff]  ;;  %v9959_v0 = vld [vmem:[#allocation72_spill] sm:$0xff] }
 0x19a   : > { %v3234_v57 = vadd.f32 %v4710_v24, %v2722_v16  ;;  %vm1926_vm13 = vcmp.eq.s32.totalorder %v5900_v5, %v7847_v56  ;;  %v4463_v44 = vsel %vm1451_vm7, 1.0, %v9766_v25  ;;  %v4464_v9 = vsel %vm1452_vm11, 1.0, %v9766_v25 }
 0x19b   : > { %v4709_v48 = vsel %vm2945_vm3, 1.0, %v9766_v25  ;;  %v1238_v31 = vadd.f32 %v7915_v7, %v9955_v46  ;;  %v4465_v28 = vsel %vm1453_vm10, 1.0, %v9766_v25  ;;  %v3235_v55 = vadd.f32 %v4711_v35, %v2723_v52 }
 0x19c   : > { %5270 = vset.pattern.permute.xlu1 %v9907_v38  ;;  %3466 = vmatprep.mubr.f32.mxu0 %v3234_v57  ;;  %v3233_v14 = vadd.f32 %v4709_v48, %v2721_v26  ;;  %v1245_v49 = vadd.f32 %v4385_v34, %v9957_v23  ;;  %v1246_v33 = vadd.f32 %v4386_v39, %v9958_v47  ;;  %v4520_v16 = vsel %vm1924_vm12, 1.0, %v9766_v25  ;;  %v9960_v57 = vld [vmem:[#allocation107_spill] sm:$0xff]  ;;  %v9962_v47 = vld [vmem:[#allocation78_spill] sm:$0xff] }
 0x19d   : > { %2365 = vperm.xlu1 %5270, %v9956_v51   ;;  %v1247_v11 = vadd.f32 %v4387_v37, %v9959_v0  ;;  %v4521_v7 = vsel %vm1925_vm15, 1.0, %v9766_v25  ;;  %v4522_v24 = vsel %vm1926_vm13, 1.0, %v9766_v25  ;;  %v1739_v34 = vadd.f32 %v4463_v44, %v7894_v15  ;;  %4927 = vmatmul.mubr.f32.gmra.mrb[8].mxu1 %v3235_v55 }
 0x19e   : > { %v1740_v39 = vadd.f32 %v4464_v9, %v7897_v63  ;;  %3467 = vmatmul.mubr.f32.gmra.mrb[18].mxu0 %v3233_v14  ;;  %v1741_v37 = vadd.f32 %v4465_v28, %v7900_v6  ;;  %vm2436_vm14 = vcmp.eq.s32.totalorder %v5887_v18, %v7937_v2  ;;  %vm2437_vm0 = vcmp.eq.s32.totalorder %v5897_v32, %v7937_v2  ;;  %v8057_v6 = vpop.permute.xlu1 %1323  ;;  %v9961_v28 = vld [vmem:[#allocation80_spill] sm:$0xff] }
 0x19f   : > { %vm1469_vm4 = vcmp.eq.s32.totalorder %v5887_v18, %v1375_v17  ;;  %vm1460_vm9 = vcmp.eq.s32.totalorder %v5887_v18, %v7979_v58  ;;  %vm1461_vm2 = vcmp.eq.s32.totalorder %v5897_v32, %v7979_v58  ;;  %vm1470_vm5 = vcmp.eq.s32.totalorder %v5897_v32, %v1375_v17 }
 0x1a0   : > { %vm1471_vm6 = vcmp.eq.s32.totalorder %v5900_v5, %v1375_v17  ;;  %vm1462_vm1 = vcmp.eq.s32.totalorder %v5900_v5, %v7979_v58  ;;  %v4481_v56 = vsel %vm1469_vm4, 1.0, %v9766_v25  ;;  %v4482_v63 = vsel %vm1470_vm5, 1.0, %v9766_v25 }
 0x1a1   : > { %5271 = vset.pattern.permute.xlu1 %v9889_v61  ;;  %v4483_v15 = vsel %vm1471_vm6, 1.0, %v9766_v25  ;;  %vm2438_vm8 = vcmp.eq.s32.totalorder %v5900_v5, %v7937_v2  ;;  %v8067_v52 = vadd.f32 %v4481_v56, %v1245_v49  ;;  %v8069_v35 = vadd.f32 %v4482_v63, %v1246_v33  ;;  %v9966_v56 = vld [vmem:[#allocation73_spill] sm:$0xff]  ;;  %v9967_v63 = vld [vmem:[#allocation84_spill] sm:$0xff] }
 0x1a2   : > { %1856 = vperm.xlu1 %5271, %v9960_v57   ;;  %v8071_v26 = vadd.f32 %v4483_v15, %v1247_v11  ;;  %v4472_v44 = vsel %vm1460_vm9, 1.0, %v9766_v25  ;;  %v8075_v9 = vadd.f32 %v7718_v12, %v1739_v34  ;;  %v8078_v48 = vadd.f32 %v7724_v50, %v1740_v39  ;;  %v9963_v39 = vld [vmem:[#allocation77_spill] sm:$0xff]  ;;  %v9968_v57 = vld [vmem:[#allocation62_spill] sm:$0xff] }
 0x1a3   : > { %v8081_v46 = vadd.f32 %v7730_v21, %v1741_v37  ;;  %v1705_v55 = vadd.f32 %v9961_v28, %v7814_v8  ;;  %v4617_v14 = vsel %vm2437_vm0, 1.0, %v9766_v25  ;;  %v4473_v12 = vsel %vm1461_vm2, 1.0, %v9766_v25  ;;  %v8103_v51 = vpop.permute.xlu1 %814  ;;  %v9969_v28 = vld [vmem:[#allocation111_spill] sm:$0xff] }
 0x1a4   : > { %v4474_v50 = vsel %vm1462_vm1, 1.0, %v9766_v25  ;;  %v2212_v21 = vadd.f32 %v4520_v16, %v7905_v4  ;;  %v2213_v17 = vadd.f32 %v4521_v7, %v7907_v54  ;;  %v2214_v8 = vadd.f32 %v4522_v24, %v7909_v45 }
 0x1a5   : > { %vm2949_vm3 = vcmp.eq.s32.totalorder %v5897_v32, %v8021_v41  ;;  %vm1945_vm7 = vcmp.eq.s32.totalorder %v5887_v18, %v7391_v27  ;;  %v4616_v58 = vsel %vm2436_vm14, 1.0, %v9766_v25  ;;  %v4618_v45 = vsel %vm2438_vm8, 1.0, %v9766_v25 }
 0x1a6   : > { %5272 = vset.pattern.permute.xlu1 %v9743_v22  ;;  %v1748_v4 = vadd.f32 %v4472_v44, %v7918_v3  ;;  %vm2950_vm11 = vcmp.eq.s32.totalorder %v5900_v5, %v8021_v41  ;;  %v1749_v54 = vadd.f32 %v4473_v12, %v7921_v59  ;;  %v1750_v23 = vadd.f32 %v4474_v50, %v1238_v31 }
 0x1a7   : > { %2877 = vperm.xlu1 %5272, %v7412_v60   ;;  %vm2948_vm12 = vcmp.eq.s32.totalorder %v5887_v18, %v8021_v41  ;;  %v2725_v49 = vadd.f32 %v4617_v14, %v2213_v17  ;;  %v1703_v33 = vadd.f32 %v9962_v47, %v7800_v62  ;;  %vm912_vm15 = vcmp.eq.s32.totalorder %v5887_v18, %v7632_v29  ;;  %v9974_v47 = vld [vmem:[#allocation22_spill] sm:$0xff] }
 0x1a8   : > { %vm921_vm10 = vcmp.eq.s32.totalorder %v5887_v18, %v7665_v36  ;;  %v4713_v60 = vsel %vm2949_vm3, 1.0, %v9766_v25  ;;  %v2726_v59 = vadd.f32 %v4618_v45, %v2214_v8  ;;  %v4714_v2 = vsel %vm2950_vm11, 1.0, %v9766_v25  ;;  %v8141_v7 = vpop.permute.xlu1 %1835 }
 0x1a9   : > { %v3237_v3 = vadd.f32 %v4713_v60, %v2725_v49  ;;  %v2724_v31 = vadd.f32 %v4616_v58, %v2212_v21  ;;  %v4712_v0 = vsel %vm2948_vm12, 1.0, %v9766_v25  ;;  %v2217_v62 = vadd.f32 %v7626_v43, %v1705_v55 }
 0x1aa   : > { %v2216_v11 = vadd.f32 %v7616_v19, %v7817_v40  ;;  %v8138_v16 = vadd.f32 %v7740_v42, %v1748_v4  ;;  %v3238_v41 = vadd.f32 %v4714_v2, %v2726_v59  ;;  %v8144_v34 = vadd.f32 %v7746_v1, %v1749_v54  ;;  %v9964_v19 = vld [vmem:[#allocation99_spill] sm:$0xff]  ;;  %v9965_v42 = vld [vmem:[#allocation98_spill] sm:$0xff]  ;;  %v9972_v4 = vld [vmem:[#allocation60_spill] sm:$0xff] }
 0x1ab   : > { %5273 = vset.pattern.permute.xlu1 %v9907_v38  ;;  %3471 = vmatprep.mubr.f32.mxu0 %v3237_v3  ;;  %v3236_v24 = vadd.f32 %v4712_v0, %v2724_v31  ;;  %v8147_v37 = vadd.f32 %v9963_v39, %v1750_v23  ;;  %vm913_vm13 = vcmp.eq.s32.totalorder %v5897_v32, %v7632_v29  ;;  %v4340_v1 = vsel %vm912_vm15, 1.0, %v9766_v25  ;;  %v9975_v3 = vld [vmem:[#allocation63_spill] sm:$0xff]  ;;  %v9976_v2 = vld [vmem:[#allocation97_spill] sm:$0xff]  ;;  %v9977_v0 = vld [vmem:[#allocation74_spill] sm:$0xff] }
 0x1ac   : > { %vm922_vm14 = vcmp.eq.s32.totalorder %v5897_v32, %v7665_v36  ;;  %v2729_v43 = vadd.f32 %v9964_v19, %v2217_v62  ;;  %v2728_v40 = vadd.f32 %v9965_v42, %v2216_v11  ;;  %2368 = vperm.xlu1 %5273, %v9966_v56   ;;  %vm1946_vm0 = vcmp.eq.s32.totalorder %v5897_v32, %v7391_v27  ;;  %v9978_v11 = vld [vmem:[#allocation23_spill] sm:$0xff]  ;;  %v9980_v56 = vld [vmem:[#allocation85_spill] sm:$0xff] }
 0x1ad   : > { %vm914_vm4 = vcmp.eq.s32.totalorder %v5900_v5, %v7632_v29  ;;  %vm1433_vm9 = vcmp.eq.s32.totalorder %v5887_v18, %v9967_v63  ;;  %4929 = vmatprep.mubr.f32.mxu1 %v3238_v41  ;;  %3472 = vmatmul.mubr.f32.gmra.mrb[20].mxu0 %v3236_v24  ;;  %v4349_v15 = vsel %vm921_vm10, 1.0, %v9766_v25  ;;  %vm1434_vm2 = vcmp.eq.s32.totalorder %v5897_v32, %v9967_v63  ;;  %v9970_v29 = vld [vmem:[#allocation76_spill] sm:$0xff] }
 0x1ae   : > { %v3241_v44 = vadd.f32 %v9968_v57, %v2729_v43  ;;  %v3240_v55 = vadd.f32 %v9969_v28, %v2728_v40  ;;  %vm1947_vm5 = vcmp.eq.s32.totalorder %v5900_v5, %v7391_v27  ;;  %v4341_v14 = vsel %vm913_vm13, 1.0, %v9766_v25  ;;  %v8186_v50 = vpop.permute.xlu1 %1326  ;;  %v9979_v43 = vld [vmem:[#allocation110_spill] sm:$0xff]  ;;  %v9983_v27 = vld [vmem:[#allocation20_spill] sm:$0xff] }
 0x1af   : > { %vm923_vm6 = vcmp.eq.s32.totalorder %v5900_v5, %v7665_v36  ;;  %v4350_v12 = vsel %vm922_vm14, 1.0, %v9766_v25  ;;  %v4342_v21 = vsel %vm914_vm4, 1.0, %v9766_v25  ;;  %vm1435_vm1 = vcmp.eq.s32.totalorder %v5900_v5, %v9967_v63  ;;  %v9971_v36 = vld [vmem:[#allocation15_spill] sm:$0xff]  ;;  %v9981_v63 = vld [vmem:[#allocation64_spill] sm:$0xff] }
 0x1b0   : > { %v4445_v17 = vsel %vm1433_vm9, 1.0, %v9766_v25  ;;  %4930 = vmatmul.mubr.f32.gmra.mrb[10].mxu1 %v3241_v44  ;;  %3476 = vmatprep.mubr.f32.mxu0 %v3240_v55  ;;  %v2215_v8 = vadd.f32 %v9970_v29, %v1703_v33  ;;  %v4541_v58 = vsel %vm1945_vm7, 1.0, %v9766_v25  ;;  %v1200_v45 = vadd.f32 %v4340_v1, %v9971_v36  ;;  %v9982_v44 = vld [vmem:[#allocation86_spill] sm:$0xff]  ;;  %v9985_v29 = vld [vmem:[#allocation87_spill] sm:$0xff] }
 0x1b1   : > { %v1209_v54 = vadd.f32 %v4349_v15, %v9972_v4  ;;  %v4446_v23 = vsel %vm1434_vm2, 1.0, %v9766_v25  ;;  %v9973_v49 = vmov 1   ;;  %v1201_v60 = vadd.f32 %v4341_v14, %v9974_v47  ;;  %v9987_v47 = vld [vmem:[#allocation57_spill] sm:$0xff] }
 0x1b2   : > { %5274 = vset.pattern.permute.xlu1 %v9973_v49  ;;  %v4351_v33 = vsel %vm923_vm6, 1.0, %v9766_v25  ;;  %v1210_v59 = vadd.f32 %v4350_v12, %v9975_v3  ;;  %v2727_v31 = vadd.f32 %v9976_v2, %v2215_v8  ;;  %v4542_v62 = vsel %vm1946_vm0, 1.0, %v9766_v25 }
 0x1b3   : > { %838 = vperm.xlu1 %5274, %v9977_v0   ;;  %v1202_v41 = vadd.f32 %v4342_v21, %v9978_v11  ;;  %v4447_v24 = vsel %vm1435_vm1, 1.0, %v9766_v25  ;;  %v1721_v39 = vadd.f32 %v4445_v17, %v1209_v54  ;;  %vm906_vm8 = vcmp.eq.s32.totalorder %v5887_v18, %v7981_v13  ;;  %v2348_v57 = vpop.permute.xlu1 %2347  ;;  %v9984_v17 = vld [vmem:[#allocation29_spill] sm:$0xff]  ;;  %v9989_v11 = vld [vmem:[#allocation27_spill] sm:$0xff] }
 0x1b4   : > { %v1722_v19 = vadd.f32 %v4446_v23, %v1210_v59  ;;  %vm907_vm3 = vcmp.eq.s32.totalorder %v5897_v32, %v7981_v13  ;;  %v3239_v42 = vadd.f32 %v9979_v43, %v2727_v31  ;;  %v4543_v40 = vsel %vm1947_vm5, 1.0, %v9766_v25  ;;  %v9988_v59 = vld [vmem:[#allocation58_spill] sm:$0xff] }
 0x1b5   : > { %v8228_v1 = vadd.f32 %v9980_v56, %v1200_v45  ;;  %v1211_v15 = vadd.f32 %v4351_v33, %v9981_v63  ;;  %vm908_vm7 = vcmp.eq.s32.totalorder %v5900_v5, %v7981_v13  ;;  %v8234_v28 = vadd.f32 %v9982_v44, %v1201_v60 }
 0x1b6   : > { %vm1418_vm11 = vcmp.eq.s32.totalorder %v5887_v18, %v8057_v6  ;;  %vm1419_vm12 = vcmp.eq.s32.totalorder %v5897_v32, %v8057_v6  ;;  %3477 = vmatmul.mubr.f32.gmra.mrb[22].mxu0 %v3239_v42  ;;  %v8242_v55 = vadd.s32 100, %v9983_v27  ;;  %v4334_v12 = vsel %vm906_vm8, 1.0, %v9766_v25 }
 0x1b7   : > { %5275 = vset.pattern.permute.xlu1 %v9743_v22  ;;  %v1723_v14 = vadd.f32 %v4447_v24, %v1211_v15  ;;  %v4335_v21 = vsel %vm907_vm3, 1.0, %v9766_v25  ;;  %vm1420_vm15 = vcmp.eq.s32.totalorder %v5900_v5, %v8057_v6  ;;  %v1714_v8 = vadd.f32 %v9985_v29, %v1202_v41  ;;  %v9986_v6 = vld [vmem:[#allocation56_spill] sm:$0xff] }
 0x1b8   : > { %2880 = vperm.xlu1 %5275, %v9984_v17   ;;  %v8250_v36 = vadd.f32 %v4541_v58, %v1721_v39  ;;  %v8252_v45 = vadd.f32 %v4542_v62, %v1722_v19  ;;  %v4336_v4 = vsel %vm908_vm7, 1.0, %v9766_v25  ;;  %v4430_v54 = vsel %vm1418_vm11, 1.0, %v9766_v25  ;;  %v8269_v13 = vpop.permute.xlu1 %1838 }
 0x1b9   : > { %v4431_v23 = vsel %vm1419_vm12, 1.0, %v9766_v25  ;;  %vm1930_vm10 = vcmp.eq.s32.totalorder %v5887_v18, %v8141_v7  ;;  %vm1931_vm13 = vcmp.eq.s32.totalorder %v5897_v32, %v8141_v7  ;;  %v1194_v58 = vadd.f32 %v4334_v12, %v9986_v6 }
 0x1ba   : > { %v1195_v60 = vadd.f32 %v4335_v21, %v9987_v47  ;;  %v4432_v33 = vsel %vm1420_vm15, 1.0, %v9766_v25  ;;  %vm1932_vm14 = vcmp.eq.s32.totalorder %v5900_v5, %v8141_v7  ;;  %v8271_v3 = vadd.f32 %v4543_v40, %v1723_v14  ;;  %v9990_v14 = vld [vmem:[#allocation31_spill] sm:$0xff] }
 0x1bb   : > { %v1196_v2 = vadd.f32 %v4336_v4, %v9988_v59  ;;  %vm910_vm0 = vcmp.eq.s32.totalorder %v5897_v32, %v8103_v51  ;;  %vm911_vm4 = vcmp.eq.s32.totalorder %v5900_v5, %v8103_v51  ;;  %v1706_v31 = vadd.f32 %v4430_v54, %v1194_v58  ;;  %v9993_v58 = vld [vmem:[#allocation34_spill] sm:$0xff] }
 0x1bc   : > { %5276 = vset.pattern.permute.xlu1 %v9754_v20  ;;  %v1707_v0 = vadd.f32 %v4431_v23, %v1195_v60  ;;  %v4526_v62 = vsel %vm1930_vm10, 1.0, %v9766_v25  ;;  %v4527_v7 = vsel %vm1931_vm13, 1.0, %v9766_v25  ;;  %v4528_v24 = vsel %vm1932_vm14, 1.0, %v9766_v25  ;;  %v9992_v23 = vld [vmem:[#allocation36_spill] sm:$0xff] }
 0x1bd   : > { %1350 = vperm.xlu1 %5276, %v9989_v11   ;;  %v1708_v41 = vadd.f32 %v4432_v33, %v1196_v2  ;;  %vm2442_vm9 = vcmp.eq.s32.totalorder %v5887_v18, %v2348_v57  ;;  %vm2443_vm2 = vcmp.eq.s32.totalorder %v5897_v32, %v2348_v57  ;;  %vm909_vm5 = vcmp.eq.s32.totalorder %v5887_v18, %v8103_v51  ;;  %v2860_v63 = vpop.permute.xlu1 %2859  ;;  %v9994_v2 = vld [vmem:[#allocation33_spill] sm:$0xff]  ;;  %v9997_v51 = vld [vmem:[#allocation43_spill] sm:$0xff] }
 0x1be   : > { %v4338_v39 = vsel %vm910_vm0, 1.0, %v9766_v25  ;;  %v4339_v19 = vsel %vm911_vm4, 1.0, %v9766_v25  ;;  %vm2444_vm6 = vcmp.eq.s32.totalorder %v5900_v5, %v2348_v57  ;;  %v2218_v43 = vadd.f32 %v4526_v62, %v1706_v31  ;;  %v9991_v57 = vld [vmem:[#allocation106_spill] sm:$0xff] }
 0x1bf   : > { %v2219_v42 = vadd.f32 %v4527_v7, %v1707_v0  ;;  %v4623_v40 = vsel %vm2443_vm2, 1.0, %v9766_v25  ;;  %v4624_v56 = vsel %vm2444_vm6, 1.0, %v9766_v25  ;;  %v2220_v15 = vadd.f32 %v4528_v24, %v1708_v41  ;;  %v9995_v62 = vld [vmem:[#allocation54_spill] sm:$0xff]  ;;  %v9998_v24 = vld [vmem:[#allocation100_spill] sm:$0xff] }
 0x1c0   : > { %vm1421_vm1 = vcmp.eq.s32.totalorder %v5887_v18, %v8186_v50  ;;  %v4622_v44 = vsel %vm2442_vm9, 1.0, %v9766_v25  ;;  %vm2954_vm8 = vcmp.eq.s32.totalorder %v5887_v18, %v2860_v63  ;;  %vm2971_vm3 = vcmp.eq.s32.totalorder %v5900_v5, %v9990_v14  ;;  %v10009_v14 = vld [vmem:[#allocation49_spill] sm:$0xff] }
 0x1c1   : > { %5278 = vset.pattern.permute.xlu1 %v9973_v49  ;;  %vm1422_vm7 = vcmp.eq.s32.totalorder %v5897_v32, %v8186_v50  ;;  %vm1423_vm11 = vcmp.eq.s32.totalorder %v5900_v5, %v8186_v50  ;;  %vm2955_vm12 = vcmp.eq.s32.totalorder %v5897_v32, %v2860_v63  ;;  %vm2956_vm15 = vcmp.eq.s32.totalorder %v5900_v5, %v2860_v63 }
 0x1c2   : > { %841 = vperm.xlu1 %5278, %v9991_v57   ;;  %v2731_v12 = vadd.f32 %v4623_v40, %v2219_v42  ;;  %v4719_v21 = vsel %vm2955_vm12, 1.0, %v9766_v25  ;;  %v2732_v17 = vadd.f32 %v4624_v56, %v2220_v15  ;;  %v4720_v29 = vsel %vm2956_vm15, 1.0, %v9766_v25  ;;  %v10000_v40 = vld [vmem:[#allocation69_spill] sm:$0xff]  ;;  %v10001_v56 = vld [vmem:[#allocation32_spill] sm:$0xff]  ;;  %v10002_v15 = vld [vmem:[#allocation30_spill] sm:$0xff] }
 0x1c3   : > { %v2730_v4 = vadd.f32 %v4622_v44, %v2218_v43  ;;  %v4718_v54 = vsel %vm2954_vm8, 1.0, %v9766_v25  ;;  %v2226_v6 = vadd.f32 %v9992_v23, %v1714_v8  ;;  %v2225_v47 = vadd.f32 %v9993_v58, %v8234_v28  ;;  %v2351_v60 = vpop.permute.xlu1 %2350  ;;  %v9996_v8 = vld [vmem:[#allocation55_spill] sm:$0xff]  ;;  %v10003_v57 = vld [vmem:[#allocation52_spill] sm:$0xff] }
 0x1c4   : > { %vm1934_vm10 = vcmp.eq.s32.totalorder %v5897_v32, %v8269_v13  ;;  %v3243_v33 = vadd.f32 %v4719_v21, %v2731_v12  ;;  %v3244_v59 = vadd.f32 %v4720_v29, %v2732_v17  ;;  %v2224_v31 = vadd.f32 %v9994_v2, %v8228_v1  ;;  %v10005_v2 = vld [vmem:[#allocation68_spill] sm:$0xff] }
 0x1c5   : > { %v4337_v0 = vsel %vm909_vm5, 1.0, %v9766_v25  ;;  %v1198_v7 = vadd.f32 %v4338_v39, %v9995_v62  ;;  %v1199_v11 = vadd.f32 %v4339_v19, %v9996_v8  ;;  %v3242_v28 = vadd.f32 %v4718_v54, %v2730_v4  ;;  %v9999_v19 = vld [vmem:[#allocation21_spill] sm:$0xff] }
 0x1c6   : > { %5279 = vset.pattern.permute.xlu1 %v9889_v61  ;;  %v4433_v41 = vsel %vm1421_vm1, 1.0, %v9766_v25  ;;  %v4434_v1 = vsel %vm1422_vm7, 1.0, %v9766_v25  ;;  %vm1935_vm13 = vcmp.eq.s32.totalorder %v5900_v5, %v8269_v13  ;;  %3481 = vmatprep.mubr.f32.mxu0 %v3243_v33  ;;  %v2738_v39 = vadd.f32 %v9998_v24, %v2226_v6  ;;  %v10004_v6 = vld [vmem:[#allocation112_spill] sm:$0xff] }
 0x1c7   : > { %1862 = vperm.xlu1 %5279, %v9997_v51   ;;  %vm2468_vm14 = vcmp.eq.s32.totalorder %v5900_v5, %v9999_v19  ;;  %v4435_v43 = vsel %vm1423_vm11, 1.0, %v9766_v25  ;;  %vm1933_vm0 = vcmp.eq.s32.totalorder %v5887_v18, %v8269_v13  ;;  %v4530_v42 = vsel %vm1934_vm10, 1.0, %v9766_v25  ;;  %4932 = vmatprep.mubr.f32.mxu1 %v3244_v59  ;;  %v10008_v51 = vld [vmem:[#allocation102_spill] sm:$0xff] }
 0x1c8   : > { %vm2446_vm4 = vcmp.eq.s32.totalorder %v5897_v32, %v2351_v60  ;;  %3482 = vmatmul.mubr.f32.gmra.mrb[24].mxu0 %v3242_v28  ;;  %vm2467_vm9 = vcmp.eq.s32.totalorder %v5897_v32, %v9999_v19  ;;  %vm2447_vm2 = vcmp.eq.s32.totalorder %v5900_v5, %v2351_v60  ;;  %v8352_v50 = vadd.f32 %v10000_v40, %v2738_v39  ;;  %v8362_v29 = vpop.permute.xlu1 %820  ;;  %v2381_v40 = vpop.permute.xlu0 %2380 }
 0x1c9   : > { %v2737_v63 = vadd.f32 %v10001_v56, %v2225_v47  ;;  %v2736_v44 = vadd.f32 %v10002_v15, %v2224_v31  ;;  %v1197_v12 = vadd.f32 %v4337_v0, %v10003_v57  ;;  %v1710_v21 = vadd.f32 %v4434_v1, %v1198_v7  ;;  %v10006_v7 = vld [vmem:[#allocation39_spill] sm:$0xff]  ;;  %v10011_v57 = vld [vmem:[#allocation38_spill] sm:$0xff] }
 0x1ca   : > { %v4531_v17 = vsel %vm1935_vm13, 1.0, %v9766_v25  ;;  %vm2445_vm5 = vcmp.eq.s32.totalorder %v5887_v18, %v2351_v60  ;;  %vm2466_vm6 = vcmp.eq.s32.totalorder %v5887_v18, %v9999_v19  ;;  %v1711_v4 = vadd.f32 %v4435_v43, %v1199_v11  ;;  %v10007_v11 = vld [vmem:[#allocation50_spill] sm:$0xff]  ;;  %v10010_v43 = vld [vmem:[#allocation101_spill] sm:$0xff] }
 0x1cb   : > { %v4529_v54 = vsel %vm1933_vm0, 1.0, %v9766_v25  ;;  %v4626_v23 = vsel %vm2446_vm4, 1.0, %v9766_v25  ;;  %5280 = vset.pattern.permute.xlu1 %v9754_v20  ;;  %v3249_v58 = vadd.f32 %v10004_v6, %v2737_v63  ;;  %v1709_v47 = vadd.f32 %v4433_v41, %v1197_v12  ;;  %v10013_v19 = vld [vmem:[#allocation105_spill] sm:$0xff] }
 0x1cc   : > { %v2222_v33 = vadd.f32 %v4530_v42, %v1710_v21  ;;  %v4627_v59 = vsel %vm2447_vm2, 1.0, %v9766_v25  ;;  %1353 = vperm.xlu1 %5280, %v8242_v55   ;;  %v3248_v31 = vadd.f32 %v10005_v2, %v2736_v44  ;;  %v4735_v13 = vsel %vm2971_vm3, 1.0, %v9766_v25 }
 0x1cd   : > { %v2223_v0 = vadd.f32 %v4531_v17, %v1711_v4  ;;  %v4625_v62 = vsel %vm2445_vm5, 1.0, %v9766_v25  ;;  %v2299_v8 = vadd.s32 200, %v10006_v7  ;;  %vm2980_vm1 = vcmp.eq.s32.totalorder %v5900_v5, %v10007_v11  ;;  %v2863_v55 = vpop.permute.xlu1 %2862  ;;  %v10012_v17 = vld [vmem:[#allocation37_spill] sm:$0xff] }
 0x1ce   : > { %v2221_v28 = vadd.f32 %v4529_v54, %v1709_v47  ;;  %v1788_v60 = vadd.s32 150, %v9983_v27  ;;  %v2734_v41 = vadd.f32 %v4626_v23, %v2222_v33  ;;  %v2747_v24 = vadd.f32 %v10008_v51, %v8271_v3  ;;  %v5329_v51 = vld [vmem:[%s5494_s9 + $0xb0] sm:$0xff] }
 0x1cf   : > { %v2735_v1 = vadd.f32 %v4627_v59, %v2223_v0  ;;  %v2746_v39 = vadd.f32 %v10009_v14, %v8252_v45  ;;  %v2745_v42 = vadd.f32 %v10010_v43, %v8250_v36  ;;  %vm2957_vm8 = vcmp.eq.s32.totalorder %v5887_v18, %v2863_v55  ;;  %v8478_v43 = vld [vmem:[%s5494_s9 + $0xc0] sm:$0xff] }
 0x1d0   : > { %5281 = vset.pattern.permute.xlu1 %v9907_v38  ;;  %vm2958_vm3 = vcmp.eq.s32.totalorder %v5897_v32, %v2863_v55  ;;  %vm2959_vm7 = vcmp.eq.s32.totalorder %v5900_v5, %v2863_v55  ;;  %v2733_v27 = vadd.f32 %v4625_v62, %v2221_v28  ;;  %v4721_v45 = vsel %vm2957_vm8, 1.0, %v9766_v25  ;;  %v5328_v62 = vld [vmem:[%s5494_s9 + $0xa8] sm:$0xff] }
 0x1d1   : > { %2374 = vperm.xlu1 %5281, %v2299_v8   ;;  %v4722_v56 = vsel %vm2958_vm3, 1.0, %v9766_v25  ;;  %v4723_v3 = vsel %vm2959_vm7, 1.0, %v9766_v25  ;;  %v8402_v63 = vadd.f32 %v4735_v13, %v2747_v24  ;;  %v8405_v12 = vadd.f32 %v10011_v57, %v2746_v39 }
 0x1d2   : > { %v3246_v36 = vadd.f32 %v4722_v56, %v2734_v41  ;;  %v3247_v15 = vadd.f32 %v4723_v3, %v2735_v1  ;;  %v3245_v44 = vadd.f32 %v4721_v45, %v2733_v27  ;;  %v4648_v21 = vsel %vm2468_vm14, 1.0, %v9766_v25  ;;  %v8424_v23 = vpop.permute.xlu1 %1332  ;;  %v8489_v56 = vld [vmem:[%s5494_s9 + $0xf8] sm:$0xff] }
 0x1d3   : > { %vm2978_vm11 = vcmp.eq.s32.totalorder %v5887_v18, %v10007_v11  ;;  %vm2979_vm12 = vcmp.eq.s32.totalorder %v5897_v32, %v10007_v11  ;;  %v8416_v4 = vadd.f32 %v10012_v17, %v2745_v42  ;;  %v4647_v54 = vsel %vm2467_vm9, 1.0, %v9766_v25 }
 0x1d4   : > { %vm2476_vm15 = vcmp.eq.s32.totalorder %v5897_v32, %v2381_v40  ;;  %vm2477_vm10 = vcmp.eq.s32.totalorder %v5900_v5, %v2381_v40  ;;  %3486 = vmatprep.mubr.f32.mxu0 %v3246_v36  ;;  %4933 = vmatmul.mubr.f32.gmra.mrb[12].mxu1 %v3247_v15  ;;  %v4744_v6 = vsel %vm2980_vm1, 1.0, %v9766_v25  ;;  %vm2475_vm13 = vcmp.eq.s32.totalorder %v5887_v18, %v2381_v40  ;;  %v10014_v40 = vld [vmem:[#allocation5_spill] sm:$0xff] }
 0x1d5   : > { %5282 = vset.pattern.permute.xlu1 %v9889_v61  ;;  %3487 = vmatmul.mubr.f32.gmra.mrb[26].mxu0 %v3245_v44  ;;  %v4646_v47 = vsel %vm2466_vm6, 1.0, %v9766_v25  ;;  %v4742_v33 = vsel %vm2978_vm11, 1.0, %v9766_v25  ;;  %v4743_v59 = vsel %vm2979_vm12, 1.0, %v9766_v25  ;;  %v2756_v2 = vadd.f32 %v4648_v21, %v7957_v10 }
 0x1d6   : > { %1865 = vperm.xlu1 %5282, %v1788_v60   ;;  %4935 = vmatprep.mubr.f32.mxu1 %v8352_v50  ;;  %v4656_v13 = vsel %vm2476_vm15, 1.0, %v9766_v25  ;;  %v4657_v0 = vsel %vm2477_vm10, 1.0, %v9766_v25  ;;  %v2811_v7 = vadd.s32 250, %v5328_v62  ;;  %v2755_v8 = vadd.f32 %v4647_v54, %v7954_v30 }
 0x1d7   : > { %3491 = vmatprep.mubr.f32.mxu0 %v3249_v58  ;;  %vm2988_vm14 = vcmp.eq.s32.totalorder %v5897_v32, %v10013_v19  ;;  %vm2989_vm0 = vcmp.eq.s32.totalorder %v5900_v5, %v10013_v19  ;;  %v4655_v50 = vsel %vm2475_vm13, 1.0, %v9766_v25  ;;  %v8451_v10 = vadd.f32 %v4744_v6, %v2756_v2 }
 0x1d8   : > { %vm2987_vm4 = vcmp.eq.s32.totalorder %v5887_v18, %v10013_v19  ;;  %v8455_v58 = vadd.f32 %v4743_v59, %v2755_v8  ;;  %v2754_v30 = vadd.f32 %v4646_v47, %v7951_v53  ;;  %v2764_v11 = vadd.f32 %v4656_v13, %v8078_v48  ;;  %v8461_v60 = vpop.permute.xlu1 %823  ;;  %v8531_v19 = vld [vmem:[%s5494_s9 + $0xc8] sm:$0xff] }
 0x1d9   : > { %3492 = vmatmul.mubr.f32.gmra.mrb[28].mxu0 %v3248_v31  ;;  %v2765_v28 = vadd.f32 %v4657_v0, %v8081_v46  ;;  %v4752_v41 = vsel %vm2988_vm14, 1.0, %v9766_v25  ;;  %v4753_v55 = vsel %vm2989_vm0, 1.0, %v9766_v25  ;;  %v2763_v1 = vadd.f32 %v4655_v50, %v8075_v9 }
 0x1da   : > { %5283 = vset.pattern.permute.xlu1 %v9743_v22  ;;  %v8466_v31 = vadd.f32 %v4742_v33, %v2754_v30  ;;  %v4751_v53 = vsel %vm2987_vm4, 1.0, %v9766_v25  ;;  %v2300_v48 = vadd.s32 200, %v5329_v51  ;;  %v8472_v24 = vadd.f32 %v4752_v41, %v2764_v11 }
 0x1db   : > { %2886 = vperm.xlu1 %5283, %v2811_v7   ;;  %v8470_v46 = vadd.f32 %v4753_v55, %v2765_v28  ;;  %v8475_v39 = vadd.f32 %v4751_v53, %v2763_v1  ;;  %v766_v9 = vadd.s32 50, %v8478_v43  ;;  %v2812_v27 = vadd.s32 250, %v5329_v51  ;;  %v10015_v53 = vld [vmem:[#allocation6_spill] sm:$0xff] }
 0x1dc   : > { %vm403_vm9 = vcmp.eq.s32.totalorder %v5887_v18, %v10014_v40  ;;  %vm916_vm2 = vcmp.eq.s32.totalorder %v5897_v32, %v8362_v29  ;;  %v1797_v3 = vadd.s32 150, %v8489_v56  ;;  %vm404_vm5 = vcmp.eq.s32.totalorder %v5897_v32, %v10014_v40 }
 0x1dd   : > { %vm917_vm6 = vcmp.eq.s32.totalorder %v5900_v5, %v8362_v29  ;;  %vm405_vm1 = vcmp.eq.s32.totalorder %v5900_v5, %v10014_v40  ;;  %vm915_vm8 = vcmp.eq.s32.totalorder %v5887_v18, %v8362_v29  ;;  %v4247_v45 = vsel %vm403_vm9, 1.0, %v9766_v25 }
 0x1de   : > { %v1845_v14 = vpop.permute.xlu1 %1844  ;;  %1892 = vperm.xlu0 %5315, %v1797_v3   ;;  %v4344_v36 = vsel %vm916_vm2, 1.0, %v9766_v25  ;;  %vm1428_vm3 = vcmp.eq.s32.totalorder %v5897_v32, %v8424_v23  ;;  %vm1429_vm7 = vcmp.eq.s32.totalorder %v5900_v5, %v8424_v23  ;;  %v4248_v44 = vsel %vm404_vm5, 1.0, %v9766_v25 }
 0x1df   : > { %5284 = vset.pattern.permute.xlu1 %v9907_v38  ;;  %v4345_v57 = vsel %vm917_vm6, 1.0, %v9766_v25  ;;  %vm1427_vm11 = vcmp.eq.s32.totalorder %v5887_v18, %v8424_v23  ;;  %v1278_v29 = vadd.s32 100, %v8478_v43  ;;  %v4249_v21 = vsel %vm405_vm1, 1.0, %v9766_v25 }
 0x1e0   : > { %2377 = vperm.xlu1 %5284, %v2300_v48   ;;  %v4343_v17 = vsel %vm915_vm8, 1.0, %v9766_v25  ;;  %vm1940_vm12 = vcmp.eq.s32.totalorder %v5897_v32, %v1845_v14  ;;  %vm1941_vm15 = vcmp.eq.s32.totalorder %v5900_v5, %v1845_v14  ;;  %v1204_v54 = vadd.f32 %v4344_v36, %v4248_v44 }
 0x1e1   : > { %v4440_v6 = vsel %vm1428_vm3, 1.0, %v9766_v25  ;;  %v4441_v47 = vsel %vm1429_vm7, 1.0, %v9766_v25  ;;  %vm1939_vm10 = vcmp.eq.s32.totalorder %v5887_v18, %v1845_v14  ;;  %v1205_v23 = vadd.f32 %v4345_v57, %v4249_v21 }
 0x1e2   : > { %5320 = vset.pattern.permute.xlu0 %v9743_v22  ;;  %v4439_v33 = vsel %vm1427_vm11, 1.0, %v9766_v25  ;;  %v1203_v59 = vadd.f32 %v4343_v17, %v4247_v45  ;;  %v4536_v2 = vsel %vm1940_vm12, 1.0, %v9766_v25  ;;  %v4537_v13 = vsel %vm1941_vm15, 1.0, %v9766_v25 }
 0x1e3   : > { %v1716_v62 = vadd.f32 %v4440_v6, %v1204_v54  ;;  %v1717_v7 = vadd.f32 %v4441_v47, %v1205_v23  ;;  %v4535_v8 = vsel %vm1939_vm10, 1.0, %v9766_v25  ;;  %v767_v50 = vadd.s32 50, %v8531_v19 }
 0x1e4   : > { %5285 = vset.pattern.permute.xlu1 %v9973_v49  ;;  %v8482_v42 = vpop.permute.xlu1 %1335  ;;  %v1715_v30 = vadd.f32 %v4439_v33, %v1203_v59  ;;  %vm406_vm4 = vcmp.eq.s32.totalorder %v5887_v18, %v10015_v53  ;;  %vm407_vm9 = vcmp.eq.s32.totalorder %v5897_v32, %v10015_v53  ;;  %v1790_v14 = vadd.s32 150, %v8478_v43 }
 0x1e5   : > { %847 = vperm.xlu1 %5285, %v766_v9   ;;  %v2228_v41 = vadd.f32 %v4536_v2, %v1716_v62  ;;  %v2229_v55 = vadd.f32 %v4537_v13, %v1717_v7  ;;  %vm919_vm1 = vcmp.eq.s32.totalorder %v5897_v32, %v8461_v60  ;;  %vm920_vm8 = vcmp.eq.s32.totalorder %v5900_v5, %v8461_v60 }
 0x1e6   : > { %v2227_v51 = vadd.f32 %v4535_v8, %v1715_v30  ;;  %vm408_vm3 = vcmp.eq.s32.totalorder %v5900_v5, %v10015_v53  ;;  %vm918_vm7 = vcmp.eq.s32.totalorder %v5887_v18, %v8461_v60  ;;  %v4250_v21 = vsel %vm406_vm4, 1.0, %v9766_v25 }
 0x1e7   : > { %v4347_v17 = vsel %vm919_vm1, 1.0, %v9766_v25  ;;  %vm1431_vm11 = vcmp.eq.s32.totalorder %v5897_v32, %v8482_v42  ;;  %vm1432_vm12 = vcmp.eq.s32.totalorder %v5900_v5, %v8482_v42  ;;  %v4251_v6 = vsel %vm407_vm9, 1.0, %v9766_v25 }
 0x1e8   : > { %v4348_v47 = vsel %vm920_vm8, 1.0, %v9766_v25  ;;  %vm1430_vm15 = vcmp.eq.s32.totalorder %v5887_v18, %v8482_v42  ;;  %v1279_v23 = vadd.s32 100, %v8531_v19  ;;  %v4252_v33 = vsel %vm408_vm3, 1.0, %v9766_v25 }
 0x1e9   : > { %5286 = vset.pattern.permute.xlu1 %v9743_v22  ;;  %v4346_v59 = vsel %vm918_vm7, 1.0, %v9766_v25  ;;  %v1207_v2 = vadd.f32 %v4347_v17, %v4251_v6  ;;  %v4443_v13 = vsel %vm1431_vm11, 1.0, %v9766_v25  ;;  %v4444_v62 = vsel %vm1432_vm12, 1.0, %v9766_v25 }
 0x1ea   : > { %2889 = vperm.xlu1 %5286, %v2812_v27   ;;  %v2357_v15 = vpop.permute.xlu1 %2356  ;;  %v1208_v60 = vadd.f32 %v4348_v47, %v4252_v33  ;;  %v4442_v7 = vsel %vm1430_vm15, 1.0, %v9766_v25  ;;  %v1206_v8 = vadd.f32 %v4346_v59, %v4250_v21  ;;  %v2814_v6 = vadd.s32 250, %v8478_v43  ;;  %v8634_v59 = vld [vmem:[%s5494_s9 + $0xd8] sm:$0xff] }
 0x1eb   : > { %vm2452_vm13 = vcmp.eq.s32.totalorder %v5897_v32, %v2357_v15  ;;  %vm2453_vm14 = vcmp.eq.s32.totalorder %v5900_v5, %v2357_v15  ;;  %vm2451_vm0 = vcmp.eq.s32.totalorder %v5887_v18, %v2357_v15 }
 0x1ec   : > { %v4632_v11 = vsel %vm2452_vm13, 1.0, %v9766_v25  ;;  %v4633_v28 = vsel %vm2453_vm14, 1.0, %v9766_v25  ;;  %v4631_v1 = vsel %vm2451_vm0, 1.0, %v9766_v25 }
 0x1ed   : > { %v2740_v9 = vadd.f32 %v4632_v11, %v2228_v41  ;;  %v2741_v27 = vadd.f32 %v4633_v28, %v2229_v55  ;;  %v2739_v40 = vadd.f32 %v4631_v1, %v2227_v51  ;;  %v1720_v11 = vadd.f32 %v4444_v62, %v1208_v60 }
 0x1ee   : > { %5287 = vset.pattern.permute.xlu1 %v9754_v20  ;;  %v2302_v41 = vadd.s32 200, %v8478_v43  ;;  %v1718_v55 = vadd.f32 %v4442_v7, %v1206_v8  ;;  %v769_v43 = vadd.s32 50, %v8634_v59  ;;  %v1281_v7 = vadd.s32 100, %v8634_v59 }
 0x1ef   : > { %1359 = vperm.xlu1 %5287, %v1278_v29   ;;  %v8527_v0 = vpop.permute.xlu1 %1847  ;;  %v2821_v29 = vadd.s32 250, %v8489_v56 }
 0x1f0   : > { %vm1943_vm10 = vcmp.eq.s32.totalorder %v5897_v32, %v8527_v0  ;;  %vm1944_vm13 = vcmp.eq.s32.totalorder %v5900_v5, %v8527_v0  ;;  %vm1942_vm14 = vcmp.eq.s32.totalorder %v5887_v18, %v8527_v0  ;;  %v1719_v0 = vadd.f32 %v4443_v13, %v1207_v2 }
 0x1f1   : > { %2916 = vperm.xlu0 %5320, %v2821_v29   ;;  %v4540_v30 = vsel %vm1944_vm13, 1.0, %v9766_v25  ;;  %v4538_v28 = vsel %vm1942_vm14, 1.0, %v9766_v25 }
 0x1f3   : > { %5288 = vset.pattern.permute.xlu1 %v9973_v49 }
 0x1f4   : > { %850 = vperm.xlu1 %5288, %v767_v50   ;;  %v2869_v48 = vpop.permute.xlu1 %2868  ;;  %v4539_v50 = vsel %vm1943_vm10, 1.0, %v9766_v25 }
 0x1f5   : > { %vm2963_vm2 = vcmp.eq.s32.totalorder %v5887_v18, %v2869_v48  ;;  %vm2964_vm5 = vcmp.eq.s32.totalorder %v5897_v32, %v2869_v48  ;;  %vm2965_vm6 = vcmp.eq.s32.totalorder %v5900_v5, %v2869_v48  ;;  %v2231_v51 = vadd.f32 %v4539_v50, %v1719_v0 }
 0x1f6   : > { %v4728_v3 = vsel %vm2964_vm5, 1.0, %v9766_v25  ;;  %v4729_v45 = vsel %vm2965_vm6, 1.0, %v9766_v25  ;;  %v4727_v36 = vsel %vm2963_vm2, 1.0, %v9766_v25  ;;  %v2232_v48 = vadd.f32 %v4540_v30, %v1720_v11 }
 0x1f7   : > { %v3252_v15 = vadd.f32 %v4728_v3, %v2740_v9  ;;  %v3253_v44 = vadd.f32 %v4729_v45, %v2741_v27  ;;  %v3251_v57 = vadd.f32 %v4727_v36, %v2739_v40  ;;  %v2230_v9 = vadd.f32 %v4538_v28, %v1718_v55 }
 0x1f8   : > { %5289 = vset.pattern.permute.xlu1 %v9889_v61  ;;  %v1791_v40 = vadd.s32 150, %v8531_v19 }
 0x1f9   : > { %1871 = vperm.xlu1 %5289, %v1790_v14   ;;  %v2360_v54 = vpop.permute.xlu1 %2359  ;;  %3496 = vmatprep.mubr.f32.mxu0 %v3252_v15 }
 0x1fa   : > { %4936 = vmatmul.mubr.f32.gmra.mrb[14].mxu1 %v3253_v44  ;;  %3497 = vmatmul.mubr.f32.gmra.mrb[30].mxu0 %v3251_v57  ;;  %vm2455_vm0 = vcmp.eq.s32.totalorder %v5897_v32, %v2360_v54  ;;  %vm2456_vm4 = vcmp.eq.s32.totalorder %v5900_v5, %v2360_v54  ;;  %vm2454_vm9 = vcmp.eq.s32.totalorder %v5887_v18, %v2360_v54 }
 0x1fb   : > { %v4635_v1 = vsel %vm2455_vm0, 1.0, %v9766_v25  ;;  %v4636_v53 = vsel %vm2456_vm4, 1.0, %v9766_v25  ;;  %v4634_v14 = vsel %vm2454_vm9, 1.0, %v9766_v25 }
 0x1fc   : > { %v2743_v3 = vadd.f32 %v4635_v1, %v2231_v51  ;;  %v2744_v45 = vadd.f32 %v4636_v53, %v2232_v48  ;;  %v2742_v36 = vadd.f32 %v4634_v14, %v2230_v9  ;;  %v8678_v53 = vld [vmem:[%s5494_s9 + $0xe0] sm:$0xff] }
 0x1fd   : > { %5291 = vset.pattern.permute.xlu1 %v9754_v20  ;;  %v770_v51 = vadd.s32 50, %v8678_v53 }
 0x1fe   : > { %1362 = vperm.xlu1 %5291, %v1279_v23   ;;  %v8608_v42 = vpop.permute.xlu1 %829  ;;  %v2303_v23 = vadd.s32 200, %v8531_v19 }
 0x1ff   : > { %vm925_vm1 = vcmp.eq.s32.totalorder %v5897_v32, %v8608_v42  ;;  %vm926_vm7 = vcmp.eq.s32.totalorder %v5900_v5, %v8608_v42  ;;  %vm924_vm12 = vcmp.eq.s32.totalorder %v5887_v18, %v8608_v42 }
 0x200   : > { %v4354_v60 = vsel %vm926_vm7, 1.0, %v9766_v25  ;;  %v4352_v50 = vsel %vm924_vm12, 1.0, %v9766_v25 }
 0x202   : > { %5292 = vset.pattern.permute.xlu1 %v9907_v38 }
 0x203   : > { %2383 = vperm.xlu1 %5292, %v2302_v41   ;;  %v2872_v27 = vpop.permute.xlu1 %2871 }
 0x204   : > { %vm2966_vm2 = vcmp.eq.s32.totalorder %v5887_v18, %v2872_v27  ;;  %vm2967_vm5 = vcmp.eq.s32.totalorder %v5897_v32, %v2872_v27  ;;  %vm2968_vm6 = vcmp.eq.s32.totalorder %v5900_v5, %v2872_v27  ;;  %v8685_v27 = vld [vmem:[%s9670_s2] ss:$0 sm:$0xff] }
 0x205   : > { %v4730_v15 = vsel %vm2966_vm2, 1.0, %v9766_v25  ;;  %v4731_v44 = vsel %vm2967_vm5, 1.0, %v9766_v25  ;;  %v4732_v57 = vsel %vm2968_vm6, 1.0, %v9766_v25 }
 0x206   : > { %v3255_v29 = vadd.f32 %v4731_v44, %v2743_v3  ;;  %v3256_v21 = vadd.f32 %v4732_v57, %v2744_v45  ;;  %v3254_v17 = vadd.f32 %v4730_v15, %v2742_v36 }
 0x207   : > { %5293 = vset.pattern.permute.xlu1 %v9889_v61 }
 0x208   : > { %1874 = vperm.xlu1 %5293, %v1791_v40   ;;  %v1342_v54 = vpop.permute.xlu1 %1341  ;;  %3501 = vmatprep.mubr.f32.mxu0 %v3255_v29 }
 0x209   : > { %4938 = vmatprep.mubr.f32.mxu1 %v3256_v21  ;;  %3502 = vmatmul.mubr.f32.gmra.mrb[32].mxu0 %v3254_v17  ;;  %vm1437_vm15 = vcmp.eq.s32.totalorder %v5897_v32, %v1342_v54  ;;  %vm1438_vm10 = vcmp.eq.s32.totalorder %v5900_v5, %v1342_v54  ;;  %vm1436_vm13 = vcmp.eq.s32.totalorder %v5887_v18, %v1342_v54 }
 0x20a   : > { %4939 = vmatmul.mubr.f32.gmra.mrb[16].mxu1 %v8402_v63  ;;  %3506 = vmatprep.mubr.f32.mxu0 %v8405_v12  ;;  %v2815_v12 = vadd.s32 250, %v8531_v19  ;;  %v4353_v19 = vsel %vm925_vm1, 1.0, %v9766_v25  ;;  %v4449_v42 = vsel %vm1437_vm15, 1.0, %v9766_v25  ;;  %v4450_v0 = vsel %vm1438_vm10, 1.0, %v9766_v25 }
 0x20b   : > { %v4448_v28 = vsel %vm1436_vm13, 1.0, %v9766_v25 }
 0x20c   : > { %5294 = vset.pattern.permute.xlu1 %v9743_v22 }
 0x20d   : > { %2895 = vperm.xlu1 %5294, %v2814_v6   ;;  %v8628_v47 = vpop.permute.xlu1 %832  ;;  %3507 = vmatmul.mubr.f32.gmra.mrb[34].mxu0 %v8416_v4  ;;  %v10016_v4 = vld [vmem:[#allocation8_spill] sm:$0xff] }
 0x20e   : > { %vm412_vm8 = vcmp.eq.s32.totalorder %v5887_v18, %v10016_v4  ;;  %vm413_vm3 = vcmp.eq.s32.totalorder %v5897_v32, %v10016_v4  ;;  %vm414_vm11 = vcmp.eq.s32.totalorder %v5900_v5, %v10016_v4  ;;  %v1793_v4 = vadd.s32 150, %v8634_v59 }
 0x20f   : > { %v4256_v13 = vsel %vm412_vm8, 1.0, %v9766_v25  ;;  %v4257_v62 = vsel %vm413_vm3, 1.0, %v9766_v25  ;;  %v4258_v8 = vsel %vm414_vm11, 1.0, %v9766_v25  ;;  %vm927_vm7 = vcmp.eq.s32.totalorder %v5887_v18, %v8628_v47 }
 0x210   : > { %v1213_v30 = vadd.f32 %v4353_v19, %v4257_v62  ;;  %v1214_v11 = vadd.f32 %v4354_v60, %v4258_v8  ;;  %v1212_v48 = vadd.f32 %v4352_v50, %v4256_v13  ;;  %v10017_v8 = vld [vmem:[#allocation7_spill] sm:$0xff]  ;;  %vm928_vm11 = vcmp.eq.s32.totalorder %v5897_v32, %v8628_v47 }
 0x211   : > { %5295 = vset.pattern.permute.xlu1 %v9907_v38  ;;  %vm415_vm3 = vcmp.eq.s32.totalorder %v5887_v18, %v10017_v8  ;;  %vm416_vm12 = vcmp.eq.s32.totalorder %v5897_v32, %v10017_v8  ;;  %vm417_vm15 = vcmp.eq.s32.totalorder %v5900_v5, %v10017_v8  ;;  %vm929_vm10 = vcmp.eq.s32.totalorder %v5900_v5, %v8628_v47 }
 0x212   : > { %2386 = vperm.xlu1 %5295, %v2303_v23   ;;  %v1854_v33 = vpop.permute.xlu1 %1853  ;;  %v1725_v14 = vadd.f32 %v4449_v42, %v1213_v30  ;;  %v1726_v9 = vadd.f32 %v4450_v0, %v1214_v11  ;;  %v1724_v36 = vadd.f32 %v4448_v28, %v1212_v48 }
 0x213   : > { %vm1949_vm14 = vcmp.eq.s32.totalorder %v5897_v32, %v1854_v33  ;;  %vm1950_vm0 = vcmp.eq.s32.totalorder %v5900_v5, %v1854_v33  ;;  %vm1948_vm4 = vcmp.eq.s32.totalorder %v5887_v18, %v1854_v33 }
 0x214   : > { %v4545_v41 = vsel %vm1949_vm14, 1.0, %v9766_v25  ;;  %v4546_v55 = vsel %vm1950_vm0, 1.0, %v9766_v25  ;;  %v4544_v40 = vsel %vm1948_vm4, 1.0, %v9766_v25 }
 0x215   : > { %v2237_v15 = vadd.f32 %v4545_v41, %v1725_v14  ;;  %v2238_v44 = vadd.f32 %v4546_v55, %v1726_v9  ;;  %v2236_v6 = vadd.f32 %v4544_v40, %v1724_v36  ;;  %v1282_v9 = vadd.s32 100, %v8678_v53 }
 0x216   : > { %5296 = vset.pattern.permute.xlu1 %v9973_v49  ;;  %v4355_v40 = vsel %vm927_vm7, 1.0, %v9766_v25 }
 0x217   : > { %856 = vperm.xlu1 %5296, %v769_v43   ;;  %v8638_v63 = vpop.permute.xlu1 %1344 }
 0x218   : > { %vm1439_vm13 = vcmp.eq.s32.totalorder %v5887_v18, %v8638_v63  ;;  %vm1440_vm14 = vcmp.eq.s32.totalorder %v5897_v32, %v8638_v63  ;;  %vm1441_vm0 = vcmp.eq.s32.totalorder %v5900_v5, %v8638_v63 }
 0x21b   : > { %5298 = vset.pattern.permute.xlu1 %v9743_v22 }
 0x21c   : > { %2898 = vperm.xlu1 %5298, %v2815_v12   ;;  %v2366_v2 = vpop.permute.xlu1 %2365 }
 0x21d   : > { %vm2461_vm9 = vcmp.eq.s32.totalorder %v5897_v32, %v2366_v2  ;;  %vm2462_vm2 = vcmp.eq.s32.totalorder %v5900_v5, %v2366_v2  ;;  %vm2460_vm5 = vcmp.eq.s32.totalorder %v5887_v18, %v2366_v2 }
 0x21e   : > { %v4641_v3 = vsel %vm2461_vm9, 1.0, %v9766_v25  ;;  %v4642_v45 = vsel %vm2462_vm2, 1.0, %v9766_v25  ;;  %v4640_v29 = vsel %vm2460_vm5, 1.0, %v9766_v25 }
 0x21f   : > { %v2749_v23 = vadd.f32 %v4641_v3, %v2237_v15  ;;  %v2750_v33 = vadd.f32 %v4642_v45, %v2238_v44  ;;  %v2748_v2 = vadd.f32 %v4640_v29, %v2236_v6  ;;  %v4356_v3 = vsel %vm928_vm11, 1.0, %v9766_v25 }
 0x220   : > { %5299 = vset.pattern.permute.xlu1 %v9754_v20  ;;  %v4260_v44 = vsel %vm416_vm12, 1.0, %v9766_v25 }
 0x221   : > { %1368 = vperm.xlu1 %5299, %v1281_v7   ;;  %v8675_v1 = vpop.permute.xlu1 %1856 }
 0x222   : > { %v3423_v57 = vpop.f32.mrb[0].mxu0  ;;  %vm1951_vm4 = vcmp.eq.s32.totalorder %v5887_v18, %v8675_v1  ;;  %vm1952_vm9 = vcmp.eq.s32.totalorder %v5897_v32, %v8675_v1  ;;  %vm1953_vm2 = vcmp.eq.s32.totalorder %v5900_v5, %v8675_v1 }
 0x223   : > { %v3424_v21 = vadd.f32 %v8685_v27, %v3423_v57  ;;  %v4916_v17 = vpop.f32.mrb[0].mxu1  ;;  %v3425_v54 = vpop.f32.mrb[1].mxu0  ;;  %v4261_v57 = vsel %vm417_vm15, 1.0, %v9766_v25  ;;  %v4548_v8 = vsel %vm1952_vm9, 1.0, %v9766_v25  ;;  %v4549_v63 = vsel %vm1953_vm2, 1.0, %v9766_v25 }
 0x224   : > { %v3648_v43 = vpop.f32.mrb[1].mxu1 }
 0x225   : > { %5300 = vset.pattern.permute.xlu1 %v9973_v49  ;;  %v8700_v19 = vadd.f32 %v3648_v43, %v3424_v21  ;;  %v2305_v21 = vadd.s32 200, %v8634_v59  ;;  %v4452_v43 = vsel %vm1440_vm14, 1.0, %v9766_v25 }
 0x226   : > { %859 = vperm.xlu1 %5300, %v770_v51   ;;  %v2878_v12 = vpop.permute.xlu1 %2877  ;;  %v3428_v13 = vpop.f32.mrb[2].mxu0  ;;  %v4259_v51 = vsel %vm415_vm3, 1.0, %v9766_v25 }
 0x227   : > { %vm2972_vm6 = vcmp.eq.s32.totalorder %v5887_v18, %v2878_v12  ;;  %vm2973_vm1 = vcmp.eq.s32.totalorder %v5897_v32, %v2878_v12  ;;  %vm2974_vm8 = vcmp.eq.s32.totalorder %v5900_v5, %v2878_v12  ;;  %v3429_v50 = vadd.f32 %v8685_v27, %v3428_v13  ;;  %v4919_v30 = vpop.f32.mrb[2].mxu1  ;;  %v3430_v42 = vpop.f32.mrb[3].mxu0 }
 0x228   : > { %v4736_v62 = vsel %vm2972_vm6, 1.0, %v9766_v25  ;;  %v4737_v60 = vsel %vm2973_vm1, 1.0, %v9766_v25  ;;  %v4738_v7 = vsel %vm2974_vm8, 1.0, %v9766_v25  ;;  %v3658_v28 = vpop.f32.mrb[3].mxu1  ;;  %v1215_v6 = vadd.f32 %v4355_v40, %v4259_v51 }
 0x229   : > { %v3261_v0 = vadd.f32 %v4737_v60, %v2749_v23  ;;  %v3262_v11 = vadd.f32 %v4738_v7, %v2750_v33  ;;  %v3260_v41 = vadd.f32 %v4736_v62, %v2748_v2  ;;  %v8720_v55 = vadd.f32 %v4916_v17, %v3429_v50 }
 0x22a   : > { %5301 = vset.pattern.permute.xlu1 %v9889_v61  ;;  %v3433_v48 = vpop.f32.mrb[4].mxu0  ;;  %v4357_v17 = vsel %vm929_vm10, 1.0, %v9766_v25  ;;  %v1216_v23 = vadd.f32 %v4356_v3, %v4260_v44  ;;  %v4451_v33 = vsel %vm1439_vm13, 1.0, %v9766_v25  ;;  %v4453_v13 = vsel %vm1441_vm0, 1.0, %v9766_v25 }
 0x22b   : > { %1880 = vperm.xlu1 %5301, %v1793_v4   ;;  %3511 = vmatprep.mubr.f32.mxu0 %v3261_v0  ;;  %v2369_v14 = vpop.permute.xlu1 %2368  ;;  %v3434_v45 = vadd.f32 %v8685_v27, %v3433_v48  ;;  %v8740_v36 = vpop.f32.mrb[4].mxu1  ;;  %v1217_v2 = vadd.f32 %v4357_v17, %v4261_v57  ;;  %v4547_v62 = vsel %vm1951_vm4, 1.0, %v9766_v25  ;;  %v1727_v7 = vadd.f32 %v4451_v33, %v1215_v6 }
 0x22c   : > { %4941 = vmatprep.mubr.f32.mxu1 %v3262_v11  ;;  %3512 = vmatmul.mubr.f32.gmra.mrb[36].mxu0 %v3260_v41  ;;  %v3435_v15 = vpop.f32.mrb[5].mxu0  ;;  %v3668_v29 = vpop.f32.mrb[5].mxu1  ;;  %vm2463_vm5 = vcmp.eq.s32.totalorder %v5887_v18, %v2369_v14  ;;  %vm2464_vm6 = vcmp.eq.s32.totalorder %v5897_v32, %v2369_v14  ;;  %vm2465_vm1 = vcmp.eq.s32.totalorder %v5900_v5, %v2369_v14  ;;  %v1794_v14 = vadd.s32 150, %v8678_v53 }
 0x22d   : > { %v8761_v54 = vadd.f32 %v3658_v28, %v3434_v45  ;;  %v1728_v42 = vadd.f32 %v4452_v43, %v1216_v23  ;;  %v4643_v0 = vsel %vm2463_vm5, 1.0, %v9766_v25  ;;  %v1729_v1 = vadd.f32 %v4453_v13, %v1217_v2 }
 0x22e   : > { %v3438_v47 = vpop.f32.mrb[6].mxu0  ;;  %v2239_v28 = vadd.f32 %v4547_v62, %v1727_v7  ;;  %v4644_v41 = vsel %vm2464_vm6, 1.0, %v9766_v25  ;;  %v2817_v2 = vadd.s32 250, %v8634_v59  ;;  %v8820_v59 = vld [vmem:[%s5494_s9 + $0xf0] sm:$0xff] }
 0x22f   : > { %5302 = vset.pattern.permute.xlu1 %v9754_v20  ;;  %v3439_v12 = vadd.f32 %v8685_v27, %v3438_v47  ;;  %v3440_v4 = vpop.f32.mrb[7].mxu0  ;;  %v2241_v40 = vadd.f32 %v4549_v63, %v1729_v1 }
 0x230   : > { %1371 = vperm.xlu1 %5302, %v1282_v9   ;;  %v2240_v9 = vadd.f32 %v4548_v8, %v1728_v42  ;;  %v2751_v3 = vadd.f32 %v4643_v0, %v2239_v28  ;;  %v772_v42 = vadd.s32 50, %v8820_v59 }
 0x231   : > { %v8788_v50 = vadd.f32 %v4919_v30, %v3439_v12  ;;  %v4645_v30 = vsel %vm2465_vm1, 1.0, %v9766_v25 }
 0x232   : > { %v8784_v60 = vpop.permute.xlu1 %838  ;;  %v3443_v11 = vpop.f32.mrb[8].mxu0  ;;  %v2752_v44 = vadd.f32 %v4644_v41, %v2240_v9  ;;  %v2753_v17 = vadd.f32 %v4645_v30, %v2241_v40 }
 0x233   : > { %v3444_v51 = vadd.f32 %v8685_v27, %v3443_v11  ;;  %v3445_v48 = vpop.f32.mrb[9].mxu0  ;;  %vm933_vm12 = vcmp.eq.s32.totalorder %v5887_v18, %v8784_v60  ;;  %vm934_vm15 = vcmp.eq.s32.totalorder %v5897_v32, %v8784_v60  ;;  %vm935_vm14 = vcmp.eq.s32.totalorder %v5900_v5, %v8784_v60 }
 0x234   : > { %5303 = vset.pattern.permute.xlu1 %v9907_v38  ;;  %v4361_v30 = vsel %vm933_vm12, 1.0, %v9766_v25  ;;  %v4362_v40 = vsel %vm934_vm15, 1.0, %v9766_v25 }
 0x235   : > { %2392 = vperm.xlu1 %5303, %v2305_v21   ;;  %v8797_v45 = vadd.f32 %v3668_v29, %v3444_v51  ;;  %v10018_v51 = vld [vmem:[#allocation9_spill] sm:$0xff] }
 0x236   : > { %v3448_v57 = vpop.f32.mrb[10].mxu0  ;;  %vm421_vm11 = vcmp.eq.s32.totalorder %v5887_v18, %v10018_v51  ;;  %vm422_vm10 = vcmp.eq.s32.totalorder %v5897_v32, %v10018_v51  ;;  %vm423_vm13 = vcmp.eq.s32.totalorder %v5900_v5, %v10018_v51 }
 0x237   : > { %v2881_v15 = vpop.permute.xlu1 %2880  ;;  %v3449_v21 = vadd.f32 %v8685_v27, %v3448_v57  ;;  %v3450_v6 = vpop.f32.mrb[11].mxu0  ;;  %v4267_v60 = vsel %vm423_vm13, 1.0, %v9766_v25  ;;  %v773_v57 = vadd.s32 50, %v8489_v56 }
 0x238   : > { %vm2975_vm8 = vcmp.eq.s32.totalorder %v5887_v18, %v2881_v15  ;;  %vm2976_vm3 = vcmp.eq.s32.totalorder %v5897_v32, %v2881_v15  ;;  %vm2977_vm7 = vcmp.eq.s32.totalorder %v5900_v5, %v2881_v15  ;;  %v4266_v15 = vsel %vm422_vm10, 1.0, %v9766_v25 }
 0x239   : > { %v4739_v23 = vsel %vm2975_vm8, 1.0, %v9766_v25  ;;  %v4740_v33 = vsel %vm2976_vm3, 1.0, %v9766_v25  ;;  %5305 = vset.pattern.permute.xlu1 %v9889_v61  ;;  %v4741_v29 = vsel %vm2977_vm7, 1.0, %v9766_v25  ;;  %v8808_v12 = vadd.f32 %v8740_v36, %v3449_v21 }
 0x23a   : > { %1883 = vperm.xlu1 %5305, %v1794_v14   ;;  %v3264_v47 = vadd.f32 %v4740_v33, %v2752_v44  ;;  %v3263_v43 = vadd.f32 %v4739_v23, %v2751_v3  ;;  %v3265_v4 = vadd.f32 %v4741_v29, %v2753_v17  ;;  %v3453_v13 = vpop.f32.mrb[12].mxu0  ;;  %v2306_v36 = vadd.s32 200, %v8678_v53 }
 0x23b   : > { %v3455_v7 = vpop.f32.mrb[13].mxu0  ;;  %v1284_v14 = vadd.s32 100, %v8820_v59  ;;  %v4363_v44 = vsel %vm935_vm14, 1.0, %v9766_v25  ;;  %v1222_v21 = vadd.f32 %v4362_v40, %v4266_v15 }
 0x23c   : > { %v1351_v62 = vpop.permute.xlu1 %1350  ;;  %3516 = vmatprep.mubr.f32.mxu0 %v3264_v47  ;;  %4942 = vmatmul.mubr.f32.gmra.mrb[18].mxu1 %v3265_v4  ;;  %v1223_v29 = vadd.f32 %v4363_v44, %v4267_v60 }
 0x23d   : > { %3517 = vmatmul.mubr.f32.gmra.mrb[38].mxu0 %v3263_v43  ;;  %4944 = vmatprep.mubr.f32.mxu1 %v8451_v10  ;;  %vm1445_vm0 = vcmp.eq.s32.totalorder %v5887_v18, %v1351_v62  ;;  %vm1446_vm4 = vcmp.eq.s32.totalorder %v5897_v32, %v1351_v62  ;;  %vm1447_vm9 = vcmp.eq.s32.totalorder %v5900_v5, %v1351_v62 }
 0x23e   : > { %5306 = vset.pattern.permute.xlu1 %v9743_v22  ;;  %3521 = vmatprep.mubr.f32.mxu0 %v8455_v58  ;;  %v3454_v58 = vadd.f32 %v8685_v27, %v3453_v13  ;;  %v4457_v6 = vsel %vm1445_vm0, 1.0, %v9766_v25  ;;  %v4458_v23 = vsel %vm1446_vm4, 1.0, %v9766_v25  ;;  %v4459_v33 = vsel %vm1447_vm9, 1.0, %v9766_v25 }
 0x23f   : > { %2904 = vperm.xlu1 %5306, %v2817_v2   ;;  %v1734_v62 = vadd.f32 %v4458_v23, %v1222_v21  ;;  %v1735_v7 = vadd.f32 %v4459_v33, %v1223_v29  ;;  %v1285_v21 = vadd.s32 100, %v8489_v56 }
 0x241   : > { %v8815_v8 = vpop.permute.xlu1 %841  ;;  %3522 = vmatmul.mubr.f32.gmra.mrb[40].mxu0 %v8466_v31  ;;  %v2818_v31 = vadd.s32 250, %v8678_v53  ;;  %v4265_v53 = vsel %vm421_vm11, 1.0, %v9766_v25 }
 0x242   : > { %v1221_v17 = vadd.f32 %v4361_v30, %v4265_v53  ;;  %vm936_vm15 = vcmp.eq.s32.totalorder %v5887_v18, %v8815_v8  ;;  %v3839_v53 = vld [vmem:[%s9671_s3] sm:$0xff]  ;;  %v3840_v30 = vld [vmem:[%s9671_s3 + $0x8] sm:$0xff]  ;;  %vm937_vm0 = vcmp.eq.s32.totalorder %v5897_v32, %v8815_v8  ;;  %vm938_vm4 = vcmp.eq.s32.totalorder %v5900_v5, %v8815_v8 }
 0x243   : > { %5308 = vset.pattern.permute.xlu1 %v9907_v38  ;;  %v4365_v29 = vsel %vm937_vm0, 1.0, %v9766_v25 }
 0x244   : > { %2395 = vperm.xlu1 %5308, %v2306_v36   ;;  %v1733_v13 = vadd.f32 %v4457_v6, %v1221_v17  ;;  %v4364_v17 = vsel %vm936_vm15, 1.0, %v9766_v25 }
 0x246   : > { %v1863_v63 = vpop.permute.xlu1 %1862 }
 0x247   : > { %vm1957_vm2 = vcmp.eq.s32.totalorder %v5887_v18, %v1863_v63  ;;  %vm1958_vm5 = vcmp.eq.s32.totalorder %v5897_v32, %v1863_v63  ;;  %vm1959_vm6 = vcmp.eq.s32.totalorder %v5900_v5, %v1863_v63 }
 0x248   : > { %5309 = vset.pattern.permute.xlu1 %v9973_v49  ;;  %v3458_v10 = vpop.f32.mrb[14].mxu0  ;;  %v4553_v47 = vsel %vm1957_vm2, 1.0, %v9766_v25  ;;  %v4554_v43 = vsel %vm1958_vm5, 1.0, %v9766_v25  ;;  %v4555_v4 = vsel %vm1959_vm6, 1.0, %v9766_v25 }
 0x249   : > { %865 = vperm.xlu1 %5309, %v772_v42   ;;  %v4925_v0 = vpop.f32.mrb[6].mxu1  ;;  %v3459_v11 = vadd.f32 %v8685_v27, %v3458_v10  ;;  %v3460_v1 = vpop.f32.mrb[15].mxu0  ;;  %v2245_v10 = vadd.f32 %v4553_v47, %v1733_v13  ;;  %v2308_v47 = vadd.s32 200, %v8820_v59  ;;  %v3841_v13 = vld [vmem:[%s9671_s3 + $0x10] sm:$0xff] }
 0x24a   : > { %v3678_v28 = vpop.f32.mrb[7].mxu1  ;;  %v1796_v1 = vadd.s32 150, %v8820_v59 }
 0x24b   : > { %v8827_v41 = vpop.permute.xlu1 %1353  ;;  %v8833_v48 = vadd.f32 %v4925_v0, %v3459_v11  ;;  %v8835_v9 = vadd.f32 %v3678_v28, %v3454_v58  ;;  %v2246_v58 = vadd.f32 %v4554_v43, %v1734_v62  ;;  %v2247_v0 = vadd.f32 %v4555_v4, %v1735_v7  ;;  %v10019_v11 = vld [vmem:[#allocation11_spill] sm:$0xff]  ;;  %v3842_v62 = vld [vmem:[%s9671_s3 + $0x18] sm:$0xff] }
 0x24c   : > { %vm424_vm7 = vcmp.eq.s32.totalorder %v5887_v18, %v10019_v11  ;;  %vm425_vm11 = vcmp.eq.s32.totalorder %v5897_v32, %v10019_v11  ;;  %vm426_vm12 = vcmp.eq.s32.totalorder %v5900_v5, %v10019_v11  ;;  %vm1448_vm9 = vcmp.eq.s32.totalorder %v5887_v18, %v8827_v41 }
 0x24d   : > { %5310 = vset.pattern.permute.xlu1 %v9743_v22  ;;  %v4269_v6 = vsel %vm425_vm11, 1.0, %v9766_v25  ;;  %vm1449_vm2 = vcmp.eq.s32.totalorder %v5897_v32, %v8827_v41  ;;  %v4270_v33 = vsel %vm426_vm12, 1.0, %v9766_v25  ;;  %vm1450_vm5 = vcmp.eq.s32.totalorder %v5900_v5, %v8827_v41  ;;  %v3843_v41 = vld [vmem:[%s9671_s3 + $0x20] sm:$0xff] }
 0x24e   : > { %2907 = vperm.xlu1 %5310, %v2818_v31   ;;  %v4366_v43 = vsel %vm938_vm4, 1.0, %v9766_v25  ;;  %v4460_v8 = vsel %vm1448_vm9, 1.0, %v9766_v25  ;;  %v4461_v7 = vsel %vm1449_vm2, 1.0, %v9766_v25 }
 0x250   : > { %v2375_v3 = vpop.permute.xlu1 %2374 }
 0x251   : > { %vm2469_vm1 = vcmp.eq.s32.totalorder %v5887_v18, %v2375_v3  ;;  %vm2470_vm8 = vcmp.eq.s32.totalorder %v5897_v32, %v2375_v3  ;;  %vm2471_vm3 = vcmp.eq.s32.totalorder %v5900_v5, %v2375_v3 }
 0x252   : > { %5311 = vset.pattern.permute.xlu1 %v9754_v20  ;;  %v4649_v36 = vsel %vm2469_vm1, 1.0, %v9766_v25  ;;  %v4650_v42 = vsel %vm2470_vm8, 1.0, %v9766_v25  ;;  %v4651_v63 = vsel %vm2471_vm3, 1.0, %v9766_v25 }
 0x253   : > { %1377 = vperm.xlu1 %5311, %v1284_v14   ;;  %v2757_v31 = vadd.f32 %v4649_v36, %v2245_v10  ;;  %v2759_v28 = vadd.f32 %v4651_v63, %v2247_v0  ;;  %v5122_v14 = vpack.c.bf16 %v3840_v30, %v3839_v53  ;;  %v1225_v36 = vadd.f32 %v4365_v29, %v4269_v6 }
 0x254   : > { %v1226_v63 = vadd.f32 %v4366_v43, %v4270_v33 }
 0x255   : > { %v8870_v2 = vpop.permute.xlu1 %1865  ;;  %5123 = vmatprep.subr.bf16.mxu1 %v5122_v14  ;;  %v1737_v11 = vadd.f32 %v4461_v7, %v1225_v36  ;;  %v3849_v36 = vld [vmem:[%s9671_s3 + $0x50] sm:$0xff] }
 0x256   : > { %5125 = vmatpush3.bf16.msra.mxu1 %v5122_v14  ;;  %vm1960_vm6 = vcmp.eq.s32.totalorder %v5887_v18, %v8870_v2  ;;  %vm1961_vm1 = vcmp.eq.s32.totalorder %v5897_v32, %v8870_v2  ;;  %vm1962_vm8 = vcmp.eq.s32.totalorder %v5900_v5, %v8870_v2 }
 0x257   : > { %5313 = vset.pattern.permute.xlu1 %v9973_v49  ;;  %v2758_v49 = vadd.f32 %v4650_v42, %v2246_v58  ;;  %v4462_v42 = vsel %vm1450_vm5, 1.0, %v9766_v25  ;;  %v4556_v10 = vsel %vm1960_vm6, 1.0, %v9766_v25  ;;  %v4557_v58 = vsel %vm1961_vm1, 1.0, %v9766_v25 }
 0x258   : > { %868 = vperm.xlu1 %5313, %v773_v57   ;;  %v2249_v14 = vadd.f32 %v4557_v58, %v1737_v11 }
 0x25a   : > { %v2887_v51 = vpop.permute.xlu1 %2886 }
 0x25b   : > { %vm2981_vm10 = vcmp.eq.s32.totalorder %v5887_v18, %v2887_v51  ;;  %vm2982_vm13 = vcmp.eq.s32.totalorder %v5897_v32, %v2887_v51  ;;  %vm2983_vm14 = vcmp.eq.s32.totalorder %v5900_v5, %v2887_v51 }
 0x25c   : > { %v4745_v40 = vsel %vm2981_vm10, 1.0, %v9766_v25  ;;  %v4746_v3 = vsel %vm2982_vm13, 1.0, %v9766_v25  ;;  %v4747_v15 = vsel %vm2983_vm14, 1.0, %v9766_v25  ;;  %5314 = vset.pattern.permute.xlu1 %v9889_v61  ;;  %v4268_v61 = vsel %vm424_vm7, 1.0, %v9766_v25 }
 0x25d   : > { %1889 = vperm.xlu1 %5314, %v1796_v1   ;;  %v3270_v60 = vadd.f32 %v4746_v3, %v2758_v49  ;;  %v3271_v44 = vadd.f32 %v4747_v15, %v2759_v28  ;;  %v3269_v57 = vadd.f32 %v4745_v40, %v2757_v31  ;;  %v1224_v4 = vadd.f32 %v4364_v17, %v4268_v61  ;;  %v3844_v31 = vld [vmem:[%s9671_s3 + $0x28] sm:$0xff] }
 0x25e   : > { %v4558_v1 = vsel %vm1962_vm8, 1.0, %v9766_v25  ;;  %v1738_v49 = vadd.f32 %v4462_v42, %v1226_v63  ;;  %v5130_v53 = vpack.c.bf16 %v3844_v31, %v3843_v41  ;;  %v2820_v15 = vadd.s32 250, %v8820_v59  ;;  %v3846_v59 = vld [vmem:[%s9671_s3 + $0x38] sm:$0xff]  ;;  %v3851_v41 = vld [vmem:[%s9671_s3 + $0x60] sm:$0xff]  ;;  %v3852_v31 = vld [vmem:[%s9671_s3 + $0x68] sm:$0xff] }
 0x25f   : > { %v2378_v23 = vpop.permute.xlu1 %2377  ;;  %3526 = vmatprep.mubr.f32.mxu0 %v3270_v60  ;;  %4945 = vmatmul.mubr.f32.gmra.mrb[20].mxu1 %v3271_v44  ;;  %v1736_v0 = vadd.f32 %v4460_v8, %v1224_v4  ;;  %v2309_v4 = vadd.s32 200, %v8489_v56  ;;  %v3848_v8 = vld [vmem:[%s9671_s3 + $0x48] sm:$0xff]  ;;  %v3850_v42 = vld [vmem:[%s9671_s3 + $0x58] sm:$0xff] }
 0x260   : > { %3527 = vmatmul.mubr.f32.gmra.mrb[42].mxu0 %v3269_v57  ;;  %vm2472_vm3 = vcmp.eq.s32.totalorder %v5887_v18, %v2378_v23  ;;  %vm2473_vm7 = vcmp.eq.s32.totalorder %v5897_v32, %v2378_v23  ;;  %vm2474_vm11 = vcmp.eq.s32.totalorder %v5900_v5, %v2378_v23  ;;  %v2250_v3 = vadd.f32 %v4558_v1, %v1738_v49 }
 0x261   : > { %5316 = vset.pattern.permute.xlu1 %v9754_v20  ;;  %v5126_v20 = vpack.c.bf16 %v3842_v62, %v3841_v13  ;;  %v4652_v28 = vsel %vm2472_vm3, 1.0, %v9766_v25  ;;  %v4653_v51 = vsel %vm2473_vm7, 1.0, %v9766_v25  ;;  %v2248_v30 = vadd.f32 %v4556_v10, %v1736_v0  ;;  %v3847_v62 = vld [vmem:[%s9671_s3 + $0x40] sm:$0xff] }
 0x262   : > { %1380 = vperm.xlu1 %5316, %v1285_v21   ;;  %v4654_v40 = vsel %vm2474_vm11, 1.0, %v9766_v25  ;;  %v2761_v44 = vadd.f32 %v4653_v51, %v2249_v14  ;;  %v3845_v21 = vld [vmem:[%s9671_s3 + $0x30] sm:$0xff]  ;;  %v3854_v51 = vld [vmem:[%s9671_s3 + $0x78] sm:$0xff]  ;;  %v10020_v14 = vld [vmem:[#allocation13_spill] sm:$0xff] }
 0x263   : > { %5127 = vmatprep.subr.bf16.mxu1 %v5126_v20  ;;  %v2760_v60 = vadd.f32 %v4652_v28, %v2248_v30  ;;  %v2762_v17 = vadd.f32 %v4654_v40, %v2250_v3  ;;  %v5134_v13 = vpack.c.bf16 %v3846_v59, %v3845_v21  ;;  %v3853_v28 = vld [vmem:[%s9671_s3 + $0x70] sm:$0xff]  ;;  %vm430_vm14 = vcmp.eq.s32.totalorder %v5887_v18, %v10020_v14 }
 0x264   : > { %v8964_v2 = vpop.permute.xlu1 %847  ;;  %5129 = vmatpush3.bf16.msra.mxu1 %v5126_v20  ;;  %vm431_vm9 = vcmp.eq.s32.totalorder %v5897_v32, %v10020_v14  ;;  %vm432_vm2 = vcmp.eq.s32.totalorder %v5900_v5, %v10020_v14  ;;  %v4274_v3 = vsel %vm430_vm14, 1.0, %v9766_v25 }
 0x265   : > { %5131 = vmatprep.subr.bf16.mxu1 %v5130_v53  ;;  %vm942_vm13 = vcmp.eq.s32.totalorder %v5887_v18, %v8964_v2  ;;  %vm943_vm0 = vcmp.eq.s32.totalorder %v5897_v32, %v8964_v2  ;;  %vm944_vm4 = vcmp.eq.s32.totalorder %v5900_v5, %v8964_v2  ;;  %v4275_v21 = vsel %vm431_vm9, 1.0, %v9766_v25 }
 0x266   : > { %5317 = vset.pattern.permute.xlu1 %v9907_v38  ;;  %v4370_v40 = vsel %vm942_vm13, 1.0, %v9766_v25  ;;  %v4276_v59 = vsel %vm432_vm2, 1.0, %v9766_v25 }
 0x267   : > { %2401 = vperm.xlu1 %5317, %v2308_v47  }
 0x268   : > { %5133 = vmatpush3.bf16.msra.mxu1 %v5130_v53  ;;  %v5150_v53 = vpack.c.bf16 %v3854_v51, %v3853_v28 }
 0x269   : > { %v2890_v57 = vpop.permute.xlu1 %2889  ;;  %5135 = vmatprep.subr.bf16.mxu1 %v5134_v13 }
 0x26a   : > { %vm2984_vm12 = vcmp.eq.s32.totalorder %v5887_v18, %v2890_v57  ;;  %vm2985_vm15 = vcmp.eq.s32.totalorder %v5897_v32, %v2890_v57  ;;  %vm2986_vm10 = vcmp.eq.s32.totalorder %v5900_v5, %v2890_v57 }
 0x26b   : > { %v4748_v61 = vsel %vm2984_vm12, 1.0, %v9766_v25  ;;  %v4749_v6 = vsel %vm2985_vm15, 1.0, %v9766_v25  ;;  %v4750_v23 = vsel %vm2986_vm10, 1.0, %v9766_v25  ;;  %5318 = vset.pattern.permute.xlu1 %v9743_v22  ;;  %v5138_v22 = vpack.c.bf16 %v3848_v8, %v3847_v62 }
 0x26c   : > { %2913 = vperm.xlu1 %5318, %v2820_v15   ;;  %v3273_v33 = vadd.f32 %v4749_v6, %v2761_v44  ;;  %v3274_v29 = vadd.f32 %v4750_v23, %v2762_v17  ;;  %v3272_v47 = vadd.f32 %v4748_v61, %v2760_v60  ;;  %v3463_v43 = vpop.f32.mrb[16].mxu0  ;;  %5137 = vmatpush3.bf16.msra.mxu1 %v5134_v13  ;;  %v4371_v15 = vsel %vm943_vm0, 1.0, %v9766_v25 }
 0x26d   : > { %v3465_v7 = vpop.f32.mrb[17].mxu0  ;;  %v3464_v56 = vadd.f32 %v8685_v27, %v3463_v43  ;;  %5139 = vmatprep.subr.bf16.mxu1 %v5138_v22  ;;  %v4372_v60 = vsel %vm944_vm4, 1.0, %v9766_v25  ;;  %v1230_v61 = vadd.f32 %v4370_v40, %v4274_v3  ;;  %v1231_v6 = vadd.f32 %v4371_v15, %v4275_v21 }
 0x26e   : > { %v9000_v20 = vpop.permute.xlu1 %1359  ;;  %3531 = vmatprep.mubr.f32.mxu0 %v3273_v33  ;;  %4947 = vmatprep.mubr.f32.mxu1 %v3274_v29  ;;  %v1232_v33 = vadd.f32 %v4372_v60, %v4276_v59 }
 0x26f   : > { %3532 = vmatmul.mubr.f32.gmra.mrb[44].mxu0 %v3272_v47  ;;  %4948 = vmatmul.mubr.f32.gmra.mrb[22].mxu1 %v8470_v46  ;;  %vm1454_vm5 = vcmp.eq.s32.totalorder %v5887_v18, %v9000_v20  ;;  %vm1455_vm6 = vcmp.eq.s32.totalorder %v5897_v32, %v9000_v20  ;;  %vm1456_vm1 = vcmp.eq.s32.totalorder %v5900_v5, %v9000_v20 }
 0x270   : > { %5319 = vset.pattern.permute.xlu1 %v9907_v38  ;;  %3536 = vmatprep.mubr.f32.mxu0 %v8472_v24  ;;  %v4928_v63 = vpop.f32.mrb[8].mxu1  ;;  %v5142_v38 = vpack.c.bf16 %v3850_v42, %v3849_v36  ;;  %v4466_v29 = vsel %vm1454_vm5, 1.0, %v9766_v25  ;;  %v4467_v47 = vsel %vm1455_vm6, 1.0, %v9766_v25  ;;  %v4468_v43 = vsel %vm1456_vm1, 1.0, %v9766_v25 }
 0x271   : > { %2404 = vperm.xlu1 %5319, %v2309_v4   ;;  %v3468_v10 = vpop.f32.mrb[18].mxu0  ;;  %v3688_v58 = vpop.f32.mrb[9].mxu1  ;;  %5141 = vmatpush3.bf16.msra.mxu1 %v5138_v22  ;;  %v1743_v20 = vadd.f32 %v4467_v47, %v1231_v6  ;;  %v1744_v36 = vadd.f32 %v4468_v43, %v1232_v33 }
 0x272   : > { %v3469_v46 = vadd.f32 %v8685_v27, %v3468_v10  ;;  %v3470_v0 = vpop.f32.mrb[19].mxu0  ;;  %v9014_v24 = vadd.f32 %v3688_v58, %v3464_v56  ;;  %5143 = vmatprep.subr.bf16.mxu1 %v5142_v38  ;;  %v1742_v56 = vadd.f32 %v4466_v29, %v1230_v61 }
 0x273   : > { %3537 = vmatmul.mubr.f32.gmra.mrb[46].mxu0 %v8475_v39  ;;  %v9016_v11 = vpop.permute.xlu1 %850  ;;  %v5146_v39 = vpack.c.bf16 %v3852_v31, %v3851_v41  ;;  %v10021_v41 = vld [vmem:[#allocation12_spill] sm:$0xff]  ;;  %v9091_v31 = vpop.permute.xlu0 %2389 }
 0x274   : > { %v9018_v1 = vadd.f32 %v4928_v63, %v3469_v46  ;;  %vm433_vm10 = vcmp.eq.s32.totalorder %v5887_v18, %v10021_v41  ;;  %vm434_vm13 = vcmp.eq.s32.totalorder %v5897_v32, %v10021_v41  ;;  %vm435_vm14 = vcmp.eq.s32.totalorder %v5900_v5, %v10021_v41 }
 0x275   : > { %5145 = vmatpush3.bf16.msra.mxu1 %v5142_v38  ;;  %vm945_vm2 = vcmp.eq.s32.totalorder %v5887_v18, %v9016_v11  ;;  %vm946_vm5 = vcmp.eq.s32.totalorder %v5897_v32, %v9016_v11  ;;  %vm2485_vm6 = vcmp.eq.s32.totalorder %v5897_v32, %v9091_v31  ;;  %v4278_v21 = vsel %vm434_vm13, 1.0, %v9766_v25 }
 0x276   : > { %5147 = vmatprep.subr.bf16.mxu1 %v5146_v39  ;;  %vm947_vm1 = vcmp.eq.s32.totalorder %v5900_v5, %v9016_v11  ;;  %v4279_v61 = vsel %vm435_vm14, 1.0, %v9766_v25  ;;  %v4373_v6 = vsel %vm945_vm2, 1.0, %v9766_v25  ;;  %v4374_v33 = vsel %vm946_vm5, 1.0, %v9766_v25 }
 0x277   : > { %v9120_v59 = vpop.permute.xlu0 %2398  ;;  %v4665_v29 = vsel %vm2485_vm6, 1.0, %v9766_v25  ;;  %v4375_v47 = vsel %vm947_vm1, 1.0, %v9766_v25 }
 0x278   : > { %v1872_v49 = vpop.permute.xlu1 %1871 }
 0x279   : > { %5149 = vmatpush3.bf16.msra.mxu1 %v5146_v39  ;;  %vm1966_vm8 = vcmp.eq.s32.totalorder %v5887_v18, %v1872_v49  ;;  %vm1967_vm3 = vcmp.eq.s32.totalorder %v5897_v32, %v1872_v49  ;;  %vm1968_vm7 = vcmp.eq.s32.totalorder %v5900_v5, %v1872_v49 }
 0x27a   : > { %5151 = vmatprep.subr.bf16.mxu1 %v5150_v53  ;;  %v4562_v62 = vsel %vm1966_vm8, 1.0, %v9766_v25  ;;  %v4563_v8 = vsel %vm1967_vm3, 1.0, %v9766_v25  ;;  %v4564_v7 = vsel %vm1968_vm7, 1.0, %v9766_v25  ;;  %vm2484_vm7 = vcmp.eq.s32.totalorder %v5887_v18, %v9091_v31 }
 0x27b   : > { %v2254_v46 = vadd.f32 %v4562_v62, %v1742_v56  ;;  %v2255_v58 = vadd.f32 %v4563_v8, %v1743_v20  ;;  %v2256_v0 = vadd.f32 %v4564_v7, %v1744_v36  ;;  %v1235_v8 = vadd.f32 %v4375_v47, %v4279_v61  ;;  %v2902_v36 = vpop.permute.xlu0 %2901 }
 0x27c   : > { %vm2997_vm2 = vcmp.eq.s32.totalorder %v5897_v32, %v2902_v36  ;;  %vm2996_vm5 = vcmp.eq.s32.totalorder %v5887_v18, %v2902_v36 }
 0x27d   : > { %v9034_v30 = vpop.permute.xlu1 %1362  ;;  %5153 = vmatpush3.bf16.msra.mxu1 %v5150_v53 }
 0x27e   : > { %vm1457_vm8 = vcmp.eq.s32.totalorder %v5887_v18, %v9034_v30  ;;  %vm1458_vm3 = vcmp.eq.s32.totalorder %v5897_v32, %v9034_v30 }
 0x27f   : > { %v4469_v11 = vsel %vm1457_vm8, 1.0, %v9766_v25 }
 0x280   : > { %v3473_v44 = vpop.f32.mrb[20].mxu0 }
 0x281   : > { %v3474_v2 = vadd.f32 %v8685_v27, %v3473_v44  ;;  %v3475_v57 = vpop.f32.mrb[21].mxu0 }
 0x282   : > { %v2384_v17 = vpop.permute.xlu1 %2383 }
 0x283   : > { %v4931_v23 = vpop.f32.mrb[10].mxu1  ;;  %vm2478_vm11 = vcmp.eq.s32.totalorder %v5887_v18, %v2384_v17  ;;  %vm2479_vm12 = vcmp.eq.s32.totalorder %v5897_v32, %v2384_v17  ;;  %vm2480_vm15 = vcmp.eq.s32.totalorder %v5900_v5, %v2384_v17  ;;  %v4277_v17 = vsel %vm433_vm10, 1.0, %v9766_v25 }
 0x284   : > { %v3698_v4 = vpop.f32.mrb[11].mxu1  ;;  %v4658_v42 = vsel %vm2478_vm11, 1.0, %v9766_v25  ;;  %v4659_v63 = vsel %vm2479_vm12, 1.0, %v9766_v25  ;;  %v4660_v10 = vsel %vm2480_vm15, 1.0, %v9766_v25  ;;  %vm2486_vm11 = vcmp.eq.s32.totalorder %v5900_v5, %v9091_v31 }
 0x285   : > { %v9074_v13 = vadd.f32 %v3698_v4, %v3474_v2  ;;  %v2766_v28 = vadd.f32 %v4658_v42, %v2254_v46  ;;  %v2767_v51 = vadd.f32 %v4659_v63, %v2255_v58  ;;  %v2768_v53 = vadd.f32 %v4660_v10, %v2256_v0 }
 0x286   : > { %vm1459_vm12 = vcmp.eq.s32.totalorder %v5900_v5, %v9034_v30  ;;  %v1233_v43 = vadd.f32 %v4373_v6, %v4277_v17  ;;  %v4470_v4 = vsel %vm1458_vm3, 1.0, %v9766_v25  ;;  %v1234_v30 = vadd.f32 %v4374_v33, %v4278_v21 }
 0x287   : > { %v9082_v22 = vpop.permute.xlu1 %1874  ;;  %v4471_v62 = vsel %vm1459_vm12, 1.0, %v9766_v25 }
 0x288   : > { %vm1969_vm15 = vcmp.eq.s32.totalorder %v5887_v18, %v9082_v22  ;;  %vm1970_vm10 = vcmp.eq.s32.totalorder %v5897_v32, %v9082_v22  ;;  %vm1971_vm13 = vcmp.eq.s32.totalorder %v5900_v5, %v9082_v22  ;;  %v4666_v22 = vsel %vm2486_vm11, 1.0, %v9766_v25 }
 0x289   : > { %v3478_v38 = vpop.f32.mrb[22].mxu0  ;;  %v4565_v7 = vsel %vm1969_vm15, 1.0, %v9766_v25  ;;  %v4566_v56 = vsel %vm1970_vm10, 1.0, %v9766_v25  ;;  %v1745_v42 = vadd.f32 %v4469_v11, %v1233_v43  ;;  %v1746_v63 = vadd.f32 %v4470_v4, %v1234_v30 }
 0x28a   : > { %v3479_v49 = vadd.f32 %v8685_v27, %v3478_v38  ;;  %v3480_v39 = vpop.f32.mrb[23].mxu0  ;;  %v4567_v10 = vsel %vm1971_vm13, 1.0, %v9766_v25  ;;  %v1747_v46 = vadd.f32 %v4471_v62, %v1235_v8  ;;  %v4664_v38 = vsel %vm2484_vm7, 1.0, %v9766_v25 }
 0x28b   : > { %v2257_v41 = vadd.f32 %v4565_v7, %v1745_v42 }
 0x28c   : > { %v2896_v14 = vpop.permute.xlu1 %2895  ;;  %v9096_v40 = vadd.f32 %v4931_v23, %v3479_v49  ;;  %v2258_v49 = vadd.f32 %v4566_v56, %v1746_v63 }
 0x28d   : > { %vm2990_vm0 = vcmp.eq.s32.totalorder %v5887_v18, %v2896_v14  ;;  %vm2991_vm4 = vcmp.eq.s32.totalorder %v5897_v32, %v2896_v14  ;;  %vm2992_vm9 = vcmp.eq.s32.totalorder %v5900_v5, %v2896_v14 }
 0x28e   : > { %v4754_v3 = vsel %vm2990_vm0, 1.0, %v9766_v25  ;;  %v4755_v15 = vsel %vm2991_vm4, 1.0, %v9766_v25  ;;  %v4756_v60 = vsel %vm2992_vm9, 1.0, %v9766_v25  ;;  %vm2998_vm9 = vcmp.eq.s32.totalorder %v5900_v5, %v2902_v36 }
 0x28f   : > { %v3279_v44 = vadd.f32 %v4755_v15, %v2767_v51  ;;  %v3280_v2 = vadd.f32 %v4756_v60, %v2768_v53  ;;  %v3278_v57 = vadd.f32 %v4754_v3, %v2766_v28  ;;  %v2773_v28 = vadd.f32 %v4665_v29, %v8144_v34 }
 0x290   : > { %v2774_v51 = vadd.f32 %v4666_v22, %v8147_v37  ;;  %v2259_v53 = vadd.f32 %v4567_v10, %v1747_v46  ;;  %v4762_v14 = vsel %vm2998_vm9, 1.0, %v9766_v25  ;;  %v4761_v37 = vsel %vm2997_vm2, 1.0, %v9766_v25 }
 0x291   : > { %v2387_v23 = vpop.permute.xlu1 %2386  ;;  %3541 = vmatprep.mubr.f32.mxu0 %v3279_v44  ;;  %4950 = vmatprep.mubr.f32.mxu1 %v3280_v2  ;;  %v4760_v29 = vsel %vm2996_vm5, 1.0, %v9766_v25  ;;  %v3285_v43 = vadd.f32 %v4761_v37, %v2773_v28  ;;  %vm2494_vm9 = vcmp.eq.s32.totalorder %v5897_v32, %v9120_v59 }
 0x292   : > { %3542 = vmatmul.mubr.f32.gmra.mrb[48].mxu0 %v3278_v57  ;;  %vm2481_vm14 = vcmp.eq.s32.totalorder %v5887_v18, %v2387_v23  ;;  %vm2482_vm0 = vcmp.eq.s32.totalorder %v5897_v32, %v2387_v23  ;;  %vm2483_vm4 = vcmp.eq.s32.totalorder %v5900_v5, %v2387_v23  ;;  %v2772_v23 = vadd.f32 %v4664_v38, %v8138_v16 }
 0x293   : > { %v4661_v58 = vsel %vm2481_vm14, 1.0, %v9766_v25  ;;  %v4662_v0 = vsel %vm2482_vm0, 1.0, %v9766_v25  ;;  %v4663_v39 = vsel %vm2483_vm4, 1.0, %v9766_v25  ;;  %v3286_v33 = vadd.f32 %v4762_v14, %v2774_v51 }
 0x294   : > { %v2769_v3 = vadd.f32 %v4661_v58, %v2257_v41  ;;  %v2770_v15 = vadd.f32 %v4662_v0, %v2258_v49  ;;  %v2771_v44 = vadd.f32 %v4663_v39, %v2259_v53  ;;  %v3284_v11 = vadd.f32 %v4760_v29, %v2772_v23  ;;  %v10022_v58 = vld [vmem:[#allocation14_spill] sm:$0xff] }
 0x295   : > { %vm439_vm3 = vcmp.eq.s32.totalorder %v5887_v18, %v10022_v58  ;;  %vm440_vm7 = vcmp.eq.s32.totalorder %v5897_v32, %v10022_v58  ;;  %vm441_vm12 = vcmp.eq.s32.totalorder %v5900_v5, %v10022_v58  ;;  %vm2493_vm0 = vcmp.eq.s32.totalorder %v5887_v18, %v9120_v59 }
 0x296   : > { %v9160_v20 = vpop.permute.xlu1 %856  ;;  %v4283_v0 = vsel %vm439_vm3, 1.0, %v9766_v25  ;;  %v4284_v38 = vsel %vm440_vm7, 1.0, %v9766_v25  ;;  %v4285_v39 = vsel %vm441_vm12, 1.0, %v9766_v25 }
 0x297   : > { %vm951_vm11 = vcmp.eq.s32.totalorder %v5887_v18, %v9160_v20  ;;  %vm952_vm15 = vcmp.eq.s32.totalorder %v5897_v32, %v9160_v20  ;;  %vm953_vm10 = vcmp.eq.s32.totalorder %v5900_v5, %v9160_v20 }
 0x298   : > { %v4379_v41 = vsel %vm951_vm11, 1.0, %v9766_v25  ;;  %v4380_v28 = vsel %vm952_vm15, 1.0, %v9766_v25  ;;  %v4381_v20 = vsel %vm953_vm10, 1.0, %v9766_v25  ;;  %vm2495_vm15 = vcmp.eq.s32.totalorder %v5900_v5, %v9120_v59 }
 0x299   : > { %v1239_v51 = vadd.f32 %v4379_v41, %v4283_v0 }
 0x29b   : > { %v2899_v60 = vpop.permute.xlu1 %2898  ;;  %v3483_v31 = vpop.f32.mrb[24].mxu0 }
 0x29c   : > { %vm2993_vm6 = vcmp.eq.s32.totalorder %v5887_v18, %v2899_v60  ;;  %vm2994_vm1 = vcmp.eq.s32.totalorder %v5897_v32, %v2899_v60  ;;  %vm2995_vm8 = vcmp.eq.s32.totalorder %v5900_v5, %v2899_v60  ;;  %v3485_v34 = vpop.f32.mrb[25].mxu0  ;;  %v3484_v30 = vadd.f32 %v8685_v27, %v3483_v31  ;;  %v10023_v31 = vld [vmem:[#allocation16_spill] sm:$0xff] }
 0x29d   : > { %v4757_v2 = vsel %vm2993_vm6, 1.0, %v9766_v25  ;;  %v4758_v57 = vsel %vm2994_vm1, 1.0, %v9766_v25  ;;  %v4759_v17 = vsel %vm2995_vm8, 1.0, %v9766_v25  ;;  %vm442_vm3 = vcmp.eq.s32.totalorder %v5887_v18, %v10023_v31 }
 0x29e   : > { %v3282_v21 = vadd.f32 %v4758_v57, %v2770_v15  ;;  %v3283_v61 = vadd.f32 %v4759_v17, %v2771_v44  ;;  %v3281_v6 = vadd.f32 %v4757_v2, %v2769_v3  ;;  %v1240_v15 = vadd.f32 %v4380_v28, %v4284_v38 }
 0x29f   : > { %vm443_vm7 = vcmp.eq.s32.totalorder %v5897_v32, %v10023_v31  ;;  %v1241_v44 = vadd.f32 %v4381_v20, %v4285_v39  ;;  %vm444_vm12 = vcmp.eq.s32.totalorder %v5900_v5, %v10023_v31 }
 0x2a0   : > { %v1369_v47 = vpop.permute.xlu1 %1368  ;;  %3546 = vmatprep.mubr.f32.mxu0 %v3282_v21  ;;  %4951 = vmatmul.mubr.f32.gmra.mrb[24].mxu1 %v3283_v61 }
 0x2a1   : > { %3547 = vmatmul.mubr.f32.gmra.mrb[50].mxu0 %v3281_v6  ;;  %4953 = vmatprep.mubr.f32.mxu1 %v3286_v33  ;;  %vm1463_vm13 = vcmp.eq.s32.totalorder %v5887_v18, %v1369_v47  ;;  %vm1464_vm14 = vcmp.eq.s32.totalorder %v5897_v32, %v1369_v47  ;;  %vm1465_vm4 = vcmp.eq.s32.totalorder %v5900_v5, %v1369_v47  ;;  %v9265_v33 = vsel %vm2493_vm0, 1.0, %v9766_v25 }
 0x2a2   : > { %3551 = vmatprep.mubr.f32.mxu0 %v3285_v43  ;;  %v4475_v53 = vsel %vm1463_vm13, 1.0, %v9766_v25  ;;  %v4476_v14 = vsel %vm1464_vm14, 1.0, %v9766_v25  ;;  %v4477_v60 = vsel %vm1465_vm4, 1.0, %v9766_v25 }
 0x2a3   : > { %v1751_v57 = vadd.f32 %v4475_v53, %v1239_v51  ;;  %v1752_v17 = vadd.f32 %v4476_v14, %v1240_v15  ;;  %v1753_v61 = vadd.f32 %v4477_v60, %v1241_v44  ;;  %v4286_v53 = vsel %vm442_vm3, 1.0, %v9766_v25 }
 0x2a5   : > { %v9191_v4 = vpop.permute.xlu1 %859  ;;  %3552 = vmatmul.mubr.f32.gmra.mrb[52].mxu0 %v3284_v11  ;;  %v9272_v11 = vsel %vm2494_vm9, 1.0, %v9766_v25 }
 0x2a7   : > { %v4934_v62 = vpop.f32.mrb[12].mxu1 }
 0x2a8   : > { %v3488_v16 = vpop.f32.mrb[26].mxu0  ;;  %v3708_v8 = vpop.f32.mrb[13].mxu1 }
 0x2a9   : > { %v3489_v7 = vadd.f32 %v8685_v27, %v3488_v16  ;;  %v9195_v56 = vadd.f32 %v3708_v8, %v3484_v30  ;;  %v3490_v22 = vpop.f32.mrb[27].mxu0  ;;  %v9211_v27 = vpop.permute.xlu0 %2910  ;;  %v9275_v30 = vsel %vm2495_vm15, 1.0, %v9766_v25 }
 0x2aa   : > { %v1881_v36 = vpop.permute.xlu1 %1880 }
 0x2ab   : > { %v9197_v42 = vadd.f32 %v4934_v62, %v3489_v7  ;;  %vm1975_vm2 = vcmp.eq.s32.totalorder %v5887_v18, %v1881_v36  ;;  %vm1976_vm5 = vcmp.eq.s32.totalorder %v5897_v32, %v1881_v36  ;;  %vm1977_vm6 = vcmp.eq.s32.totalorder %v5900_v5, %v1881_v36 }
 0x2ac   : > { %v9199_v63 = vpop.f32.mrb[28].mxu0  ;;  %v4571_v34 = vsel %vm1975_vm2, 1.0, %v9766_v25  ;;  %v4572_v37 = vsel %vm1976_vm5, 1.0, %v9766_v25  ;;  %v4573_v21 = vsel %vm1977_vm6, 1.0, %v9766_v25  ;;  %vm3006_vm2 = vcmp.eq.s32.totalorder %v5897_v32, %v9211_v27 }
 0x2ad   : > { %v3495_v10 = vpop.f32.mrb[29].mxu0  ;;  %v1887_v3 = vpop.permute.xlu0 %1886  ;;  %v2263_v29 = vadd.f32 %v4571_v34, %v1751_v57  ;;  %v2264_v47 = vadd.f32 %v4572_v37, %v1752_v17  ;;  %v2265_v62 = vadd.f32 %v4573_v21, %v1753_v61  ;;  %vm954_vm5 = vcmp.eq.s32.totalorder %v5887_v18, %v9191_v4 }
 0x2ae   : > { %vm1983_vm10 = vcmp.eq.s32.totalorder %v5900_v5, %v1887_v3  ;;  %vm1981_vm13 = vcmp.eq.s32.totalorder %v5887_v18, %v1887_v3  ;;  %vm1982_vm14 = vcmp.eq.s32.totalorder %v5897_v32, %v1887_v3  ;;  %vm955_vm6 = vcmp.eq.s32.totalorder %v5897_v32, %v9191_v4 }
 0x2af   : > { %v9201_v46 = vpop.permute.xlu1 %1371  ;;  %v4579_v16 = vsel %vm1983_vm10, 1.0, %v9766_v25  ;;  %v4578_v39 = vsel %vm1982_vm14, 1.0, %v9766_v25  ;;  %v4382_v20 = vsel %vm954_vm5, 1.0, %v9766_v25  ;;  %v4383_v14 = vsel %vm955_vm6, 1.0, %v9766_v25 }
 0x2b0   : > { %v2271_v28 = vadd.f32 %v4579_v16, %v8071_v26  ;;  %vm1467_vm15 = vcmp.eq.s32.totalorder %v5897_v32, %v9201_v46  ;;  %v4287_v26 = vsel %vm443_vm7, 1.0, %v9766_v25  ;;  %vm1468_vm10 = vcmp.eq.s32.totalorder %v5900_v5, %v9201_v46 }
 0x2b1   : > { %v4288_v3 = vsel %vm444_vm12, 1.0, %v9766_v25  ;;  %v1242_v60 = vadd.f32 %v4382_v20, %v4286_v53  ;;  %v4479_v44 = vsel %vm1467_vm15, 1.0, %v9766_v25  ;;  %v4480_v31 = vsel %vm1468_vm10, 1.0, %v9766_v25 }
 0x2b2   : > { %v2270_v21 = vadd.f32 %v4578_v39, %v8069_v35 }
 0x2b4   : > { %v2393_v49 = vpop.permute.xlu1 %2392  ;;  %v2782_v39 = vadd.f32 %v9272_v11, %v2270_v21 }
 0x2b5   : > { %vm2487_vm1 = vcmp.eq.s32.totalorder %v5887_v18, %v2393_v49  ;;  %vm2488_vm8 = vcmp.eq.s32.totalorder %v5897_v32, %v2393_v49  ;;  %vm2489_vm11 = vcmp.eq.s32.totalorder %v5900_v5, %v2393_v49  ;;  %v4577_v49 = vsel %vm1981_vm13, 1.0, %v9766_v25 }
 0x2b6   : > { %v4667_v6 = vsel %vm2487_vm1, 1.0, %v9766_v25  ;;  %v4668_v23 = vsel %vm2488_vm8, 1.0, %v9766_v25  ;;  %v4669_v43 = vsel %vm2489_vm11, 1.0, %v9766_v25  ;;  %vm3007_vm1 = vcmp.eq.s32.totalorder %v5900_v5, %v9211_v27 }
 0x2b7   : > { %v2775_v8 = vadd.f32 %v4667_v6, %v2263_v29  ;;  %v2776_v7 = vadd.f32 %v4668_v23, %v2264_v47  ;;  %v2777_v36 = vadd.f32 %v4669_v43, %v2265_v62  ;;  %vm956_vm8 = vcmp.eq.s32.totalorder %v5900_v5, %v9191_v4 }
 0x2b8   : > { %vm1466_vm11 = vcmp.eq.s32.totalorder %v5887_v18, %v9201_v46  ;;  %v4384_v15 = vsel %vm956_vm8, 1.0, %v9766_v25  ;;  %v1243_v46 = vadd.f32 %v4383_v14, %v4287_v26  ;;  %v4770_v43 = vsel %vm3006_vm2, 1.0, %v9766_v25 }
 0x2b9   : > { %v9245_v2 = vpop.permute.xlu1 %1883  ;;  %v4478_v4 = vsel %vm1466_vm11, 1.0, %v9766_v25  ;;  %v1244_v34 = vadd.f32 %v4384_v15, %v4288_v3 }
 0x2ba   : > { %vm1978_vm3 = vcmp.eq.s32.totalorder %v5887_v18, %v9245_v2  ;;  %vm1979_vm7 = vcmp.eq.s32.totalorder %v5897_v32, %v9245_v2  ;;  %vm1980_vm13 = vcmp.eq.s32.totalorder %v5900_v5, %v9245_v2  ;;  %v1754_v61 = vadd.f32 %v4478_v4, %v1242_v60 }
 0x2bb   : > { %v4574_v37 = vsel %vm1978_vm3, 1.0, %v9766_v25  ;;  %v4575_v57 = vsel %vm1979_vm7, 1.0, %v9766_v25  ;;  %v1755_v2 = vadd.f32 %v4479_v44, %v1243_v46  ;;  %v4576_v6 = vsel %vm1980_vm13, 1.0, %v9766_v25 }
 0x2bc   : > { %v1756_v23 = vadd.f32 %v4480_v31, %v1244_v34  ;;  %v2266_v62 = vadd.f32 %v4574_v37, %v1754_v61  ;;  %v3294_v31 = vadd.f32 %v4770_v43, %v2782_v39 }
 0x2bd   : > { %v2267_v16 = vadd.f32 %v4575_v57, %v1755_v2  ;;  %v10024_v57 = vld [vmem:[#allocation17_spill] sm:$0xff] }
 0x2be   : > { %v2905_v22 = vpop.permute.xlu1 %2904  ;;  %vm451_vm6 = vcmp.eq.s32.totalorder %v5887_v18, %v10024_v57  ;;  %vm453_vm8 = vcmp.eq.s32.totalorder %v5900_v5, %v10024_v57 }
 0x2bf   : > { %vm2999_vm0 = vcmp.eq.s32.totalorder %v5887_v18, %v2905_v22  ;;  %vm3000_vm4 = vcmp.eq.s32.totalorder %v5897_v32, %v2905_v22  ;;  %vm3001_vm9 = vcmp.eq.s32.totalorder %v5900_v5, %v2905_v22  ;;  %v2268_v22 = vadd.f32 %v4576_v6, %v1756_v23 }
 0x2c0   : > { %v4763_v59 = vsel %vm2999_vm0, 1.0, %v9766_v25  ;;  %v4764_v10 = vsel %vm3000_vm4, 1.0, %v9766_v25  ;;  %v4765_v58 = vsel %vm3001_vm9, 1.0, %v9766_v25  ;;  %vm3005_vm4 = vcmp.eq.s32.totalorder %v5887_v18, %v9211_v27  ;;  %v10025_v27 = vld [vmem:[#allocation18_spill] sm:$0xff] }
 0x2c1   : > { %v3288_v0 = vadd.f32 %v4764_v10, %v2776_v7  ;;  %v3289_v38 = vadd.f32 %v4765_v58, %v2777_v36  ;;  %v3287_v41 = vadd.f32 %v4763_v59, %v2775_v8  ;;  %v4771_v8 = vsel %vm3007_vm1, 1.0, %v9766_v25  ;;  %v9363_v59 = vld [vmem:[%s9670_s2] ss:$0 sm:$0xff] }
 0x2c2   : > { %v2269_v7 = vadd.f32 %v4577_v49, %v8067_v52  ;;  %v2783_v36 = vadd.f32 %v9275_v30, %v2271_v28  ;;  %v3494_v10 = vadd.f32 %v9363_v59, %v9199_v63  ;;  %v4769_v44 = vsel %vm3005_vm4, 1.0, %v9766_v25 }
 0x2c3   : > { %v2396_v51 = vpop.permute.xlu1 %2395  ;;  %3556 = vmatprep.mubr.f32.mxu0 %v3288_v0  ;;  %4954 = vmatmul.mubr.f32.gmra.mrb[26].mxu1 %v3289_v38  ;;  %vm452_vm1 = vcmp.eq.s32.totalorder %v5897_v32, %v10024_v57  ;;  %vm448_vm11 = vcmp.eq.s32.totalorder %v5887_v18, %v10025_v27  ;;  %vm449_vm3 = vcmp.eq.s32.totalorder %v5897_v32, %v10025_v27  ;;  %v4295_v21 = vsel %vm451_vm6, 1.0, %v9766_v25 }
 0x2c4   : > { %3557 = vmatmul.mubr.f32.gmra.mrb[54].mxu0 %v3287_v41  ;;  %vm2490_vm12 = vcmp.eq.s32.totalorder %v5887_v18, %v2396_v51  ;;  %vm2491_vm14 = vcmp.eq.s32.totalorder %v5897_v32, %v2396_v51  ;;  %vm2492_vm0 = vcmp.eq.s32.totalorder %v5900_v5, %v2396_v51  ;;  %v3295_v60 = vadd.f32 %v4771_v8, %v2783_v36 }
 0x2c5   : > { %v4670_v29 = vsel %vm2490_vm12, 1.0, %v9766_v25  ;;  %v4671_v47 = vsel %vm2491_vm14, 1.0, %v9766_v25  ;;  %v4672_v35 = vsel %vm2492_vm0, 1.0, %v9766_v25  ;;  %v2781_v4 = vadd.f32 %v9265_v33, %v2269_v7  ;;  %v9396_v33 = vpop.permute.xlu0 %1892 }
 0x2c6   : > { %v2778_v58 = vadd.f32 %v4670_v29, %v2266_v62  ;;  %v2779_v0 = vadd.f32 %v4671_v47, %v2267_v16  ;;  %v2780_v20 = vadd.f32 %v4672_v35, %v2268_v22  ;;  %vm450_vm7 = vcmp.eq.s32.totalorder %v5900_v5, %v10025_v27 }
 0x2c7   : > { %v3293_v34 = vadd.f32 %v4769_v44, %v2781_v4  ;;  %v4292_v61 = vsel %vm448_vm11, 1.0, %v9766_v25  ;;  %v4296_v2 = vsel %vm452_vm1, 1.0, %v9766_v25  ;;  %v9408_v6 = vsel %vm453_vm8, 1.0, %v9766_v25 }
 0x2c8   : > { %v9341_v17 = vpop.permute.xlu1 %865  ;;  %vm1987_vm12 = vcmp.eq.s32.totalorder %v5887_v18, %v9396_v33  ;;  %v4293_v8 = vsel %vm449_vm3, 1.0, %v9766_v25  ;;  %v4294_v22 = vsel %vm450_vm7, 1.0, %v9766_v25 }
 0x2c9   : > { %vm960_vm15 = vcmp.eq.s32.totalorder %v5887_v18, %v9341_v17  ;;  %vm961_vm10 = vcmp.eq.s32.totalorder %v5897_v32, %v9341_v17  ;;  %vm962_vm13 = vcmp.eq.s32.totalorder %v5900_v5, %v9341_v17 }
 0x2ca   : > { %v4388_v47 = vsel %vm960_vm15, 1.0, %v9766_v25  ;;  %v4389_v43 = vsel %vm961_vm10, 1.0, %v9766_v25  ;;  %v4390_v36 = vsel %vm962_vm13, 1.0, %v9766_v25  ;;  %vm1989_vm15 = vcmp.eq.s32.totalorder %v5900_v5, %v9396_v33 }
 0x2cd   : > { %v2908_v38 = vpop.permute.xlu1 %2907  ;;  %v4937_v41 = vpop.f32.mrb[14].mxu1 }
 0x2ce   : > { %vm3002_vm9 = vcmp.eq.s32.totalorder %v5887_v18, %v2908_v38  ;;  %vm3003_vm2 = vcmp.eq.s32.totalorder %v5897_v32, %v2908_v38  ;;  %vm3004_vm5 = vcmp.eq.s32.totalorder %v5900_v5, %v2908_v38  ;;  %v3498_v52 = vpop.f32.mrb[30].mxu0  ;;  %v3718_v30 = vpop.f32.mrb[15].mxu1 }
 0x2cf   : > { %v4766_v49 = vsel %vm3002_vm9, 1.0, %v9766_v25  ;;  %v4767_v28 = vsel %vm3003_vm2, 1.0, %v9766_v25  ;;  %v4768_v63 = vsel %vm3004_vm5, 1.0, %v9766_v25  ;;  %v3499_v51 = vadd.f32 %v9363_v59, %v3498_v52  ;;  %v3500_v53 = vpop.f32.mrb[31].mxu0 }
 0x2d0   : > { %v9375_v26 = vadd.f32 %v3718_v30, %v3494_v10  ;;  %v3291_v11 = vadd.f32 %v4767_v28, %v2779_v0  ;;  %v3292_v14 = vadd.f32 %v4768_v63, %v2780_v20  ;;  %v3290_v3 = vadd.f32 %v4766_v49, %v2778_v58 }
 0x2d1   : > { %v9377_v15 = vadd.f32 %v4937_v41, %v3499_v51  ;;  %v1248_v58 = vadd.f32 %v4388_v47, %v4292_v61  ;;  %v1249_v0 = vadd.f32 %v4389_v43, %v4293_v8  ;;  %vm1988_vm2 = vcmp.eq.s32.totalorder %v5897_v32, %v9396_v33  ;;  %v9444_v51 = vpop.permute.xlu0 %2916 }
 0x2d2   : > { %v1378_v46 = vpop.permute.xlu1 %1377  ;;  %3561 = vmatprep.mubr.f32.mxu0 %v3291_v11  ;;  %4956 = vmatprep.mubr.f32.mxu1 %v3292_v14  ;;  %v9433_v41 = vsel %vm1987_vm12, 1.0, %v9766_v25  ;;  %v1250_v28 = vadd.f32 %v4390_v36, %v4294_v22  ;;  %vm3011_vm7 = vcmp.eq.s32.totalorder %v5887_v18, %v9444_v51 }
 0x2d3   : > { %3562 = vmatmul.mubr.f32.gmra.mrb[56].mxu0 %v3290_v3  ;;  %4957 = vmatmul.mubr.f32.gmra.mrb[28].mxu1 %v3295_v60  ;;  %vm1472_vm14 = vcmp.eq.s32.totalorder %v5887_v18, %v1378_v46  ;;  %vm1473_vm0 = vcmp.eq.s32.totalorder %v5897_v32, %v1378_v46  ;;  %vm1474_vm4 = vcmp.eq.s32.totalorder %v5900_v5, %v1378_v46  ;;  %v4584_v60 = vsel %vm1988_vm2, 1.0, %v9766_v25 }
 0x2d4   : > { %3566 = vmatprep.mubr.f32.mxu0 %v3294_v31  ;;  %v4484_v39 = vsel %vm1472_vm14, 1.0, %v9766_v25  ;;  %v4485_v20 = vsel %vm1473_vm0, 1.0, %v9766_v25  ;;  %v4486_v17 = vsel %vm1474_vm4, 1.0, %v9766_v25  ;;  %vm3012_vm4 = vcmp.eq.s32.totalorder %v5897_v32, %v9444_v51 }
 0x2d5   : > { %v1760_v11 = vadd.f32 %v4484_v39, %v1248_v58  ;;  %v1761_v14 = vadd.f32 %v4485_v20, %v1249_v0  ;;  %v1762_v3 = vadd.f32 %v4486_v17, %v1250_v28  ;;  %v4585_v17 = vsel %vm1989_vm15, 1.0, %v9766_v25 }
 0x2d6   : > { %v4776_v33 = vsel %vm3012_vm4, 1.0, %v9766_v25 }
 0x2d7   : > { %v869_v37 = vpop.permute.xlu1 %868  ;;  %3567 = vmatmul.mubr.f32.gmra.mrb[58].mxu0 %v3293_v34 }
 0x2d8   : > { %vm963_vm9 = vcmp.eq.s32.totalorder %v5887_v18, %v869_v37  ;;  %vm964_vm5 = vcmp.eq.s32.totalorder %v5897_v32, %v869_v37  ;;  %vm965_vm6 = vcmp.eq.s32.totalorder %v5900_v5, %v869_v37 }
 0x2d9   : > { %v4391_v63 = vsel %vm963_vm9, 1.0, %v9766_v25  ;;  %v4392_v4 = vsel %vm964_vm5, 1.0, %v9766_v25  ;;  %v4393_v44 = vsel %vm965_vm6, 1.0, %v9766_v25  ;;  %vm3013_vm6 = vcmp.eq.s32.totalorder %v5900_v5, %v9444_v51 }
 0x2da   : > { %v1251_v46 = vadd.f32 %v4391_v63, %v4295_v21 }
 0x2dc   : > { %v1890_v23 = vpop.permute.xlu1 %1889  ;;  %v3503_v29 = vpop.f32.mrb[32].mxu0 }
 0x2dd   : > { %v3504_v62 = vadd.f32 %v9363_v59, %v3503_v29  ;;  %v4940_v16 = vpop.f32.mrb[16].mxu1  ;;  %v3505_v35 = vpop.f32.mrb[33].mxu0  ;;  %vm1984_vm1 = vcmp.eq.s32.totalorder %v5887_v18, %v1890_v23  ;;  %vm1985_vm8 = vcmp.eq.s32.totalorder %v5897_v32, %v1890_v23  ;;  %vm1986_vm11 = vcmp.eq.s32.totalorder %v5900_v5, %v1890_v23 }
 0x2de   : > { %v3728_v7 = vpop.f32.mrb[17].mxu1  ;;  %v4580_v31 = vsel %vm1984_vm1, 1.0, %v9766_v25  ;;  %v4581_v34 = vsel %vm1985_vm8, 1.0, %v9766_v25  ;;  %v4582_v37 = vsel %vm1986_vm11, 1.0, %v9766_v25  ;;  %v1252_v29 = vadd.f32 %v4392_v4, %v4296_v2 }
 0x2df   : > { %v9428_v10 = vadd.f32 %v3728_v7, %v3504_v62  ;;  %v2272_v47 = vadd.f32 %v4580_v31, %v1760_v11  ;;  %v2273_v43 = vadd.f32 %v4581_v34, %v1761_v14  ;;  %v2274_v35 = vadd.f32 %v4582_v37, %v1762_v3 }
 0x2e0   : > { %v3508_v38 = vpop.f32.mrb[34].mxu0  ;;  %v4775_v14 = vsel %vm3011_vm7, 1.0, %v9766_v25 }
 0x2e1   : > { %v1381_v52 = vpop.permute.xlu1 %1380  ;;  %v3509_v30 = vadd.f32 %v9363_v59, %v3508_v38  ;;  %v3510_v49 = vpop.f32.mrb[35].mxu0 }
 0x2e2   : > { %vm1475_vm10 = vcmp.eq.s32.totalorder %v5887_v18, %v1381_v52  ;;  %vm1476_vm3 = vcmp.eq.s32.totalorder %v5897_v32, %v1381_v52  ;;  %vm1477_vm13 = vcmp.eq.s32.totalorder %v5900_v5, %v1381_v52 }
 0x2e3   : > { %v9449_v53 = vadd.f32 %v4940_v16, %v3509_v30  ;;  %v4487_v27 = vsel %vm1475_vm10, 1.0, %v9766_v25  ;;  %v4488_v61 = vsel %vm1476_vm3, 1.0, %v9766_v25  ;;  %v1253_v16 = vadd.f32 %v4393_v44, %v9408_v6 }
 0x2e4   : > { %v4489_v8 = vsel %vm1477_vm13, 1.0, %v9766_v25  ;;  %v1763_v7 = vadd.f32 %v4487_v27, %v1251_v46  ;;  %v1764_v22 = vadd.f32 %v4488_v61, %v1252_v29  ;;  %v4777_v44 = vsel %vm3013_vm6, 1.0, %v9766_v25 }
 0x2e5   : > { %v1765_v2 = vadd.f32 %v4489_v8, %v1253_v16  ;;  %v3808_v27 = vmax.f32 %v8720_v55, 0.0  ;;  %v3809_v61 = vmax.f32 %v8761_v54, 0.0  ;;  %v3814_v55 = vmax.f32 %v8833_v48, 0.0 }
 0x2e6   : > { %v2402_v57 = vpop.permute.xlu1 %2401  ;;  %v2275_v28 = vadd.f32 %v9433_v41, %v1763_v7  ;;  %v2276_v63 = vadd.f32 %v4584_v60, %v1764_v22  ;;  %v3815_v54 = vmax.f32 %v9014_v24, 0.0  ;;  %v3818_v29 = vmax.f32 %v9096_v40, 0.0 }
 0x2e7   : > { %vm2496_vm12 = vcmp.eq.s32.totalorder %v5887_v18, %v2402_v57  ;;  %vm2497_vm14 = vcmp.eq.s32.totalorder %v5897_v32, %v2402_v57  ;;  %vm2498_vm0 = vcmp.eq.s32.totalorder %v5900_v5, %v2402_v57  ;;  %v2277_v3 = vadd.f32 %v4585_v17, %v1765_v2 }
 0x2e8   : > { %v4676_v21 = vsel %vm2496_vm12, 1.0, %v9766_v25  ;;  %v4677_v23 = vsel %vm2497_vm14, 1.0, %v9766_v25  ;;  %v4678_v62 = vsel %vm2498_vm0, 1.0, %v9766_v25  ;;  %v3807_v57 = vmax.f32 %v8700_v19, 0.0 }
 0x2e9   : > { %v2784_v36 = vadd.f32 %v4676_v21, %v2272_v47  ;;  %v2785_v58 = vadd.f32 %v4677_v23, %v2273_v43  ;;  %v2786_v38 = vadd.f32 %v4678_v62, %v2274_v35  ;;  %v3812_v19 = vmax.f32 %v8808_v12, 0.0 }
 0x2ea   : > { %v3813_v23 = vmax.f32 %v8835_v9, 0.0  ;;  %v3819_v12 = vmax.f32 %v9195_v56, 0.0  ;;  %v3820_v48 = vmax.f32 %v9197_v42, 0.0  ;;  %v3822_v56 = vmax.f32 %v9377_v15, 0.0 }
 0x2eb   : > { %v2914_v0 = vpop.permute.xlu1 %2913  ;;  %v3823_v7 = vmax.f32 %v9428_v10, 0.0  ;;  %v3824_v42 = vmax.f32 %v9449_v53, 0.0 }
 0x2ec   : > { %vm3008_vm9 = vcmp.eq.s32.totalorder %v5887_v18, %v2914_v0  ;;  %vm3009_vm2 = vcmp.eq.s32.totalorder %v5897_v32, %v2914_v0  ;;  %vm3010_vm5 = vcmp.eq.s32.totalorder %v5900_v5, %v2914_v0 }
 0x2ed   : > { %v4772_v6 = vsel %vm3008_vm9, 1.0, %v9766_v25  ;;  %v4773_v39 = vsel %vm3009_vm2, 1.0, %v9766_v25  ;;  %v4774_v20 = vsel %vm3010_vm5, 1.0, %v9766_v25 }
 0x2ee   : > { %v3297_v52 = vadd.f32 %v4773_v39, %v2785_v58  ;;  %v3298_v30 = vadd.f32 %v4774_v20, %v2786_v38  ;;  %v3296_v49 = vadd.f32 %v4772_v6, %v2784_v36 }
 0x2f0   : > { %v2405_v11 = vpop.permute.xlu1 %2404  ;;  %3571 = vmatprep.mubr.f32.mxu0 %v3297_v52  ;;  %4959 = vmatprep.mubr.f32.mxu1 %v3298_v30 }
 0x2f1   : > { %vm2499_vm1 = vcmp.eq.s32.totalorder %v5887_v18, %v2405_v11  ;;  %vm2500_vm8 = vcmp.eq.s32.totalorder %v5897_v32, %v2405_v11  ;;  %vm2501_vm11 = vcmp.eq.s32.totalorder %v5900_v5, %v2405_v11  ;;  %3572 = vmatmul.mubr.f32.gmra.mrb[60].mxu0 %v3296_v49  ;;  %v3811_v5 = vmax.f32 %v8797_v45, 0.0 }
 0x2f2   : > { %v4679_v41 = vsel %vm2499_vm1, 1.0, %v9766_v25  ;;  %v4680_v60 = vsel %vm2500_vm8, 1.0, %v9766_v25  ;;  %v4681_v4 = vsel %vm2501_vm11, 1.0, %v9766_v25  ;;  %v3810_v25 = vmax.f32 %v8788_v50, 0.0 }
 0x2f3   : > { %v2787_v46 = vadd.f32 %v4679_v41, %v2275_v28  ;;  %v2788_v31 = vadd.f32 %v4680_v60, %v2276_v63  ;;  %v2789_v34 = vadd.f32 %v4681_v4, %v2277_v3  ;;  %v3816_v50 = vmax.f32 %v9018_v1, 0.0 }
 0x2f4   : > { %v3817_v45 = vmax.f32 %v9074_v13, 0.0  ;;  %v3821_v13 = vmax.f32 %v9375_v26, 0.0 }
 0x2f5   : > { %v3299_v18 = vadd.f32 %v4775_v14, %v2787_v46  ;;  %v3300_v37 = vadd.f32 %v4776_v33, %v2788_v31  ;;  %v3301_v32 = vadd.f32 %v4777_v44, %v2789_v34 }
 0x2f7   : > { %3576 = vmatprep.mubr.f32.mxu0 %v3300_v37  ;;  %4960 = vmatmul.mubr.f32.gmra.mrb[30].mxu1 %v3301_v32 }
 0x2f8   : > { %3577 = vmatmul.mubr.f32.gmra.mrb[62].mxu0 %v3299_v18  ;;  %4994 = vmatprep.mubr.f32.mxu1 %v3807_v57 }
 0x2fb   : > { %4995 = vmatmul.mubr.f32.vlgmr.msra.gmra.mrb[32].mxu1 %v3808_v27 }
 0x2fc   : > { %4997 = vmatprep.mubr.f32.mxu1 %v3809_v61 }
 0x2ff   : > { %4998 = vmatmul.mubr.f32.gmra.mrb[34].mxu1 %v3810_v25  ;;  %v3513_v51 = vpop.f32.mrb[36].mxu0 }
 0x300   : > { %5000 = vmatprep.mubr.f32.mxu1 %v3811_v5  ;;  %v3515_v21 = vpop.f32.mrb[37].mxu0  ;;  %v3514_v9 = vadd.f32 %v9363_v59, %v3513_v51 }
 0x303   : > { %5001 = vmatmul.mubr.f32.gmra.mrb[36].mxu1 %v3812_v19 }
 0x304   : > { %5003 = vmatprep.mubr.f32.mxu1 %v3813_v23 }
 0x307   : > { %5004 = vmatmul.mubr.f32.gmra.mrb[38].mxu1 %v3814_v55 }
 0x308   : > { %5006 = vmatprep.mubr.f32.mxu1 %v3815_v54 }
 0x30b   : > { %5007 = vmatmul.mubr.f32.gmra.mrb[40].mxu1 %v3816_v50 }
 0x30c   : > { %5009 = vmatprep.mubr.f32.mxu1 %v3817_v45 }
 0x30f   : > { %5010 = vmatmul.mubr.f32.gmra.mrb[42].mxu1 %v3818_v29  ;;  %v4943_v47 = vpop.f32.mrb[18].mxu1 }
 0x310   : > { %v3518_v43 = vpop.f32.mrb[38].mxu0  ;;  %5012 = vmatprep.mubr.f32.mxu1 %v3819_v12  ;;  %v3738_v62 = vpop.f32.mrb[19].mxu1 }
 0x311   : > { %v3519_v24 = vadd.f32 %v9363_v59, %v3518_v43  ;;  %v3520_v1 = vpop.f32.mrb[39].mxu0  ;;  %v3739_v16 = vadd.f32 %v3738_v62, %v3514_v9 }
 0x313   : > { %v3744_v35 = vadd.f32 %v4943_v47, %v3519_v24  ;;  %5013 = vmatmul.mubr.f32.gmra.mrb[44].mxu1 %v3820_v48  ;;  %v3825_v22 = vmax.f32 %v3739_v16, 0.0 }
 0x314   : > { %v3523_v40 = vpop.f32.mrb[40].mxu0  ;;  %5015 = vmatprep.mubr.f32.mxu1 %v3821_v13 }
 0x315   : > { %v3525_v8 = vpop.f32.mrb[41].mxu0  ;;  %v3826_v36 = vmax.f32 %v3744_v35, 0.0  ;;  %v3524_v26 = vadd.f32 %v9363_v59, %v3523_v40 }
 0x317   : > { %5016 = vmatmul.mubr.f32.gmra.mrb[46].mxu1 %v3822_v56 }
 0x318   : > { %5018 = vmatprep.mubr.f32.mxu1 %v3823_v7 }
 0x31b   : > { %5019 = vmatmul.mubr.f32.gmra.mrb[48].mxu1 %v3824_v42 }
 0x31c   : > { %5021 = vmatprep.mubr.f32.mxu1 %v3825_v22 }
 0x31f   : > { %5022 = vmatmul.mubr.f32.gmra.mrb[50].mxu1 %v3826_v36 }
 0x332   : > { %v4946_v58 = vpop.f32.mrb[20].mxu1 }
 0x333   : > { %v3528_v0 = vpop.f32.mrb[42].mxu0  ;;  %v3748_v38 = vpop.f32.mrb[21].mxu1 }
 0x334   : > { %v3529_v2 = vadd.f32 %v9363_v59, %v3528_v0  ;;  %v3749_v15 = vadd.f32 %v3748_v38, %v3524_v26  ;;  %v3530_v6 = vpop.f32.mrb[43].mxu0 }
 0x336   : > { %v3754_v39 = vadd.f32 %v4946_v58, %v3529_v2  ;;  %v3827_v10 = vmax.f32 %v3749_v15, 0.0  ;;  %v9548_v2 = vld [vmem:[%s9672_s4] ss:$0 sm:$0xff] }
 0x338   : > { %v3828_v20 = vmax.f32 %v3754_v39, 0.0  ;;  %5024 = vmatprep.mubr.f32.mxu1 %v3827_v10 }
 0x33a   : > { %5025 = vmatmul.mubr.f32.gmra.mrb[52].mxu1 %v3828_v20 }
 0x342   : > { %v3533_v53 = vpop.f32.mrb[44].mxu0  ;;  %v4949_v17 = vpop.f32.mrb[22].mxu1 }
 0x343   : > { %v3534_v52 = vadd.f32 %v9363_v59, %v3533_v53  ;;  %v3535_v30 = vpop.f32.mrb[45].mxu0  ;;  %v3758_v49 = vpop.f32.mrb[23].mxu1 }
 0x345   : > { %v3759_v28 = vadd.f32 %v3758_v49, %v3534_v52 }
 0x346   : > { %v3538_v63 = vpop.f32.mrb[46].mxu0 }
 0x347   : > { %v3829_v11 = vmax.f32 %v3759_v28, 0.0  ;;  %v3539_v14 = vadd.f32 %v9363_v59, %v3538_v63  ;;  %v3540_v33 = vpop.f32.mrb[47].mxu0 }
 0x349   : > { %v3764_v3 = vadd.f32 %v4949_v17, %v3539_v14  ;;  %5027 = vmatprep.mubr.f32.mxu1 %v3829_v11 }
 0x34b   : > { %v3830_v41 = vmax.f32 %v3764_v3, 0.0 }
 0x34d   : > { %5028 = vmatmul.mubr.f32.gmra.mrb[54].mxu1 %v3830_v41 }
 0x365   : > { %v3543_v60 = vpop.f32.mrb[48].mxu0 }
 0x366   : > { %v3545_v4 = vpop.f32.mrb[49].mxu0  ;;  %v3544_v44 = vadd.f32 %v9363_v59, %v3543_v60 }
 0x373   : > { %v4952_v46 = vpop.f32.mrb[24].mxu1 }
 0x374   : > { %v3548_v31 = vpop.f32.mrb[50].mxu0  ;;  %v3768_v34 = vpop.f32.mrb[25].mxu1 }
 0x375   : > { %v3549_v18 = vadd.f32 %v9363_v59, %v3548_v31  ;;  %v3769_v37 = vadd.f32 %v3768_v34, %v3544_v44  ;;  %v3550_v32 = vpop.f32.mrb[51].mxu0 }
 0x377   : > { %v3774_v57 = vadd.f32 %v4952_v46, %v3549_v18  ;;  %v3831_v27 = vmax.f32 %v3769_v37, 0.0 }
 0x378   : > { %v3553_v61 = vpop.f32.mrb[52].mxu0 }
 0x379   : > { %v3832_v25 = vmax.f32 %v3774_v57, 0.0  ;;  %v3555_v5 = vpop.f32.mrb[53].mxu0  ;;  %5030 = vmatprep.mubr.f32.mxu1 %v3831_v27  ;;  %v3554_v51 = vadd.f32 %v9363_v59, %v3553_v61 }
 0x37b   : > { %5031 = vmatmul.mubr.f32.gmra.mrb[56].mxu1 %v3832_v25 }
 0x396   : > { %v4955_v21 = vpop.f32.mrb[26].mxu1 }
 0x397   : > { %v3558_v19 = vpop.f32.mrb[54].mxu0  ;;  %v3778_v23 = vpop.f32.mrb[27].mxu1 }
 0x398   : > { %v3559_v55 = vadd.f32 %v9363_v59, %v3558_v19  ;;  %v3779_v54 = vadd.f32 %v3778_v23, %v3554_v51  ;;  %v3560_v50 = vpop.f32.mrb[55].mxu0 }
 0x39a   : > { %v3784_v45 = vadd.f32 %v4955_v21, %v3559_v55  ;;  %v3833_v29 = vmax.f32 %v3779_v54, 0.0 }
 0x39c   : > { %v3834_v12 = vmax.f32 %v3784_v45, 0.0  ;;  %5033 = vmatprep.mubr.f32.mxu1 %v3833_v29 }
 0x39e   : > { %5034 = vmatmul.mubr.f32.gmra.mrb[58].mxu1 %v3834_v12 }
 0x3a6   : > { %v3563_v9 = vpop.f32.mrb[56].mxu0  ;;  %v4958_v47 = vpop.f32.mrb[28].mxu1 }
 0x3a7   : > { %v3564_v43 = vadd.f32 %v9363_v59, %v3563_v9  ;;  %v3565_v48 = vpop.f32.mrb[57].mxu0  ;;  %v3788_v24 = vpop.f32.mrb[29].mxu1 }
 0x3a9   : > { %v3789_v62 = vadd.f32 %v3788_v24, %v3564_v43 }
 0x3aa   : > { %v3568_v1 = vpop.f32.mrb[58].mxu0 }
 0x3ab   : > { %v3835_v13 = vmax.f32 %v3789_v62, 0.0  ;;  %v3569_v16 = vadd.f32 %v9363_v59, %v3568_v1  ;;  %v3570_v35 = vpop.f32.mrb[59].mxu0 }
 0x3ad   : > { %v3794_v40 = vadd.f32 %v4958_v47, %v3569_v16  ;;  %5036 = vmatprep.mubr.f32.mxu1 %v3835_v13 }
 0x3af   : > { %v3836_v56 = vmax.f32 %v3794_v40, 0.0 }
 0x3b1   : > { %5037 = vmatmul.mubr.f32.gmra.mrb[60].mxu1 %v3836_v56 }
 0x3c4   : > { %v3573_v8 = vpop.f32.mrb[60].mxu0 }
 0x3c5   : > { %v3575_v7 = vpop.f32.mrb[61].mxu0  ;;  %v3574_v42 = vadd.f32 %v9363_v59, %v3573_v8 }
 0x3ca   : > { %v4961_v22 = vpop.f32.mrb[30].mxu1 }
 0x3cb   : > { %v3578_v36 = vpop.f32.mrb[62].mxu0  ;;  %v3798_v26 = vpop.f32.mrb[31].mxu1 }
 0x3cc   : > { %v3579_v58 = vadd.f32 %v9363_v59, %v3578_v36  ;;  %v3799_v0 = vadd.f32 %v3798_v26, %v3574_v42  ;;  %v3580_v38 = vpop.f32.mrb[63].mxu0 }
 0x3ce   : > { %v3804_v15 = vadd.f32 %v4961_v22, %v3579_v58  ;;  %v3837_v6 = vmax.f32 %v3799_v0, 0.0  ;;  %v4996_v39 = vpop.f32.mrb[32].mxu1 }
 0x3cf   : > { %v3934_v10 = vadd.f32 %v4996_v39, %v9548_v2  ;;  %v3928_v20 = vpop.f32.mrb[33].mxu1 }
 0x3d0   : > { %v3838_v53 = vmax.f32 %v3804_v15, 0.0  ;;  %v3929_v17 = vadd.f32 %v9548_v2, %v3928_v20  ;;  %5039 = vmatprep.mubr.f32.mxu1 %v3837_v6 }
 0x3d1   : > { %4088 = vst [vmem:[%s9552_s7 + $0x8] sm:$0xff] %v3934_v10 }
 0x3d2   : > { %4087 = vst [vmem:[%s9552_s7] sm:$0xff] %v3929_v17  ;;  %v4999_v59 = vpop.f32.mrb[34].mxu1  ;;  %5040 = vmatmul.mubr.f32.gmra.mrb[62].mxu1 %v3838_v53 }
 0x3d3   : > { %v3944_v52 = vadd.f32 %v4999_v59, %v9548_v2  ;;  %v3938_v30 = vpop.f32.mrb[35].mxu1 }
 0x3d4   : > { %v3939_v49 = vadd.f32 %v9548_v2, %v3938_v30 }
 0x3d5   : > { %4090 = vst [vmem:[%s9552_s7 + $0x18] sm:$0xff] %v3944_v52 }
 0x3d6   : > { %4089 = vst [vmem:[%s9552_s7 + $0x10] sm:$0xff] %v3939_v49  ;;  %v5002_v28 = vpop.f32.mrb[36].mxu1 }
 0x3d7   : > { %v3954_v63 = vadd.f32 %v5002_v28, %v9548_v2  ;;  %v3948_v11 = vpop.f32.mrb[37].mxu1 }
 0x3d8   : > { %v3949_v14 = vadd.f32 %v9548_v2, %v3948_v11 }
 0x3d9   : > { %4092 = vst [vmem:[%s9552_s7 + $0x28] sm:$0xff] %v3954_v63 }
 0x3da   : > { %4091 = vst [vmem:[%s9552_s7 + $0x20] sm:$0xff] %v3949_v14  ;;  %v5005_v33 = vpop.f32.mrb[38].mxu1 }
 0x3db   : > { %v3964_v3 = vadd.f32 %v5005_v33, %v9548_v2  ;;  %v3958_v41 = vpop.f32.mrb[39].mxu1 }
 0x3dc   : > { %v3959_v60 = vadd.f32 %v9548_v2, %v3958_v41 }
 0x3dd   : > { %4094 = vst [vmem:[%s9552_s7 + $0x38] sm:$0xff] %v3964_v3 }
 0x3de   : > { %4093 = vst [vmem:[%s9552_s7 + $0x30] sm:$0xff] %v3959_v60  ;;  %v5008_v4 = vpop.f32.mrb[40].mxu1 }
 0x3df   : > { %v3974_v44 = vadd.f32 %v5008_v4, %v9548_v2  ;;  %v3968_v46 = vpop.f32.mrb[41].mxu1 }
 0x3e0   : > { %v3969_v31 = vadd.f32 %v9548_v2, %v3968_v46 }
 0x3e1   : > { %4096 = vst [vmem:[%s9552_s7 + $0x48] sm:$0xff] %v3974_v44 }
 0x3e2   : > { %4095 = vst [vmem:[%s9552_s7 + $0x40] sm:$0xff] %v3969_v31  ;;  %v5011_v34 = vpop.f32.mrb[42].mxu1 }
 0x3e3   : > { %v3984_v18 = vadd.f32 %v5011_v34, %v9548_v2  ;;  %v3978_v37 = vpop.f32.mrb[43].mxu1 }
 0x3e4   : > { %v3979_v32 = vadd.f32 %v9548_v2, %v3978_v37 }
 0x3e5   : > { %4098 = vst [vmem:[%s9552_s7 + $0x58] sm:$0xff] %v3984_v18 }
 0x3e6   : > { %4097 = vst [vmem:[%s9552_s7 + $0x50] sm:$0xff] %v3979_v32  ;;  %v5014_v57 = vpop.f32.mrb[44].mxu1 }
 0x3e7   : > { %v3994_v27 = vadd.f32 %v5014_v57, %v9548_v2  ;;  %v3988_v61 = vpop.f32.mrb[45].mxu1 }
 0x3e8   : > { %v3989_v25 = vadd.f32 %v9548_v2, %v3988_v61 }
 0x3e9   : > { %4100 = vst [vmem:[%s9552_s7 + $0x68] sm:$0xff] %v3994_v27 }
 0x3ea   : > { %4099 = vst [vmem:[%s9552_s7 + $0x60] sm:$0xff] %v3989_v25  ;;  %v5017_v5 = vpop.f32.mrb[46].mxu1 }
 0x3eb   : > { %v4004_v51 = vadd.f32 %v5017_v5, %v9548_v2  ;;  %v3998_v21 = vpop.f32.mrb[47].mxu1 }
 0x3ec   : > { %v3999_v19 = vadd.f32 %v9548_v2, %v3998_v21 }
 0x3ed   : > { %4102 = vst [vmem:[%s9552_s7 + $0x78] sm:$0xff] %v4004_v51 }
 0x3ee   : > { %4101 = vst [vmem:[%s9552_s7 + $0x70] sm:$0xff] %v3999_v19  ;;  %v5020_v23 = vpop.f32.mrb[48].mxu1 }
 0x3ef   : > { %v4014_v55 = vadd.f32 %v5020_v23, %v9548_v2  ;;  %v4008_v54 = vpop.f32.mrb[49].mxu1 }
 0x3f0   : > { %v4009_v50 = vadd.f32 %v9548_v2, %v4008_v54 }
 0x3f1   : > { %4104 = vst [vmem:[%s9552_s7 + $0x88] sm:$0xff] %v4014_v55 }
 0x3f2   : > { %4103 = vst [vmem:[%s9552_s7 + $0x80] sm:$0xff] %v4009_v50  ;;  %v5023_v45 = vpop.f32.mrb[50].mxu1 }
 0x3f3   : > { %v4024_v29 = vadd.f32 %v5023_v45, %v9548_v2  ;;  %v4018_v12 = vpop.f32.mrb[51].mxu1 }
 0x3f4   : > { %v4019_v9 = vadd.f32 %v9548_v2, %v4018_v12 }
 0x3f5   : > { %4106 = vst [vmem:[%s9552_s7 + $0x98] sm:$0xff] %v4024_v29 }
 0x3f6   : > { %4105 = vst [vmem:[%s9552_s7 + $0x90] sm:$0xff] %v4019_v9 }
 0x40d   : > { %v5026_v47 = vpop.f32.mrb[52].mxu1 }
 0x40e   : > { %v4034_v43 = vadd.f32 %v5026_v47, %v9548_v2  ;;  %v4028_v48 = vpop.f32.mrb[53].mxu1 }
 0x40f   : > { %v4029_v24 = vadd.f32 %v9548_v2, %v4028_v48 }
 0x410   : > { %4108 = vst [vmem:[%s9552_s7 + $0xa8] sm:$0xff] %v4034_v43 }
 0x411   : > { %4107 = vst [vmem:[%s9552_s7 + $0xa0] sm:$0xff] %v4029_v24 }
 0x420   : > { %v5029_v62 = vpop.f32.mrb[54].mxu1 }
 0x421   : > { %v4044_v1 = vadd.f32 %v5029_v62, %v9548_v2  ;;  %v4038_v13 = vpop.f32.mrb[55].mxu1 }
 0x422   : > { %v4039_v16 = vadd.f32 %v9548_v2, %v4038_v13 }
 0x423   : > { %4110 = vst [vmem:[%s9552_s7 + $0xb8] sm:$0xff] %v4044_v1 }
 0x424   : > { %4109 = vst [vmem:[%s9552_s7 + $0xb0] sm:$0xff] %v4039_v16 }
 0x44e   : > { %v5032_v35 = vpop.f32.mrb[56].mxu1 }
 0x44f   : > { %v4054_v40 = vadd.f32 %v5032_v35, %v9548_v2  ;;  %v4048_v56 = vpop.f32.mrb[57].mxu1 }
 0x450   : > { %v4049_v8 = vadd.f32 %v9548_v2, %v4048_v56 }
 0x451   : > { %4112 = vst [vmem:[%s9552_s7 + $0xc8] sm:$0xff] %v4054_v40 }
 0x452   : > { %4111 = vst [vmem:[%s9552_s7 + $0xc0] sm:$0xff] %v4049_v8 }
 0x471   : > { %v5035_v7 = vpop.f32.mrb[58].mxu1 }
 0x472   : > { %v4064_v42 = vadd.f32 %v5035_v7, %v9548_v2  ;;  %v4058_v22 = vpop.f32.mrb[59].mxu1 }
 0x473   : > { %v4059_v36 = vadd.f32 %v9548_v2, %v4058_v22 }
 0x474   : > { %4114 = vst [vmem:[%s9552_s7 + $0xd8] sm:$0xff] %v4064_v42 }
 0x475   : > { %4113 = vst [vmem:[%s9552_s7 + $0xd0] sm:$0xff] %v4059_v36 }
 0x484   : > { %v5038_v26 = vpop.f32.mrb[60].mxu1 }
 0x485   : > { %v4074_v58 = vadd.f32 %v5038_v26, %v9548_v2  ;;  %v4068_v0 = vpop.f32.mrb[61].mxu1 }
 0x486   : > { %v4069_v38 = vadd.f32 %v9548_v2, %v4068_v0 }
 0x487   : > { %4116 = vst [vmem:[%s9552_s7 + $0xe8] sm:$0xff] %v4074_v58 }
 0x488   : > { %4115 = vst [vmem:[%s9552_s7 + $0xe0] sm:$0xff] %v4069_v38 }
 0x4a5   : > { %v5041_v15 = vpop.f32.mrb[62].mxu1 }
 0x4a6   : > { %v4084_v6 = vadd.f32 %v5041_v15, %v9548_v2  ;;  %v4078_v39 = vpop.f32.mrb[63].mxu1 }
 0x4a7   : > { %v4079_v10 = vadd.f32 %v9548_v2, %v4078_v39 }
 0x4a8   : > { %4118 = vst [vmem:[%s9552_s7 + $0xf8] sm:$0xff] %v4084_v6 }
 0x4a9   : > { %4117 = vst [vmem:[%s9552_s7 + $0xf0] sm:$0xff] %v4079_v10 }
 0x4aa   : > { %5350 = shalt.err (!%p5347_p3)
}
 0x4ab   : > { %s5351_s9 = scalar_lea.hbm %s9618_s13, 4096  ;;  %s5355_s26 = scalar_lea.hbm %s9673_s5, 8192 }
 0x4ac   : > { %p5352_p4 = scmp.ne.s32.totalorder %s9618_s13, %s5351_s9  ;;  %p5356_p9 = scmp.lt.u32.totalorder %s9618_s13, %s9673_s5 }
 0x4ad   : > { %p5357_p10 = scmp.lt.u32.totalorder %s5355_s26, %s5351_s9  ;;  %p5359_p12 = scmp.lt.u32.totalorder %s5351_s9, %s9618_s13 }
 0x4ae   : > { %p5353_p7 = pnand %p5352_p4, %p5480_p5 }
 0x4af   : > { %p5358_p11 = por %p5357_p10, %p5356_p9 }
 0x4b0   : > { %p5354_p8 = pneg %p5353_p7 }
 0x4b1   : > { %p5360_p13 = por %p5359_p12, %p5358_p11 }
 0x4b3   : > { %p5361_p0 = pnand %p5360_p13, %p5354_p8 }
 0x4b5   : > { %5364 = shalt.err (!%p5361_p0)
}
 0x4b6   : > { %s5410_s7 = smov 128   ;;  %s5411_s8 = smov 8  }
 0x4b7   : > { %5154 = dma.vmem_to_hbm [thread:$0]  (%p5480_p5), %s9620_s10, 4096, %s9618_s13, %s9627_s22, %s5410_s7, %s5410_s7, %s5411_s8  }
 0x4b8 PF: > { %p5160_p1 = scmp.ge.s32.totalorder %s5399_s21, 2  ;;  %s4148_s11 = sand.u32 1, %s5387_s18  }
 0x4b9   : > { %s4149_s12 = scalar_lea.sflag [#allocation3], %s4148_s11 }
 0x4ba   : > { %p5157_p2 = pnand %p5160_p1, %p5484_p6 }
 0x4bc   : > { %5382 = dma.done.wait (!%p5157_p2), %s4149_s12, 4096  }
 0x4bd   : > { %5384 = vsyncadd (!%p5157_p2), %s4149_s12, 4294963200  ;;  %p15_p3 = scmp.ge.s32.totalorder %s5467_s24, 4   ;;  %s10026_s18 = smov %s5391_s19 }
 0x4be   : > { %s10027_s19 = smov %s5395_s20  ;;  %s10028_s20 = smov %s5478_s27 }
 0x4bf   : > { %s10029_s21 = smov %s5467_s24  ;;  %17 = sbr.rel (!%p15_p3) target bundleno = 3 (0x3), region = 75 }
 0x4c6   :  { %4154 = vsyncpa [#allocation3], 1 }
 0x4c7   :  { %4156 = vsyncpa [#allocation3 + $0x1], 1 }

</bundles_post_ra>
